<compile_context>
chip_gen: v7x
topology: tpu7x:2x2x1
jax: 0.10.0
libtpu: 0.0.40
codegen_flags: <defaults>
</compile_context>

<pallas_src>
import functools

import jax
import jax.numpy as jnp
from jax.experimental import pallas as pl
from jax.experimental.pallas import tpu as pltpu

EPS = 1e-5
LRELU_SLOPE = 0.2
VMEM_LIMIT_BYTES = 48 * 1024 * 1024   # > default scoped limit, < v7x physical


def _pad128(c):
    return ((c + 127) // 128) * 128


def _pick_row_tile(total, requested=None, cap=1024):
    """Largest divisor of `total` that is a multiple of 8 and <= cap (fallback: total)."""
    if requested is not None:
        assert total % requested == 0, (total, requested)
        return requested
    for cand in range(min(cap, total), 7, -1):
        if total % cand == 0 and cand % 8 == 0:
            return cand
    return total


def _pick_h_tile(ho, wo, requested=None, cap_rows=2048):
    """Output-image-row tile for the 3x3 conv (tile_rows * Wo <= cap_rows)."""
    if requested is not None:
        assert ho % requested == 0, (ho, requested)
        return requested
    for cand in range(ho, 0, -1):
        if ho % cand == 0 and cand * wo <= cap_rows:
            return cand
    return 1


# ---------------------------------------------------------------------------
# Kernel 1: 1x1 conv (matmul) + InstanceNorm + LeakyReLU
#           (optionally fused residual add + ReLU for conv3)
#
# grid = (N, 2, T): batch ('parallel'), pass, row-tile ('arbitrary').
# pass 0: accumulate per-channel sum / sumsq in VMEM scratch.
# pass 1: recompute tile, normalize with the finished stats, activate, write.
# ---------------------------------------------------------------------------
def _make_conv1x1_in_kernel(count, has_identity):
    inv_count = 1.0 / float(count)

    def kernel(*refs):
        if has_identity:
            x_ref, w_ref, b_ref, id_ref, out_ref, stats_ref = refs
        else:
            x_ref, w_ref, b_ref, out_ref, stats_ref = refs

        p = pl.program_id(1)
        t = pl.program_id(2)

        # bf16 (or f32) operands into the MXU, f32 accumulation + f32 bias.
        y = jnp.dot(x_ref[...], w_ref[...],
                    preferred_element_type=jnp.float32) + b_ref[...]

        @pl.when((p == 0) & (t == 0))
        def _init():
            stats_ref[...] = jnp.zeros_like(stats_ref)

        @pl.when(p == 0)
        def _accumulate():
            stats_ref[0:1, :] += jnp.sum(y, axis=0, keepdims=True)
            stats_ref[1:2, :] += jnp.sum(y * y, axis=0, keepdims=True)

        @pl.when(p == 1)
        def _finalize():
            mean = stats_ref[0:1, :] * inv_count
            var = jnp.maximum(stats_ref[1:2, :] * inv_count - mean * mean, 0.0)
            yn = (y - mean) * jax.lax.rsqrt(var + EPS)
            act = jnp.where(yn >= 0, yn, LRELU_SLOPE * yn)
            if has_identity:
                act = jnp.maximum(act + id_ref[...].astype(jnp.float32), 0.0)
            out_ref[...] = act.astype(out_ref.dtype)

    return kernel


def conv1x1_in_lrelu(x2d, w, b, n_batch, hw, *, identity=None, row_tile=None,
                     out_dtype=jnp.bfloat16):
    rows, cin_p = x2d.shape
    cout_p = w.shape[1]
    assert rows == n_batch * hw
    tr = _pick_row_tile(hw, row_tile)
    assert (tr % 8 == 0) or (n_batch == 1 and tr == hw), (
        "row tile must be a multiple of 8 (or cover the whole array)")
    T = hw // tr
    if identity is not None:
        assert identity.shape == (rows, cout_p)

    kernel = _make_conv1x1_in_kernel(hw, identity is not None)

    in_specs = [
        pl.BlockSpec((tr, cin_p), lambda n, p, t: (n * T + t, 0)),
        pl.BlockSpec((cin_p, cout_p), lambda n, p, t: (0, 0)),
        pl.BlockSpec((1, cout_p), lambda n, p, t: (0, 0)),
    ]
    args = [x2d, w, b]
    if identity is not None:
        # t*p trick: during the stats pass the index stays constant so the
        # identity tile is not re-fetched per step; real tiles in pass 1 only.
        in_specs.append(pl.BlockSpec((tr, cout_p), lambda n, p, t: (n * T + t * p, 0)))
        args.append(identity)

    return pl.pallas_call(
        kernel,
        out_shape=jax.ShapeDtypeStruct((rows, cout_p), out_dtype),
        grid_spec=pltpu.PrefetchScalarGridSpec(
            num_scalar_prefetch=0,
            grid=(n_batch, 2, T),
            in_specs=in_specs,
            # Output block index is constant during pass 0 (never flushed,
            # never written); pass 1 writes every tile exactly once.
            out_specs=pl.BlockSpec((tr, cout_p), lambda n, p, t: (n * T + t * p, 0)),
            scratch_shapes=[pltpu.VMEM((8, cout_p), jnp.float32)],
        ),
        compiler_params=pltpu.CompilerParams(
            dimension_semantics=("parallel", "arbitrary", "arbitrary"),
            vmem_limit_bytes=VMEM_LIMIT_BYTES),
    )(*args)


# ---------------------------------------------------------------------------
# Kernel 2: 3x3 conv (9 shifted matmuls over a halo window) + InstanceNorm +
#           LeakyReLU.  No im2col in HBM: the halo array only duplicates two
#           boundary rows per tile.
# ---------------------------------------------------------------------------
def _make_conv3x3_in_kernel(count, tho, wo, stride, cout_p):
    inv_count = 1.0 / float(count)

    def kernel(x_ref, w_ref, b_ref, out_ref, stats_ref):
        p = pl.program_id(1)
        t = pl.program_id(2)

        win = x_ref[...]                                  # (win_rows, W+2, Cin_p)
        acc = jnp.zeros((tho * wo, cout_p), jnp.float32)
        for di in range(3):
            for dj in range(3):
                h_stop = di + (tho - 1) * stride + 1
                w_stop = dj + (wo - 1) * stride + 1
                if stride == 1:
                    patch = win[di:h_stop, dj:w_stop, :]
                else:
                    # TODO(synk): strided (stride>1) in-kernel slicing is
                    # functional but not tuned.
                    patch = win[di:h_stop:stride, dj:w_stop:stride, :]
                patch2 = patch.reshape(tho * wo, patch.shape[-1])
                acc = acc + jnp.dot(patch2, w_ref[di * 3 + dj],
                                    preferred_element_type=jnp.float32)
        y = acc + b_ref[...]

        @pl.when((p == 0) & (t == 0))
        def _init():
            stats_ref[...] = jnp.zeros_like(stats_ref)

        @pl.when(p == 0)
        def _accumulate():
            stats_ref[0:1, :] += jnp.sum(y, axis=0, keepdims=True)
            stats_ref[1:2, :] += jnp.sum(y * y, axis=0, keepdims=True)

        @pl.when(p == 1)
        def _finalize():
            mean = stats_ref[0:1, :] * inv_count
            var = jnp.maximum(stats_ref[1:2, :] * inv_count - mean * mean, 0.0)
            yn = (y - mean) * jax.lax.rsqrt(var + EPS)
            act = jnp.where(yn >= 0, yn, LRELU_SLOPE * yn)
            out_ref[...] = act.reshape(tho, wo, cout_p).astype(out_ref.dtype)

    return kernel


def conv3x3_in_lrelu(halo, w9, b, n_batch, t_h, tho, wo, stride, count,
                     out_dtype=jnp.bfloat16):
    _, _, win_rows, wp, cin_p = halo.shape
    cout_p = w9.shape[-1]
    ho = t_h * tho

    kernel = _make_conv3x3_in_kernel(count, tho, wo, stride, cout_p)

    return pl.pallas_call(
        kernel,
        out_shape=jax.ShapeDtypeStruct((n_batch, ho, wo, cout_p), out_dtype),
        grid_spec=pltpu.PrefetchScalarGridSpec(
            num_scalar_prefetch=0,
            grid=(n_batch, 2, t_h),
            in_specs=[
                pl.BlockSpec((None, None, win_rows, wp, cin_p),
                             lambda n, p, t: (n, t, 0, 0, 0)),
                pl.BlockSpec((9, cin_p, cout_p), lambda n, p, t: (0, 0, 0)),
                pl.BlockSpec((1, cout_p), lambda n, p, t: (0, 0)),
            ],
            out_specs=pl.BlockSpec((None, tho, wo, cout_p),
                                   lambda n, p, t: (n, t * p, 0, 0)),
            scratch_shapes=[pltpu.VMEM((8, cout_p), jnp.float32)],
        ),
        compiler_params=pltpu.CompilerParams(
            dimension_semantics=("parallel", "arbitrary", "arbitrary"),
            vmem_limit_bytes=VMEM_LIMIT_BYTES),
    )(halo, w9, b)


# ---------------------------------------------------------------------------
# Kernel 3: 1x1 conv + BatchNorm (batch statistics) + LeakyReLU (downsample).
# Stats are global over all rows, so the whole grid is one sequential
# reduction (no 'parallel' axis possible here).
# ---------------------------------------------------------------------------
def _make_conv1x1_bn_kernel(count):
    inv_count = 1.0 / float(count)

    def kernel(x_ref, w_ref, b_ref, g_ref, beta_ref, out_ref, stats_ref):
        p = pl.program_id(0)
        t = pl.program_id(1)

        y = jnp.dot(x_ref[...], w_ref[...],
                    preferred_element_type=jnp.float32) + b_ref[...]

        @pl.when((p == 0) & (t == 0))
        def _init():
            stats_ref[...] = jnp.zeros_like(stats_ref)

        @pl.when(p == 0)
        def _accumulate():
            stats_ref[0:1, :] += jnp.sum(y, axis=0, keepdims=True)
            stats_ref[1:2, :] += jnp.sum(y * y, axis=0, keepdims=True)

        @pl.when(p == 1)
        def _finalize():
            mean = stats_ref[0:1, :] * inv_count
            var = jnp.maximum(stats_ref[1:2, :] * inv_count - mean * mean, 0.0)
            yn = (y - mean) * jax.lax.rsqrt(var + EPS)
            yn = yn * g_ref[...] + beta_ref[...]
            out_ref[...] = jnp.where(yn >= 0, yn, LRELU_SLOPE * yn).astype(out_ref.dtype)

    return kernel


def conv1x1_bn_lrelu(x2d, w, b, gamma, beta, *, row_tile=None,
                     out_dtype=jnp.bfloat16):
    rows, cin_p = x2d.shape
    cout_p = w.shape[1]
    tr = _pick_row_tile(rows, row_tile)
    assert (tr % 8 == 0) or (tr == rows)
    T = rows // tr

    kernel = _make_conv1x1_bn_kernel(rows)

    return pl.pallas_call(
        kernel,
        out_shape=jax.ShapeDtypeStruct((rows, cout_p), out_dtype),
        grid_spec=pltpu.PrefetchScalarGridSpec(
            num_scalar_prefetch=0,
            grid=(2, T),
            in_specs=[
                pl.BlockSpec((tr, cin_p), lambda p, t: (t, 0)),
                pl.BlockSpec((cin_p, cout_p), lambda p, t: (0, 0)),
                pl.BlockSpec((1, cout_p), lambda p, t: (0, 0)),
                pl.BlockSpec((1, cout_p), lambda p, t: (0, 0)),
                pl.BlockSpec((1, cout_p), lambda p, t: (0, 0)),
            ],
            out_specs=pl.BlockSpec((tr, cout_p), lambda p, t: (t * p, 0)),
            scratch_shapes=[pltpu.VMEM((8, cout_p), jnp.float32)],
        ),
        compiler_params=pltpu.CompilerParams(
            dimension_semantics=("arbitrary", "arbitrary"),
            vmem_limit_bytes=VMEM_LIMIT_BYTES),
    )(x2d, w, b, gamma, beta)


# ---------------------------------------------------------------------------
# Parameters (deterministic, PyTorch conv layout OIHW) + layout helpers
# ---------------------------------------------------------------------------
def init_params(key, inplanes, planes, expansion=4):
    ks = jax.random.split(key, 4)
    return {
        "w1": 0.02 * jax.random.normal(ks[0], (planes, inplanes, 1, 1), jnp.float32),
        "b1": jnp.zeros((planes,), jnp.float32),
        "w2": 0.02 * jax.random.normal(ks[1], (planes, planes, 3, 3), jnp.float32),
        "b2": jnp.zeros((planes,), jnp.float32),
        "w3": 0.02 * jax.random.normal(ks[2], (planes * expansion, planes, 1, 1), jnp.float32),
        "b3": jnp.zeros((planes * expansion,), jnp.float32),
        "wd": 0.02 * jax.random.normal(ks[3], (planes * expansion, inplanes, 1, 1), jnp.float32),
        "bd": jnp.zeros((planes * expansion,), jnp.float32),
        "bn_gamma": jnp.ones((planes * expansion,), jnp.float32),
        "bn_beta": jnp.zeros((planes * expansion,), jnp.float32),
    }


def _w1x1_to_mat(w, cin_p, cout_p, dtype):
    m = jnp.transpose(w[:, :, 0, 0], (1, 0))              # (Cin, Cout)
    m = jnp.pad(m, ((0, cin_p - m.shape[0]), (0, cout_p - m.shape[1])))
    return m.astype(dtype)


def _w3x3_to_mat(w, cin_p, cout_p, dtype):
    m = jnp.transpose(w, (2, 3, 1, 0))                    # (3, 3, Cin, Cout)
    m = jnp.pad(m, ((0, 0), (0, 0),
                    (0, cin_p - m.shape[2]), (0, cout_p - m.shape[3])))
    return m.reshape(9, cin_p, cout_p).astype(dtype)


def _vec_row(v, cp):
    return jnp.pad(v, (0, cp - v.shape[0]))[None, :].astype(jnp.float32)


# ---------------------------------------------------------------------------
# Bottleneck_IN forward
# ---------------------------------------------------------------------------
def bottleneck_in_forward(x_nchw, params, stride=1, first=True,
                          act_dtype=jnp.bfloat16, row_tile=None, h_tile=None):
    N, C, H, W = x_nchw.shape
    planes = params["w1"].shape[0]
    cexp = params["w3"].shape[0]
    cin_p, cpl_p, cexp_p = _pad128(C), _pad128(planes), _pad128(cexp)

    Ho = (H - 1) // stride + 1
    Wo = (W - 1) // stride + 1

    # NCHW -> NHWC (+ zero-pad channels to 128-lane multiples) -- layout glue.
    x_nhwc = jnp.transpose(x_nchw, (0, 2, 3, 1)).astype(jnp.float32)
    x_nhwc_p = jnp.pad(x_nhwc, ((0, 0), (0, 0), (0, 0), (0, cin_p - C)))
    x2d = x_nhwc_p.reshape(N * H * W, cin_p).astype(act_dtype)

    w1 = _w1x1_to_mat(params["w1"], cin_p, cpl_p, act_dtype)
    b1 = _vec_row(params["b1"], cpl_p)
    w2 = _w3x3_to_mat(params["w2"], cpl_p, cpl_p, act_dtype)
    b2 = _vec_row(params["b2"], cpl_p)
    w3 = _w1x1_to_mat(params["w3"], cpl_p, cexp_p, act_dtype)
    b3 = _vec_row(params["b3"], cexp_p)

    # conv1: 1x1 + IN + LeakyReLU
    out1 = conv1x1_in_lrelu(x2d, w1, b1, N, H * W,
                            row_tile=row_tile, out_dtype=act_dtype)

    # conv2: reflect-pad(1) + 3x3(stride) + IN + LeakyReLU.
    # Build overlapping halo tiles (only 2 duplicated rows per tile) in JAX,
    # do the 9 shifted matmuls inside the kernel (no im2col in HBM).
    o1 = out1.reshape(N, H, W, cpl_p)
    o1p = jnp.pad(o1, ((0, 0), (1, 1), (1, 1), (0, 0)), mode="reflect")
    tho = _pick_h_tile(Ho, Wo, h_tile)
    t_h = Ho // tho
    win_rows = (tho - 1) * stride + 3
    halo = jnp.stack(
        [o1p[:, t * tho * stride: t * tho * stride + win_rows]
         for t in range(t_h)], axis=1)                      # (N, T_h, win, W+2, Cp)
    out2 = conv3x3_in_lrelu(halo, w2, b2, N, t_h, tho, Wo, stride,
                            count=Ho * Wo, out_dtype=act_dtype)
    out2_2d = out2.reshape(N * Ho * Wo, cpl_p)

    # identity / downsample branch
    if stride != 1 or first:
        wd = _w1x1_to_mat(params["wd"], cin_p, cexp_p, act_dtype)
        bd = _vec_row(params["bd"], cexp_p)
        gam = _vec_row(params["bn_gamma"], cexp_p)
        bet = _vec_row(params["bn_beta"], cexp_p)
        xd2d = x_nhwc_p[:, ::stride, ::stride, :].reshape(
            N * Ho * Wo, cin_p).astype(act_dtype)
        identity = conv1x1_bn_lrelu(xd2d, wd, bd, gam, bet,
                                    row_tile=row_tile, out_dtype=act_dtype)
    else:
        assert C == cexp, "stride==1 and first==False requires inplanes == planes*expansion"
        identity = x2d

    # conv3: 1x1 + IN + LeakyReLU, with the residual add + ReLU fused in.
    out3 = conv1x1_in_lrelu(out2_2d, w3, b3, N, Ho * Wo, identity=identity,
                            row_tile=row_tile, out_dtype=act_dtype)

    out = out3.reshape(N, Ho, Wo, cexp_p)[..., :cexp]
    return jnp.transpose(out, (0, 3, 1, 2)).astype(jnp.float32)


# ---------------------------------------------------------------------------
# Pure-JAX reference (lax conv) for checking the Pallas path
# ---------------------------------------------------------------------------
def _ref_conv(x, w, b, stride, pad):
    if pad:
        x = jnp.pad(x, ((0, 0), (0, 0), (pad, pad), (pad, pad)), mode="reflect")
    y = jax.lax.conv_general_dilated(x, w, (stride, stride), "VALID",
                                     dimension_numbers=("NCHW", "OIHW", "NCHW"))
    return y + b[None, :, None, None]


def _ref_in(y):
    m = y.mean(axis=(2, 3), keepdims=True)
    v = ((y - m) ** 2).mean(axis=(2, 3), keepdims=True)
    return (y - m) / jnp.sqrt(v + EPS)


def _ref_bn(y, g, be):
    m = y.mean(axis=(0, 2, 3), keepdims=True)
    v = ((y - m) ** 2).mean(axis=(0, 2, 3), keepdims=True)
    yn = (y - m) / jnp.sqrt(v + EPS)
    return yn * g[None, :, None, None] + be[None, :, None, None]


def bottleneck_in_reference(x, p, stride=1, first=True):
    lr = lambda t: jnp.where(t >= 0, t, LRELU_SLOPE * t)
    o = lr(_ref_in(_ref_conv(x, p["w1"], p["b1"], 1, 0)))
    o = lr(_ref_in(_ref_conv(o, p["w2"], p["b2"], stride, 1)))
    o = lr(_ref_in(_ref_conv(o, p["w3"], p["b3"], 1, 0)))
    if stride != 1 or first:
        ident = lr(_ref_bn(_ref_conv(x, p["wd"], p["bd"], stride, 0),
                           p["bn_gamma"], p["bn_beta"]))
    else:
        ident = x
    return jnp.maximum(o + ident, 0.0)


if __name__ == "__main__":
    N, inplanes, H, W = 2, 4, 16, 16
    planes, stride, first = 4, 1, True

    key = jax.random.PRNGKey(0)
    kx, kp = jax.random.split(key)
    x = jax.random.normal(kx, (N, inplanes, H, W), jnp.float32)
    params = init_params(kp, inplanes, planes)

    ref = bottleneck_in_reference(x, params, stride=stride, first=first)

    # float32 activations: tight check against the lax-conv reference.
    # row_tile=64 / h_tile=4 exercise the multi-tile stats accumulation path.
    fwd32 = jax.jit(functools.partial(bottleneck_in_forward, stride=stride,
                                      first=first, act_dtype=jnp.float32,
                                      row_tile=64, h_tile=4))
    out32 = jax.block_until_ready(fwd32(x, params))
    assert out32.shape == (N, planes * 4, H, W), out32.shape
    err32 = float(jnp.abs(out32 - ref).max())
    assert err32 < 1e-3, err32

    # bfloat16 activations (production config per perf guidance): loose check.
    fwd16 = jax.jit(functools.partial(bottleneck_in_forward, stride=stride,
                                      first=first, act_dtype=jnp.bfloat16,
                                      row_tile=64, h_tile=4))
    out16 = jax.block_until_ready(fwd16(x, params))
    assert out16.shape == (N, planes * 4, H, W), out16.shape
    diff16 = jnp.abs(out16 - ref)
    assert bool(jnp.all(jnp.isfinite(out16)))
    assert float(diff16.max()) < 0.5, float(diff16.max())
    assert float(diff16.mean()) < 0.05, float(diff16.mean())

    print("KERNEL_OK")
</pallas_src>

<mosaic_0001>
module attributes {stable_mosaic.version = 11 : i64} {
  func.func @kernel(%arg0: i32, %arg1: i32, %arg2: i32, %arg3: memref<64x128xf32, #tpu.memory_space<vmem>>, %arg4: memref<128x128xf32, #tpu.memory_space<vmem>>, %arg5: memref<1x128xf32, #tpu.memory_space<vmem>>, %arg6: memref<64x128xf32, #tpu.memory_space<vmem>>, %arg7: memref<8x128xf32, #tpu.memory_space<vmem>>) attributes {dimension_semantics = [#tpu.dimension_semantics<parallel>, #tpu.dimension_semantics<arbitrary>, #tpu.dimension_semantics<arbitrary>], iteration_bounds = array<i64: 2, 2, 4>, scalar_prefetch = 0 : i64, scratch_operands = 1 : i64, tpu.core_type = #tpu.core_type<tc>, window_params = [{transform_indices = @transform_0, window_bounds = array<i64: 64, 128>}, {pipeline_mode = #tpu.pipeline_mode<synchronous>, transform_indices = @transform_1, window_bounds = array<i64: 128, 128>}, {pipeline_mode = #tpu.pipeline_mode<synchronous>, transform_indices = @transform_2, window_bounds = array<i64: 1, 128>}, {transform_indices = @transform_3, window_bounds = array<i64: 64, 128>}]} {
    %c0 = arith.constant 0 : index
    %c0_0 = arith.constant 0 : index
    %0 = vector.load %arg3[%c0, %c0_0] : memref<64x128xf32, #tpu.memory_space<vmem>>, vector<64x128xf32>
    %c0_1 = arith.constant 0 : index
    %c0_2 = arith.constant 0 : index
    %1 = vector.load %arg4[%c0_1, %c0_2] : memref<128x128xf32, #tpu.memory_space<vmem>>, vector<128x128xf32>
    %cst = arith.constant dense<0.000000e+00> : vector<64x128xf32>
    %2 = tpu.matmul %0, %1, %cst {dimension_numbers = #tpu.dot_dimension_numbers<[1], [0], [0], [1], [0, 0, 1, 1], [], []>} : vector<64x128xf32>, vector<128x128xf32>, vector<64x128xf32> -> vector<64x128xf32>
    %c0_3 = arith.constant 0 : index
    %c0_4 = arith.constant 0 : index
    %3 = vector.load %arg5[%c0_3, %c0_4] : memref<1x128xf32, #tpu.memory_space<vmem>>, vector<1x128xf32>
    %4 = vector.broadcast %3 : vector<1x128xf32> to vector<64x128xf32>
    %5 = arith.addf %2, %4 : vector<64x128xf32>
    %c0_i32 = arith.constant 0 : i32
    %6 = arith.cmpi eq, %arg1, %c0_i32 : i32
    %c0_i32_5 = arith.constant 0 : i32
    %7 = arith.cmpi eq, %arg2, %c0_i32_5 : i32
    %8 = arith.andi %6, %7 : i1
    %9 = arith.extui %8 : i1 to i32
    %c0_i32_6 = arith.constant 0 : i32
    %10 = arith.cmpi ne, %9, %c0_i32_6 : i32
    scf.if %10 {
      %cst_10 = arith.constant 0.000000e+00 : f32
      %17 = vector.broadcast %cst_10 : f32 to vector<8x128xf32>
      %c0_11 = arith.constant 0 : index
      %c0_12 = arith.constant 0 : index
      %18 = vector.load %arg7[%c0_11, %c0_12] : memref<8x128xf32, #tpu.memory_space<vmem>>, vector<8x128xf32>
      tpu.vector_store %arg7[%c0_11, %c0_12], %17 {strides = array<i32>} : memref<8x128xf32, #tpu.memory_space<vmem>>, vector<8x128xf32>,
    } else {
    }
    %c0_i32_7 = arith.constant 0 : i32
    %11 = arith.cmpi eq, %arg1, %c0_i32_7 : i32
    %12 = arith.extui %11 : i1 to i32
    %c0_i32_8 = arith.constant 0 : i32
    %13 = arith.cmpi ne, %12, %c0_i32_8 : i32
    scf.if %13 {
      %c0_10 = arith.constant 0 : index
      %c0_11 = arith.constant 0 : index
      %17 = vector.load %arg7[%c0_10, %c0_11] : memref<8x128xf32, #tpu.memory_space<vmem>>, vector<1x128xf32>
      %cst_12 = arith.constant dense<0.000000e+00> : vector<128xf32>
      %18 = vector.multi_reduction <add>, %5, %cst_12 [0] : vector<64x128xf32> to vector<128xf32>
      %19 = vector.shape_cast %18 : vector<128xf32> to vector<1x128xf32>
      %20 = arith.addf %17, %19 : vector<1x128xf32>
      %c0_13 = arith.constant 0 : index
      %c0_14 = arith.constant 0 : index
      %21 = vector.load %arg7[%c0_13, %c0_14] : memref<8x128xf32, #tpu.memory_space<vmem>>, vector<1x128xf32>
      tpu.vector_store %arg7[%c0_13, %c0_14], %20 {strides = array<i32>} : memref<8x128xf32, #tpu.memory_space<vmem>>, vector<1x128xf32>,
      %c1 = arith.constant 1 : index
      %c0_15 = arith.constant 0 : index
      %22 = vector.load %arg7[%c1, %c0_15] : memref<8x128xf32, #tpu.memory_space<vmem>>, vector<1x128xf32>
      %23 = arith.mulf %5, %5 : vector<64x128xf32>
      %cst_16 = arith.constant dense<0.000000e+00> : vector<128xf32>
      %24 = vector.multi_reduction <add>, %23, %cst_16 [0] : vector<64x128xf32> to vector<128xf32>
      %25 = vector.shape_cast %24 : vector<128xf32> to vector<1x128xf32>
      %26 = arith.addf %22, %25 : vector<1x128xf32>
      %c1_17 = arith.constant 1 : index
      %c0_18 = arith.constant 0 : index
      %27 = vector.load %arg7[%c1_17, %c0_18] : memref<8x128xf32, #tpu.memory_space<vmem>>, vector<1x128xf32>
      tpu.vector_store %arg7[%c1_17, %c0_18], %26 {strides = array<i32>} : memref<8x128xf32, #tpu.memory_space<vmem>>, vector<1x128xf32>,
    } else {
    }
    %c1_i32 = arith.constant 1 : i32
    %14 = arith.cmpi eq, %arg1, %c1_i32 : i32
    %15 = arith.extui %14 : i1 to i32
    %c0_i32_9 = arith.constant 0 : i32
    %16 = arith.cmpi ne, %15, %c0_i32_9 : i32
    scf.if %16 {
      %c0_10 = arith.constant 0 : index
      %c0_11 = arith.constant 0 : index
      %17 = vector.load %arg7[%c0_10, %c0_11] : memref<8x128xf32, #tpu.memory_space<vmem>>, vector<1x128xf32>
      %cst_12 = arith.constant 3.906250e-03 : f32
      %18 = vector.broadcast %cst_12 : f32 to vector<1x128xf32>
      %19 = arith.mulf %17, %18 : vector<1x128xf32>
      %c1 = arith.constant 1 : index
      %c0_13 = arith.constant 0 : index
      %20 = vector.load %arg7[%c1, %c0_13] : memref<8x128xf32, #tpu.memory_space<vmem>>, vector<1x128xf32>
      %cst_14 = arith.constant 3.906250e-03 : f32
      %21 = vector.broadcast %cst_14 : f32 to vector<1x128xf32>
      %22 = arith.mulf %20, %21 : vector<1x128xf32>
      %23 = arith.mulf %19, %19 : vector<1x128xf32>
      %24 = arith.subf %22, %23 : vector<1x128xf32>
      %cst_15 = arith.constant 0.000000e+00 : f32
      %25 = vector.broadcast %cst_15 : f32 to vector<1x128xf32>
      %26 = arith.maximumf %24, %25 : vector<1x128xf32>
      %27 = vector.broadcast %19 : vector<1x128xf32> to vector<64x128xf32>
      %28 = arith.subf %5, %27 : vector<64x128xf32>
      %cst_16 = arith.constant 9.99999974E-6 : f32
      %29 = vector.broadcast %cst_16 : f32 to vector<1x128xf32>
      %30 = arith.addf %26, %29 : vector<1x128xf32>
      %31 = math.rsqrt %30 : vector<1x128xf32>
      %32 = vector.broadcast %31 : vector<1x128xf32> to vector<64x128xf32>
      %33 = arith.mulf %28, %32 : vector<64x128xf32>
      %cst_17 = arith.constant 0.000000e+00 : f32
      %34 = vector.broadcast %cst_17 : f32 to vector<64x128xf32>
      %35 = arith.cmpf oge, %33, %34 : vector<64x128xf32>
      %cst_18 = arith.constant 2.000000e-01 : f32
      %36 = vector.broadcast %cst_18 : f32 to vector<64x128xf32>
      %37 = arith.mulf %36, %33 : vector<64x128xf32>
      %38 = arith.select %35, %33, %37 : vector<64x128xi1>, vector<64x128xf32>
      %c0_19 = arith.constant 0 : index
      %c0_20 = arith.constant 0 : index
      %39 = vector.load %arg6[%c0_19, %c0_20] : memref<64x128xf32, #tpu.memory_space<vmem>>, vector<64x128xf32>
      tpu.vector_store %arg6[%c0_19, %c0_20], %38 {strides = array<i32>} : memref<64x128xf32, #tpu.memory_space<vmem>>, vector<64x128xf32>,
    } else {
    }
    return
  }
  func.func @transform_0(%arg0: i32, %arg1: i32, %arg2: i32) -> (i32, i32) {
    %c4_i32 = arith.constant 4 : i32
    %0 = arith.muli %arg0, %c4_i32 : i32
    %1 = arith.addi %0, %arg2 : i32
    %c0_i32 = arith.constant 0 : i32
    %c0_i32_0 = arith.constant 0 : i32
    return %1, %c0_i32 : i32, i32
  }
  func.func @transform_1(%arg0: i32, %arg1: i32, %arg2: i32) -> (i32, i32) {
    %c0_i32 = arith.constant 0 : i32
    %c0_i32_0 = arith.constant 0 : i32
    %c0_i32_1 = arith.constant 0 : i32
    return %c0_i32, %c0_i32_0 : i32, i32
  }
  func.func @transform_2(%arg0: i32, %arg1: i32, %arg2: i32) -> (i32, i32) {
    %c0_i32 = arith.constant 0 : i32
    %c0_i32_0 = arith.constant 0 : i32
    %c0_i32_1 = arith.constant 0 : i32
    return %c0_i32, %c0_i32_0 : i32, i32
  }
  func.func @transform_3(%arg0: i32, %arg1: i32, %arg2: i32) -> (i32, i32) {
    %c4_i32 = arith.constant 4 : i32
    %0 = arith.muli %arg0, %c4_i32 : i32
    %1 = arith.muli %arg2, %arg1 : i32
    %2 = arith.addi %0, %1 : i32
    %c0_i32 = arith.constant 0 : i32
    %c0_i32_0 = arith.constant 0 : i32
    return %2, %c0_i32 : i32, i32
  }
}

module attributes {stable_mosaic.version = 11 : i64} {
  func.func @kernel(%arg0: i32, %arg1: i32, %arg2: i32, %arg3: memref<1x1x6x18x128xf32, #tpu.memory_space<vmem>>, %arg4: memref<9x128x128xf32, #tpu.memory_space<vmem>>, %arg5: memref<1x128xf32, #tpu.memory_space<vmem>>, %arg6: memref<1x4x16x128xf32, #tpu.memory_space<vmem>>, %arg7: memref<8x128xf32, #tpu.memory_space<vmem>>) attributes {dimension_semantics = [#tpu.dimension_semantics<parallel>, #tpu.dimension_semantics<arbitrary>, #tpu.dimension_semantics<arbitrary>], iteration_bounds = array<i64: 2, 2, 4>, scalar_prefetch = 0 : i64, scratch_operands = 1 : i64, tpu.core_type = #tpu.core_type<tc>, window_params = [{transform_indices = @transform_0, window_bounds = array<i64: 1, 1, 6, 18, 128>}, {pipeline_mode = #tpu.pipeline_mode<synchronous>, transform_indices = @transform_1, window_bounds = array<i64: 9, 128, 128>}, {pipeline_mode = #tpu.pipeline_mode<synchronous>, transform_indices = @transform_2, window_bounds = array<i64: 1, 128>}, {transform_indices = @transform_3, window_bounds = array<i64: 1, 4, 16, 128>}]} {
    %c0 = arith.constant 0 : index
    %c0_0 = arith.constant 0 : index
    %c0_1 = arith.constant 0 : index
    %c0_2 = arith.constant 0 : index
    %c0_3 = arith.constant 0 : index
    %0 = vector.load %arg3[%c0, %c0_0, %c0_1, %c0_2, %c0_3] : memref<1x1x6x18x128xf32, #tpu.memory_space<vmem>>, vector<1x1x6x18x128xf32>
    %1 = vector.shape_cast %0 : vector<1x1x6x18x128xf32> to vector<6x18x128xf32>
    %cst = arith.constant 0.000000e+00 : f32
    %2 = vector.broadcast %cst : f32 to vector<64x128xf32>
    %3 = vector.extract_strided_slice %1 {offsets = [0, 0, 0], sizes = [4, 16, 128], strides = [1, 1, 1]} : vector<6x18x128xf32> to vector<4x16x128xf32>
    %4 = vector.shape_cast %3 : vector<4x16x128xf32> to vector<64x128xf32>
    %c0_4 = arith.constant 0 : index
    %c0_5 = arith.constant 0 : index
    %c0_6 = arith.constant 0 : index
    %5 = vector.load %arg4[%c0_4, %c0_5, %c0_6] : memref<9x128x128xf32, #tpu.memory_space<vmem>>, vector<1x128x128xf32>
    %6 = vector.shape_cast %5 : vector<1x128x128xf32> to vector<128x128xf32>
    %cst_7 = arith.constant dense<0.000000e+00> : vector<64x128xf32>
    %7 = tpu.matmul %4, %6, %cst_7 {dimension_numbers = #tpu.dot_dimension_numbers<[1], [0], [0], [1], [0, 0, 1, 1], [], []>} : vector<64x128xf32>, vector<128x128xf32>, vector<64x128xf32> -> vector<64x128xf32>
    %8 = arith.addf %2, %7 : vector<64x128xf32>
    %9 = vector.extract_strided_slice %1 {offsets = [0, 1, 0], sizes = [4, 16, 128], strides = [1, 1, 1]} : vector<6x18x128xf32> to vector<4x16x128xf32>
    %10 = vector.shape_cast %9 : vector<4x16x128xf32> to vector<64x128xf32>
    %c1 = arith.constant 1 : index
    %c0_8 = arith.constant 0 : index
    %c0_9 = arith.constant 0 : index
    %11 = vector.load %arg4[%c1, %c0_8, %c0_9] : memref<9x128x128xf32, #tpu.memory_space<vmem>>, vector<1x128x128xf32>
    %12 = vector.shape_cast %11 : vector<1x128x128xf32> to vector<128x128xf32>
    %cst_10 = arith.constant dense<0.000000e+00> : vector<64x128xf32>
    %13 = tpu.matmul %10, %12, %cst_10 {dimension_numbers = #tpu.dot_dimension_numbers<[1], [0], [0], [1], [0, 0, 1, 1], [], []>} : vector<64x128xf32>, vector<128x128xf32>, vector<64x128xf32> -> vector<64x128xf32>
    %14 = arith.addf %8, %13 : vector<64x128xf32>
    %15 = vector.extract_strided_slice %1 {offsets = [0, 2, 0], sizes = [4, 16, 128], strides = [1, 1, 1]} : vector<6x18x128xf32> to vector<4x16x128xf32>
    %16 = vector.shape_cast %15 : vector<4x16x128xf32> to vector<64x128xf32>
    %c2 = arith.constant 2 : index
    %c0_11 = arith.constant 0 : index
    %c0_12 = arith.constant 0 : index
    %17 = vector.load %arg4[%c2, %c0_11, %c0_12] : memref<9x128x128xf32, #tpu.memory_space<vmem>>, vector<1x128x128xf32>
    %18 = vector.shape_cast %17 : vector<1x128x128xf32> to vector<128x128xf32>
    %cst_13 = arith.constant dense<0.000000e+00> : vector<64x128xf32>
    %19 = tpu.matmul %16, %18, %cst_13 {dimension_numbers = #tpu.dot_dimension_numbers<[1], [0], [0], [1], [0, 0, 1, 1], [], []>} : vector<64x128xf32>, vector<128x128xf32>, vector<64x128xf32> -> vector<64x128xf32>
    %20 = arith.addf %14, %19 : vector<64x128xf32>
    %21 = vector.extract_strided_slice %1 {offsets = [1, 0, 0], sizes = [4, 16, 128], strides = [1, 1, 1]} : vector<6x18x128xf32> to vector<4x16x128xf32>
    %22 = vector.shape_cast %21 : vector<4x16x128xf32> to vector<64x128xf32>
    %c3 = arith.constant 3 : index
    %c0_14 = arith.constant 0 : index
    %c0_15 = arith.constant 0 : index
    %23 = vector.load %arg4[%c3, %c0_14, %c0_15] : memref<9x128x128xf32, #tpu.memory_space<vmem>>, vector<1x128x128xf32>
    %24 = vector.shape_cast %23 : vector<1x128x128xf32> to vector<128x128xf32>
    %cst_16 = arith.constant dense<0.000000e+00> : vector<64x128xf32>
    %25 = tpu.matmul %22, %24, %cst_16 {dimension_numbers = #tpu.dot_dimension_numbers<[1], [0], [0], [1], [0, 0, 1, 1], [], []>} : vector<64x128xf32>, vector<128x128xf32>, vector<64x128xf32> -> vector<64x128xf32>
    %26 = arith.addf %20, %25 : vector<64x128xf32>
    %27 = vector.extract_strided_slice %1 {offsets = [1, 1, 0], sizes = [4, 16, 128], strides = [1, 1, 1]} : vector<6x18x128xf32> to vector<4x16x128xf32>
    %28 = vector.shape_cast %27 : vector<4x16x128xf32> to vector<64x128xf32>
    %c4 = arith.constant 4 : index
    %c0_17 = arith.constant 0 : index
    %c0_18 = arith.constant 0 : index
    %29 = vector.load %arg4[%c4, %c0_17, %c0_18] : memref<9x128x128xf32, #tpu.memory_space<vmem>>, vector<1x128x128xf32>
    %30 = vector.shape_cast %29 : vector<1x128x128xf32> to vector<128x128xf32>
    %cst_19 = arith.constant dense<0.000000e+00> : vector<64x128xf32>
    %31 = tpu.matmul %28, %30, %cst_19 {dimension_numbers = #tpu.dot_dimension_numbers<[1], [0], [0], [1], [0, 0, 1, 1], [], []>} : vector<64x128xf32>, vector<128x128xf32>, vector<64x128xf32> -> vector<64x128xf32>
    %32 = arith.addf %26, %31 : vector<64x128xf32>
    %33 = vector.extract_strided_slice %1 {offsets = [1, 2, 0], sizes = [4, 16, 128], strides = [1, 1, 1]} : vector<6x18x128xf32> to vector<4x16x128xf32>
    %34 = vector.shape_cast %33 : vector<4x16x128xf32> to vector<64x128xf32>
    %c5 = arith.constant 5 : index
    %c0_20 = arith.constant 0 : index
    %c0_21 = arith.constant 0 : index
    %35 = vector.load %arg4[%c5, %c0_20, %c0_21] : memref<9x128x128xf32, #tpu.memory_space<vmem>>, vector<1x128x128xf32>
    %36 = vector.shape_cast %35 : vector<1x128x128xf32> to vector<128x128xf32>
    %cst_22 = arith.constant dense<0.000000e+00> : vector<64x128xf32>
    %37 = tpu.matmul %34, %36, %cst_22 {dimension_numbers = #tpu.dot_dimension_numbers<[1], [0], [0], [1], [0, 0, 1, 1], [], []>} : vector<64x128xf32>, vector<128x128xf32>, vector<64x128xf32> -> vector<64x128xf32>
    %38 = arith.addf %32, %37 : vector<64x128xf32>
    %39 = vector.extract_strided_slice %1 {offsets = [2, 0, 0], sizes = [4, 16, 128], strides = [1, 1, 1]} : vector<6x18x128xf32> to vector<4x16x128xf32>
    %40 = vector.shape_cast %39 : vector<4x16x128xf32> to vector<64x128xf32>
    %c6 = arith.constant 6 : index
    %c0_23 = arith.constant 0 : index
    %c0_24 = arith.constant 0 : index
    %41 = vector.load %arg4[%c6, %c0_23, %c0_24] : memref<9x128x128xf32, #tpu.memory_space<vmem>>, vector<1x128x128xf32>
    %42 = vector.shape_cast %41 : vector<1x128x128xf32> to vector<128x128xf32>
    %cst_25 = arith.constant dense<0.000000e+00> : vector<64x128xf32>
    %43 = tpu.matmul %40, %42, %cst_25 {dimension_numbers = #tpu.dot_dimension_numbers<[1], [0], [0], [1], [0, 0, 1, 1], [], []>} : vector<64x128xf32>, vector<128x128xf32>, vector<64x128xf32> -> vector<64x128xf32>
    %44 = arith.addf %38, %43 : vector<64x128xf32>
    %45 = vector.extract_strided_slice %1 {offsets = [2, 1, 0], sizes = [4, 16, 128], strides = [1, 1, 1]} : vector<6x18x128xf32> to vector<4x16x128xf32>
    %46 = vector.shape_cast %45 : vector<4x16x128xf32> to vector<64x128xf32>
    %c7 = arith.constant 7 : index
    %c0_26 = arith.constant 0 : index
    %c0_27 = arith.constant 0 : index
    %47 = vector.load %arg4[%c7, %c0_26, %c0_27] : memref<9x128x128xf32, #tpu.memory_space<vmem>>, vector<1x128x128xf32>
    %48 = vector.shape_cast %47 : vector<1x128x128xf32> to vector<128x128xf32>
    %cst_28 = arith.constant dense<0.000000e+00> : vector<64x128xf32>
    %49 = tpu.matmul %46, %48, %cst_28 {dimension_numbers = #tpu.dot_dimension_numbers<[1], [0], [0], [1], [0, 0, 1, 1], [], []>} : vector<64x128xf32>, vector<128x128xf32>, vector<64x128xf32> -> vector<64x128xf32>
    %50 = arith.addf %44, %49 : vector<64x128xf32>
    %51 = vector.extract_strided_slice %1 {offsets = [2, 2, 0], sizes = [4, 16, 128], strides = [1, 1, 1]} : vector<6x18x128xf32> to vector<4x16x128xf32>
    %52 = vector.shape_cast %51 : vector<4x16x128xf32> to vector<64x128xf32>
    %c8 = arith.constant 8 : index
    %c0_29 = arith.constant 0 : index
    %c0_30 = arith.constant 0 : index
    %53 = vector.load %arg4[%c8, %c0_29, %c0_30] : memref<9x128x128xf32, #tpu.memory_space<vmem>>, vector<1x128x128xf32>
    %54 = vector.shape_cast %53 : vector<1x128x128xf32> to vector<128x128xf32>
    %cst_31 = arith.constant dense<0.000000e+00> : vector<64x128xf32>
    %55 = tpu.matmul %52, %54, %cst_31 {dimension_numbers = #tpu.dot_dimension_numbers<[1], [0], [0], [1], [0, 0, 1, 1], [], []>} : vector<64x128xf32>, vector<128x128xf32>, vector<64x128xf32> -> vector<64x128xf32>
    %56 = arith.addf %50, %55 : vector<64x128xf32>
    %c0_32 = arith.constant 0 : index
    %c0_33 = arith.constant 0 : index
    %57 = vector.load %arg5[%c0_32, %c0_33] : memref<1x128xf32, #tpu.memory_space<vmem>>, vector<1x128xf32>
    %58 = vector.broadcast %57 : vector<1x128xf32> to vector<64x128xf32>
    %59 = arith.addf %56, %58 : vector<64x128xf32>
    %c0_i32 = arith.constant 0 : i32
    %60 = arith.cmpi eq, %arg1, %c0_i32 : i32
    %c0_i32_34 = arith.constant 0 : i32
    %61 = arith.cmpi eq, %arg2, %c0_i32_34 : i32
    %62 = arith.andi %60, %61 : i1
    %63 = arith.extui %62 : i1 to i32
    %c0_i32_35 = arith.constant 0 : i32
    %64 = arith.cmpi ne, %63, %c0_i32_35 : i32
    scf.if %64 {
      %cst_39 = arith.constant 0.000000e+00 : f32
      %71 = vector.broadcast %cst_39 : f32 to vector<8x128xf32>
      %c0_40 = arith.constant 0 : index
      %c0_41 = arith.constant 0 : index
      %72 = vector.load %arg7[%c0_40, %c0_41] : memref<8x128xf32, #tpu.memory_space<vmem>>, vector<8x128xf32>
      tpu.vector_store %arg7[%c0_40, %c0_41], %71 {strides = array<i32>} : memref<8x128xf32, #tpu.memory_space<vmem>>, vector<8x128xf32>,
    } else {
    }
    %c0_i32_36 = arith.constant 0 : i32
    %65 = arith.cmpi eq, %arg1, %c0_i32_36 : i32
    %66 = arith.extui %65 : i1 to i32
    %c0_i32_37 = arith.constant 0 : i32
    %67 = arith.cmpi ne, %66, %c0_i32_37 : i32
    scf.if %67 {
      %c0_39 = arith.constant 0 : index
      %c0_40 = arith.constant 0 : index
      %71 = vector.load %arg7[%c0_39, %c0_40] : memref<8x128xf32, #tpu.memory_space<vmem>>, vector<1x128xf32>
      %cst_41 = arith.constant dense<0.000000e+00> : vector<128xf32>
      %72 = vector.multi_reduction <add>, %59, %cst_41 [0] : vector<64x128xf32> to vector<128xf32>
      %73 = vector.shape_cast %72 : vector<128xf32> to vector<1x128xf32>
      %74 = arith.addf %71, %73 : vector<1x128xf32>
      %c0_42 = arith.constant 0 : index
      %c0_43 = arith.constant 0 : index
      %75 = vector.load %arg7[%c0_42, %c0_43] : memref<8x128xf32, #tpu.memory_space<vmem>>, vector<1x128xf32>
      tpu.vector_store %arg7[%c0_42, %c0_43], %74 {strides = array<i32>} : memref<8x128xf32, #tpu.memory_space<vmem>>, vector<1x128xf32>,
      %c1_44 = arith.constant 1 : index
      %c0_45 = arith.constant 0 : index
      %76 = vector.load %arg7[%c1_44, %c0_45] : memref<8x128xf32, #tpu.memory_space<vmem>>, vector<1x128xf32>
      %77 = arith.mulf %59, %59 : vector<64x128xf32>
      %cst_46 = arith.constant dense<0.000000e+00> : vector<128xf32>
      %78 = vector.multi_reduction <add>, %77, %cst_46 [0] : vector<64x128xf32> to vector<128xf32>
      %79 = vector.shape_cast %78 : vector<128xf32> to vector<1x128xf32>
      %80 = arith.addf %76, %79 : vector<1x128xf32>
      %c1_47 = arith.constant 1 : index
      %c0_48 = arith.constant 0 : index
      %81 = vector.load %arg7[%c1_47, %c0_48] : memref<8x128xf32, #tpu.memory_space<vmem>>, vector<1x128xf32>
      tpu.vector_store %arg7[%c1_47, %c0_48], %80 {strides = array<i32>} : memref<8x128xf32, #tpu.memory_space<vmem>>, vector<1x128xf32>,
    } else {
    }
    %c1_i32 = arith.constant 1 : i32
    %68 = arith.cmpi eq, %arg1, %c1_i32 : i32
    %69 = arith.extui %68 : i1 to i32
    %c0_i32_38 = arith.constant 0 : i32
    %70 = arith.cmpi ne, %69, %c0_i32_38 : i32
    scf.if %70 {
      %c0_39 = arith.constant 0 : index
      %c0_40 = arith.constant 0 : index
      %71 = vector.load %arg7[%c0_39, %c0_40] : memref<8x128xf32, #tpu.memory_space<vmem>>, vector<1x128xf32>
      %cst_41 = arith.constant 3.906250e-03 : f32
      %72 = vector.broadcast %cst_41 : f32 to vector<1x128xf32>
      %73 = arith.mulf %71, %72 : vector<1x128xf32>
      %c1_42 = arith.constant 1 : index
      %c0_43 = arith.constant 0 : index
      %74 = vector.load %arg7[%c1_42, %c0_43] : memref<8x128xf32, #tpu.memory_space<vmem>>, vector<1x128xf32>
      %cst_44 = arith.constant 3.906250e-03 : f32
      %75 = vector.broadcast %cst_44 : f32 to vector<1x128xf32>
      %76 = arith.mulf %74, %75 : vector<1x128xf32>
      %77 = arith.mulf %73, %73 : vector<1x128xf32>
      %78 = arith.subf %76, %77 : vector<1x128xf32>
      %cst_45 = arith.constant 0.000000e+00 : f32
      %79 = vector.broadcast %cst_45 : f32 to vector<1x128xf32>
      %80 = arith.maximumf %78, %79 : vector<1x128xf32>
      %81 = vector.broadcast %73 : vector<1x128xf32> to vector<64x128xf32>
      %82 = arith.subf %59, %81 : vector<64x128xf32>
      %cst_46 = arith.constant 9.99999974E-6 : f32
      %83 = vector.broadcast %cst_46 : f32 to vector<1x128xf32>
      %84 = arith.addf %80, %83 : vector<1x128xf32>
      %85 = math.rsqrt %84 : vector<1x128xf32>
      %86 = vector.broadcast %85 : vector<1x128xf32> to vector<64x128xf32>
      %87 = arith.mulf %82, %86 : vector<64x128xf32>
      %cst_47 = arith.constant 0.000000e+00 : f32
      %88 = vector.broadcast %cst_47 : f32 to vector<64x128xf32>
      %89 = arith.cmpf oge, %87, %88 : vector<64x128xf32>
      %cst_48 = arith.constant 2.000000e-01 : f32
      %90 = vector.broadcast %cst_48 : f32 to vector<64x128xf32>
      %91 = arith.mulf %90, %87 : vector<64x128xf32>
      %92 = arith.select %89, %87, %91 : vector<64x128xi1>, vector<64x128xf32>
      %93 = vector.shape_cast %92 : vector<64x128xf32> to vector<4x16x128xf32>
      %c0_49 = arith.constant 0 : index
      %c0_50 = arith.constant 0 : index
      %c0_51 = arith.constant 0 : index
      %c0_52 = arith.constant 0 : index
      %94 = vector.load %arg6[%c0_49, %c0_50, %c0_51, %c0_52] : memref<1x4x16x128xf32, #tpu.memory_space<vmem>>, vector<1x4x16x128xf32>
      %95 = vector.shape_cast %94 : vector<1x4x16x128xf32> to vector<4x16x128xf32>
      %96 = vector.shape_cast %93 : vector<4x16x128xf32> to vector<1x4x16x128xf32>
      tpu.vector_store %arg6[%c0_49, %c0_50, %c0_51, %c0_52], %96 {strides = array<i32>} : memref<1x4x16x128xf32, #tpu.memory_space<vmem>>, vector<1x4x16x128xf32>,
    } else {
    }
    return
  }
  func.func @transform_0(%arg0: i32, %arg1: i32, %arg2: i32) -> (i32, i32, i32, i32, i32) {
    %c0_i32 = arith.constant 0 : i32
    %c0_i32_0 = arith.constant 0 : i32
    %c0_i32_1 = arith.constant 0 : i32
    %c0_i32_2 = arith.constant 0 : i32
    return %arg0, %arg2, %c0_i32, %c0_i32_0, %c0_i32_1 : i32, i32, i32, i32, i32
  }
  func.func @transform_1(%arg0: i32, %arg1: i32, %arg2: i32) -> (i32, i32, i32) {
    %c0_i32 = arith.constant 0 : i32
    %c0_i32_0 = arith.constant 0 : i32
    %c0_i32_1 = arith.constant 0 : i32
    %c0_i32_2 = arith.constant 0 : i32
    return %c0_i32, %c0_i32_0, %c0_i32_1 : i32, i32, i32
  }
  func.func @transform_2(%arg0: i32, %arg1: i32, %arg2: i32) -> (i32, i32) {
    %c0_i32 = arith.constant 0 : i32
    %c0_i32_0 = arith.constant 0 : i32
    %c0_i32_1 = arith.constant 0 : i32
    return %c0_i32, %c0_i32_0 : i32, i32
  }
  func.func @transform_3(%arg0: i32, %arg1: i32, %arg2: i32) -> (i32, i32, i32, i32) {
    %0 = arith.muli %arg2, %arg1 : i32
    %c0_i32 = arith.constant 0 : i32
    %c0_i32_0 = arith.constant 0 : i32
    %c0_i32_1 = arith.constant 0 : i32
    return %arg0, %0, %c0_i32, %c0_i32_0 : i32, i32, i32, i32
  }
}

module attributes {stable_mosaic.version = 11 : i64} {
  func.func @kernel(%arg0: i32, %arg1: i32, %arg2: i32, %arg3: memref<64x128xf32, #tpu.memory_space<vmem>>, %arg4: memref<128x128xf32, #tpu.memory_space<vmem>>, %arg5: memref<1x128xf32, #tpu.memory_space<vmem>>, %arg6: memref<64x128xf32, #tpu.memory_space<vmem>>, %arg7: memref<64x128xf32, #tpu.memory_space<vmem>>, %arg8: memref<8x128xf32, #tpu.memory_space<vmem>>) attributes {dimension_semantics = [#tpu.dimension_semantics<parallel>, #tpu.dimension_semantics<arbitrary>, #tpu.dimension_semantics<arbitrary>], iteration_bounds = array<i64: 2, 2, 4>, scalar_prefetch = 0 : i64, scratch_operands = 1 : i64, tpu.core_type = #tpu.core_type<tc>, window_params = [{transform_indices = @transform_0, window_bounds = array<i64: 64, 128>}, {pipeline_mode = #tpu.pipeline_mode<synchronous>, transform_indices = @transform_1, window_bounds = array<i64: 128, 128>}, {pipeline_mode = #tpu.pipeline_mode<synchronous>, transform_indices = @transform_2, window_bounds = array<i64: 1, 128>}, {transform_indices = @transform_3, window_bounds = array<i64: 64, 128>}, {transform_indices = @transform_4, window_bounds = array<i64: 64, 128>}]} {
    %c0 = arith.constant 0 : index
    %c0_0 = arith.constant 0 : index
    %0 = vector.load %arg3[%c0, %c0_0] : memref<64x128xf32, #tpu.memory_space<vmem>>, vector<64x128xf32>
    %c0_1 = arith.constant 0 : index
    %c0_2 = arith.constant 0 : index
    %1 = vector.load %arg4[%c0_1, %c0_2] : memref<128x128xf32, #tpu.memory_space<vmem>>, vector<128x128xf32>
    %cst = arith.constant dense<0.000000e+00> : vector<64x128xf32>
    %2 = tpu.matmul %0, %1, %cst {dimension_numbers = #tpu.dot_dimension_numbers<[1], [0], [0], [1], [0, 0, 1, 1], [], []>} : vector<64x128xf32>, vector<128x128xf32>, vector<64x128xf32> -> vector<64x128xf32>
    %c0_3 = arith.constant 0 : index
    %c0_4 = arith.constant 0 : index
    %3 = vector.load %arg5[%c0_3, %c0_4] : memref<1x128xf32, #tpu.memory_space<vmem>>, vector<1x128xf32>
    %4 = vector.broadcast %3 : vector<1x128xf32> to vector<64x128xf32>
    %5 = arith.addf %2, %4 : vector<64x128xf32>
    %c0_i32 = arith.constant 0 : i32
    %6 = arith.cmpi eq, %arg1, %c0_i32 : i32
    %c0_i32_5 = arith.constant 0 : i32
    %7 = arith.cmpi eq, %arg2, %c0_i32_5 : i32
    %8 = arith.andi %6, %7 : i1
    %9 = arith.extui %8 : i1 to i32
    %c0_i32_6 = arith.constant 0 : i32
    %10 = arith.cmpi ne, %9, %c0_i32_6 : i32
    scf.if %10 {
      %cst_10 = arith.constant 0.000000e+00 : f32
      %17 = vector.broadcast %cst_10 : f32 to vector<8x128xf32>
      %c0_11 = arith.constant 0 : index
      %c0_12 = arith.constant 0 : index
      %18 = vector.load %arg8[%c0_11, %c0_12] : memref<8x128xf32, #tpu.memory_space<vmem>>, vector<8x128xf32>
      tpu.vector_store %arg8[%c0_11, %c0_12], %17 {strides = array<i32>} : memref<8x128xf32, #tpu.memory_space<vmem>>, vector<8x128xf32>,
    } else {
    }
    %c0_i32_7 = arith.constant 0 : i32
    %11 = arith.cmpi eq, %arg1, %c0_i32_7 : i32
    %12 = arith.extui %11 : i1 to i32
    %c0_i32_8 = arith.constant 0 : i32
    %13 = arith.cmpi ne, %12, %c0_i32_8 : i32
    scf.if %13 {
      %c0_10 = arith.constant 0 : index
      %c0_11 = arith.constant 0 : index
      %17 = vector.load %arg8[%c0_10, %c0_11] : memref<8x128xf32, #tpu.memory_space<vmem>>, vector<1x128xf32>
      %cst_12 = arith.constant dense<0.000000e+00> : vector<128xf32>
      %18 = vector.multi_reduction <add>, %5, %cst_12 [0] : vector<64x128xf32> to vector<128xf32>
      %19 = vector.shape_cast %18 : vector<128xf32> to vector<1x128xf32>
      %20 = arith.addf %17, %19 : vector<1x128xf32>
      %c0_13 = arith.constant 0 : index
      %c0_14 = arith.constant 0 : index
      %21 = vector.load %arg8[%c0_13, %c0_14] : memref<8x128xf32, #tpu.memory_space<vmem>>, vector<1x128xf32>
      tpu.vector_store %arg8[%c0_13, %c0_14], %20 {strides = array<i32>} : memref<8x128xf32, #tpu.memory_space<vmem>>, vector<1x128xf32>,
      %c1 = arith.constant 1 : index
      %c0_15 = arith.constant 0 : index
      %22 = vector.load %arg8[%c1, %c0_15] : memref<8x128xf32, #tpu.memory_space<vmem>>, vector<1x128xf32>
      %23 = arith.mulf %5, %5 : vector<64x128xf32>
      %cst_16 = arith.constant dense<0.000000e+00> : vector<128xf32>
      %24 = vector.multi_reduction <add>, %23, %cst_16 [0] : vector<64x128xf32> to vector<128xf32>
      %25 = vector.shape_cast %24 : vector<128xf32> to vector<1x128xf32>
      %26 = arith.addf %22, %25 : vector<1x128xf32>
      %c1_17 = arith.constant 1 : index
      %c0_18 = arith.constant 0 : index
      %27 = vector.load %arg8[%c1_17, %c0_18] : memref<8x128xf32, #tpu.memory_space<vmem>>, vector<1x128xf32>
      tpu.vector_store %arg8[%c1_17, %c0_18], %26 {strides = array<i32>} : memref<8x128xf32, #tpu.memory_space<vmem>>, vector<1x128xf32>,
    } else {
    }
    %c1_i32 = arith.constant 1 : i32
    %14 = arith.cmpi eq, %arg1, %c1_i32 : i32
    %15 = arith.extui %14 : i1 to i32
    %c0_i32_9 = arith.constant 0 : i32
    %16 = arith.cmpi ne, %15, %c0_i32_9 : i32
    scf.if %16 {
      %c0_10 = arith.constant 0 : index
      %c0_11 = arith.constant 0 : index
      %17 = vector.load %arg8[%c0_10, %c0_11] : memref<8x128xf32, #tpu.memory_space<vmem>>, vector<1x128xf32>
      %cst_12 = arith.constant 3.906250e-03 : f32
      %18 = vector.broadcast %cst_12 : f32 to vector<1x128xf32>
      %19 = arith.mulf %17, %18 : vector<1x128xf32>
      %c1 = arith.constant 1 : index
      %c0_13 = arith.constant 0 : index
      %20 = vector.load %arg8[%c1, %c0_13] : memref<8x128xf32, #tpu.memory_space<vmem>>, vector<1x128xf32>
      %cst_14 = arith.constant 3.906250e-03 : f32
      %21 = vector.broadcast %cst_14 : f32 to vector<1x128xf32>
      %22 = arith.mulf %20, %21 : vector<1x128xf32>
      %23 = arith.mulf %19, %19 : vector<1x128xf32>
      %24 = arith.subf %22, %23 : vector<1x128xf32>
      %cst_15 = arith.constant 0.000000e+00 : f32
      %25 = vector.broadcast %cst_15 : f32 to vector<1x128xf32>
      %26 = arith.maximumf %24, %25 : vector<1x128xf32>
      %27 = vector.broadcast %19 : vector<1x128xf32> to vector<64x128xf32>
      %28 = arith.subf %5, %27 : vector<64x128xf32>
      %cst_16 = arith.constant 9.99999974E-6 : f32
      %29 = vector.broadcast %cst_16 : f32 to vector<1x128xf32>
      %30 = arith.addf %26, %29 : vector<1x128xf32>
      %31 = math.rsqrt %30 : vector<1x128xf32>
      %32 = vector.broadcast %31 : vector<1x128xf32> to vector<64x128xf32>
      %33 = arith.mulf %28, %32 : vector<64x128xf32>
      %cst_17 = arith.constant 0.000000e+00 : f32
      %34 = vector.broadcast %cst_17 : f32 to vector<64x128xf32>
      %35 = arith.cmpf oge, %33, %34 : vector<64x128xf32>
      %cst_18 = arith.constant 2.000000e-01 : f32
      %36 = vector.broadcast %cst_18 : f32 to vector<64x128xf32>
      %37 = arith.mulf %36, %33 : vector<64x128xf32>
      %38 = arith.select %35, %33, %37 : vector<64x128xi1>, vector<64x128xf32>
      %c0_19 = arith.constant 0 : index
      %c0_20 = arith.constant 0 : index
      %39 = vector.load %arg6[%c0_19, %c0_20] : memref<64x128xf32, #tpu.memory_space<vmem>>, vector<64x128xf32>
      %40 = arith.addf %38, %39 : vector<64x128xf32>
      %cst_21 = arith.constant 0.000000e+00 : f32
      %41 = vector.broadcast %cst_21 : f32 to vector<64x128xf32>
      %42 = arith.maximumf %40, %41 : vector<64x128xf32>
      %c0_22 = arith.constant 0 : index
      %c0_23 = arith.constant 0 : index
      %43 = vector.load %arg7[%c0_22, %c0_23] : memref<64x128xf32, #tpu.memory_space<vmem>>, vector<64x128xf32>
      tpu.vector_store %arg7[%c0_22, %c0_23], %42 {strides = array<i32>} : memref<64x128xf32, #tpu.memory_space<vmem>>, vector<64x128xf32>,
    } else {
    }
    return
  }
  func.func @transform_0(%arg0: i32, %arg1: i32, %arg2: i32) -> (i32, i32) {
    %c4_i32 = arith.constant 4 : i32
    %0 = arith.muli %arg0, %c4_i32 : i32
    %1 = arith.addi %0, %arg2 : i32
    %c0_i32 = arith.constant 0 : i32
    %c0_i32_0 = arith.constant 0 : i32
    return %1, %c0_i32 : i32, i32
  }
  func.func @transform_1(%arg0: i32, %arg1: i32, %arg2: i32) -> (i32, i32) {
    %c0_i32 = arith.constant 0 : i32
    %c0_i32_0 = arith.constant 0 : i32
    %c0_i32_1 = arith.constant 0 : i32
    return %c0_i32, %c0_i32_0 : i32, i32
  }
  func.func @transform_2(%arg0: i32, %arg1: i32, %arg2: i32) -> (i32, i32) {
    %c0_i32 = arith.constant 0 : i32
    %c0_i32_0 = arith.constant 0 : i32
    %c0_i32_1 = arith.constant 0 : i32
    return %c0_i32, %c0_i32_0 : i32, i32
  }
  func.func @transform_3(%arg0: i32, %arg1: i32, %arg2: i32) -> (i32, i32) {
    %c4_i32 = arith.constant 4 : i32
    %0 = arith.muli %arg0, %c4_i32 : i32
    %1 = arith.muli %arg2, %arg1 : i32
    %2 = arith.addi %0, %1 : i32
    %c0_i32 = arith.constant 0 : i32
    %c0_i32_0 = arith.constant 0 : i32
    return %2, %c0_i32 : i32, i32
  }
  func.func @transform_4(%arg0: i32, %arg1: i32, %arg2: i32) -> (i32, i32) {
    %c4_i32 = arith.constant 4 : i32
    %0 = arith.muli %arg0, %c4_i32 : i32
    %1 = arith.muli %arg2, %arg1 : i32
    %2 = arith.addi %0, %1 : i32
    %c0_i32 = arith.constant 0 : i32
    %c0_i32_0 = arith.constant 0 : i32
    return %2, %c0_i32 : i32, i32
  }
}

module attributes {stable_mosaic.version = 11 : i64} {
  func.func @kernel(%arg0: i32, %arg1: i32, %arg2: memref<64x128xf32, #tpu.memory_space<vmem>>, %arg3: memref<128x128xf32, #tpu.memory_space<vmem>>, %arg4: memref<1x128xf32, #tpu.memory_space<vmem>>, %arg5: memref<1x128xf32, #tpu.memory_space<vmem>>, %arg6: memref<1x128xf32, #tpu.memory_space<vmem>>, %arg7: memref<64x128xf32, #tpu.memory_space<vmem>>, %arg8: memref<8x128xf32, #tpu.memory_space<vmem>>) attributes {dimension_semantics = [#tpu.dimension_semantics<arbitrary>, #tpu.dimension_semantics<arbitrary>], iteration_bounds = array<i64: 2, 8>, scalar_prefetch = 0 : i64, scratch_operands = 1 : i64, tpu.core_type = #tpu.core_type<tc>, window_params = [{transform_indices = @transform_0, window_bounds = array<i64: 64, 128>}, {pipeline_mode = #tpu.pipeline_mode<synchronous>, transform_indices = @transform_1, window_bounds = array<i64: 128, 128>}, {pipeline_mode = #tpu.pipeline_mode<synchronous>, transform_indices = @transform_2, window_bounds = array<i64: 1, 128>}, {pipeline_mode = #tpu.pipeline_mode<synchronous>, transform_indices = @transform_3, window_bounds = array<i64: 1, 128>}, {pipeline_mode = #tpu.pipeline_mode<synchronous>, transform_indices = @transform_4, window_bounds = array<i64: 1, 128>}, {transform_indices = @transform_5, window_bounds = array<i64: 64, 128>}]} {
    %c0 = arith.constant 0 : index
    %c0_0 = arith.constant 0 : index
    %0 = vector.load %arg2[%c0, %c0_0] : memref<64x128xf32, #tpu.memory_space<vmem>>, vector<64x128xf32>
    %c0_1 = arith.constant 0 : index
    %c0_2 = arith.constant 0 : index
    %1 = vector.load %arg3[%c0_1, %c0_2] : memref<128x128xf32, #tpu.memory_space<vmem>>, vector<128x128xf32>
    %cst = arith.constant dense<0.000000e+00> : vector<64x128xf32>
    %2 = tpu.matmul %0, %1, %cst {dimension_numbers = #tpu.dot_dimension_numbers<[1], [0], [0], [1], [0, 0, 1, 1], [], []>} : vector<64x128xf32>, vector<128x128xf32>, vector<64x128xf32> -> vector<64x128xf32>
    %c0_3 = arith.constant 0 : index
    %c0_4 = arith.constant 0 : index
    %3 = vector.load %arg4[%c0_3, %c0_4] : memref<1x128xf32, #tpu.memory_space<vmem>>, vector<1x128xf32>
    %4 = vector.broadcast %3 : vector<1x128xf32> to vector<64x128xf32>
    %5 = arith.addf %2, %4 : vector<64x128xf32>
    %c0_i32 = arith.constant 0 : i32
    %6 = arith.cmpi eq, %arg0, %c0_i32 : i32
    %c0_i32_5 = arith.constant 0 : i32
    %7 = arith.cmpi eq, %arg1, %c0_i32_5 : i32
    %8 = arith.andi %6, %7 : i1
    %9 = arith.extui %8 : i1 to i32
    %c0_i32_6 = arith.constant 0 : i32
    %10 = arith.cmpi ne, %9, %c0_i32_6 : i32
    scf.if %10 {
      %cst_10 = arith.constant 0.000000e+00 : f32
      %17 = vector.broadcast %cst_10 : f32 to vector<8x128xf32>
      %c0_11 = arith.constant 0 : index
      %c0_12 = arith.constant 0 : index
      %18 = vector.load %arg8[%c0_11, %c0_12] : memref<8x128xf32, #tpu.memory_space<vmem>>, vector<8x128xf32>
      tpu.vector_store %arg8[%c0_11, %c0_12], %17 {strides = array<i32>} : memref<8x128xf32, #tpu.memory_space<vmem>>, vector<8x128xf32>,
    } else {
    }
    %c0_i32_7 = arith.constant 0 : i32
    %11 = arith.cmpi eq, %arg0, %c0_i32_7 : i32
    %12 = arith.extui %11 : i1 to i32
    %c0_i32_8 = arith.constant 0 : i32
    %13 = arith.cmpi ne, %12, %c0_i32_8 : i32
    scf.if %13 {
      %c0_10 = arith.constant 0 : index
      %c0_11 = arith.constant 0 : index
      %17 = vector.load %arg8[%c0_10, %c0_11] : memref<8x128xf32, #tpu.memory_space<vmem>>, vector<1x128xf32>
      %cst_12 = arith.constant dense<0.000000e+00> : vector<128xf32>
      %18 = vector.multi_reduction <add>, %5, %cst_12 [0] : vector<64x128xf32> to vector<128xf32>
      %19 = vector.shape_cast %18 : vector<128xf32> to vector<1x128xf32>
      %20 = arith.addf %17, %19 : vector<1x128xf32>
      %c0_13 = arith.constant 0 : index
      %c0_14 = arith.constant 0 : index
      %21 = vector.load %arg8[%c0_13, %c0_14] : memref<8x128xf32, #tpu.memory_space<vmem>>, vector<1x128xf32>
      tpu.vector_store %arg8[%c0_13, %c0_14], %20 {strides = array<i32>} : memref<8x128xf32, #tpu.memory_space<vmem>>, vector<1x128xf32>,
      %c1 = arith.constant 1 : index
      %c0_15 = arith.constant 0 : index
      %22 = vector.load %arg8[%c1, %c0_15] : memref<8x128xf32, #tpu.memory_space<vmem>>, vector<1x128xf32>
      %23 = arith.mulf %5, %5 : vector<64x128xf32>
      %cst_16 = arith.constant dense<0.000000e+00> : vector<128xf32>
      %24 = vector.multi_reduction <add>, %23, %cst_16 [0] : vector<64x128xf32> to vector<128xf32>
      %25 = vector.shape_cast %24 : vector<128xf32> to vector<1x128xf32>
      %26 = arith.addf %22, %25 : vector<1x128xf32>
      %c1_17 = arith.constant 1 : index
      %c0_18 = arith.constant 0 : index
      %27 = vector.load %arg8[%c1_17, %c0_18] : memref<8x128xf32, #tpu.memory_space<vmem>>, vector<1x128xf32>
      tpu.vector_store %arg8[%c1_17, %c0_18], %26 {strides = array<i32>} : memref<8x128xf32, #tpu.memory_space<vmem>>, vector<1x128xf32>,
    } else {
    }
    %c1_i32 = arith.constant 1 : i32
    %14 = arith.cmpi eq, %arg0, %c1_i32 : i32
    %15 = arith.extui %14 : i1 to i32
    %c0_i32_9 = arith.constant 0 : i32
    %16 = arith.cmpi ne, %15, %c0_i32_9 : i32
    scf.if %16 {
      %c0_10 = arith.constant 0 : index
      %c0_11 = arith.constant 0 : index
      %17 = vector.load %arg8[%c0_10, %c0_11] : memref<8x128xf32, #tpu.memory_space<vmem>>, vector<1x128xf32>
      %cst_12 = arith.constant 0.001953125 : f32
      %18 = vector.broadcast %cst_12 : f32 to vector<1x128xf32>
      %19 = arith.mulf %17, %18 : vector<1x128xf32>
      %c1 = arith.constant 1 : index
      %c0_13 = arith.constant 0 : index
      %20 = vector.load %arg8[%c1, %c0_13] : memref<8x128xf32, #tpu.memory_space<vmem>>, vector<1x128xf32>
      %cst_14 = arith.constant 0.001953125 : f32
      %21 = vector.broadcast %cst_14 : f32 to vector<1x128xf32>
      %22 = arith.mulf %20, %21 : vector<1x128xf32>
      %23 = arith.mulf %19, %19 : vector<1x128xf32>
      %24 = arith.subf %22, %23 : vector<1x128xf32>
      %cst_15 = arith.constant 0.000000e+00 : f32
      %25 = vector.broadcast %cst_15 : f32 to vector<1x128xf32>
      %26 = arith.maximumf %24, %25 : vector<1x128xf32>
      %27 = vector.broadcast %19 : vector<1x128xf32> to vector<64x128xf32>
      %28 = arith.subf %5, %27 : vector<64x128xf32>
      %cst_16 = arith.constant 9.99999974E-6 : f32
      %29 = vector.broadcast %cst_16 : f32 to vector<1x128xf32>
      %30 = arith.addf %26, %29 : vector<1x128xf32>
      %31 = math.rsqrt %30 : vector<1x128xf32>
      %32 = vector.broadcast %31 : vector<1x128xf32> to vector<64x128xf32>
      %33 = arith.mulf %28, %32 : vector<64x128xf32>
      %c0_17 = arith.constant 0 : index
      %c0_18 = arith.constant 0 : index
      %34 = vector.load %arg5[%c0_17, %c0_18] : memref<1x128xf32, #tpu.memory_space<vmem>>, vector<1x128xf32>
      %35 = vector.broadcast %34 : vector<1x128xf32> to vector<64x128xf32>
      %36 = arith.mulf %33, %35 : vector<64x128xf32>
      %c0_19 = arith.constant 0 : index
      %c0_20 = arith.constant 0 : index
      %37 = vector.load %arg6[%c0_19, %c0_20] : memref<1x128xf32, #tpu.memory_space<vmem>>, vector<1x128xf32>
      %38 = vector.broadcast %37 : vector<1x128xf32> to vector<64x128xf32>
      %39 = arith.addf %36, %38 : vector<64x128xf32>
      %cst_21 = arith.constant 0.000000e+00 : f32
      %40 = vector.broadcast %cst_21 : f32 to vector<64x128xf32>
      %41 = arith.cmpf oge, %39, %40 : vector<64x128xf32>
      %cst_22 = arith.constant 2.000000e-01 : f32
      %42 = vector.broadcast %cst_22 : f32 to vector<64x128xf32>
      %43 = arith.mulf %42, %39 : vector<64x128xf32>
      %44 = arith.select %41, %39, %43 : vector<64x128xi1>, vector<64x128xf32>
      %c0_23 = arith.constant 0 : index
      %c0_24 = arith.constant 0 : index
      %45 = vector.load %arg7[%c0_23, %c0_24] : memref<64x128xf32, #tpu.memory_space<vmem>>, vector<64x128xf32>
      tpu.vector_store %arg7[%c0_23, %c0_24], %44 {strides = array<i32>} : memref<64x128xf32, #tpu.memory_space<vmem>>, vector<64x128xf32>,
    } else {
    }
    return
  }
  func.func @transform_0(%arg0: i32, %arg1: i32) -> (i32, i32) {
    %c0_i32 = arith.constant 0 : i32
    %c0_i32_0 = arith.constant 0 : i32
    return %arg1, %c0_i32 : i32, i32
  }
  func.func @transform_1(%arg0: i32, %arg1: i32) -> (i32, i32) {
    %c0_i32 = arith.constant 0 : i32
    %c0_i32_0 = arith.constant 0 : i32
    %c0_i32_1 = arith.constant 0 : i32
    return %c0_i32, %c0_i32_0 : i32, i32
  }
  func.func @transform_2(%arg0: i32, %arg1: i32) -> (i32, i32) {
    %c0_i32 = arith.constant 0 : i32
    %c0_i32_0 = arith.constant 0 : i32
    %c0_i32_1 = arith.constant 0 : i32
    return %c0_i32, %c0_i32_0 : i32, i32
  }
  func.func @transform_3(%arg0: i32, %arg1: i32) -> (i32, i32) {
    %c0_i32 = arith.constant 0 : i32
    %c0_i32_0 = arith.constant 0 : i32
    %c0_i32_1 = arith.constant 0 : i32
    return %c0_i32, %c0_i32_0 : i32, i32
  }
  func.func @transform_4(%arg0: i32, %arg1: i32) -> (i32, i32) {
    %c0_i32 = arith.constant 0 : i32
    %c0_i32_0 = arith.constant 0 : i32
    %c0_i32_1 = arith.constant 0 : i32
    return %c0_i32, %c0_i32_0 : i32, i32
  }
  func.func @transform_5(%arg0: i32, %arg1: i32) -> (i32, i32) {
    %0 = arith.muli %arg1, %arg0 : i32
    %c0_i32 = arith.constant 0 : i32
    %c0_i32_0 = arith.constant 0 : i32
    return %0, %c0_i32 : i32, i32
  }
}

</mosaic_0001>

<bundles_post_ra>
// kernel: bottleneck_in_forward.4
= control target key start
LH: loop header
LB: loop body
LE: loop exit
PB: predicated region body
PF: predicated region fallthrough
CT: control target
= control target key end

     0   :  { %s832_s12 = smov 0   ;;  %s834_s13 = smov 0   ;;  %s1040_s0 = inlined_call_operand.vmem [shape: f32[512,128], index: 0, kind: input, shape index: {}]   ;;  %s1041_s1 = inlined_call_operand.vmem [shape: f32[128,128], index: 1, kind: input, shape index: {}]   ;;  %s1042_s2 = inlined_call_operand.vmem [shape: f32[1,128], index: 2, kind: input, shape index: {}]   ;;  %s1043_s3 = inlined_call_operand.vmem [shape: f32[512,128], index: 3, kind: output, shape index: {}]  }
   0x1   :  { %s836_s14 = smov 0   ;;  %s838_s15 = smov 0  }
   0x2   :  { %s840_s16 = smov 0   ;;  %s842_s17 = smov 0  }
   0x3   :  { %s844_s18 = smov 0  }
   0x4 LB: > { %s25_s19 = sadd.s32 1, %s797_s15  ;;  %s28_s20 = sadd.s32 1, %s801_s16  ;;  %s809_s18 = sphi %s844_s18, %s13_s18   ;;  %s805_s17 = sphi %s842_s17, %s1050_s17   ;;  %s801_s16 = sphi %s840_s16, %s1049_s16   ;;  %s797_s15 = sphi %s838_s15, %s1048_s15   ;;  %s793_s14 = sphi %s836_s14, %s1047_s14   ;;  %s789_s13 = sphi %s834_s13, %s1046_s13   ;;  %s785_s12 = sphi %s832_s12, %s1045_s12  }
   0x5   : > { %p26_p0 = scmp.ge.s32.totalorder %s25_s19, 4  ;;  %p568_p1 = scmp.ge.s32.totalorder %s809_s18, 1 }
   0x6   : > { %p171_p2 = scmp.lt.s32.totalorder %s809_s18, 17  ;;  %s32_s21 = sadd.s32 1, %s805_s17 }
   0x7   : > { %s1052_s19 = smov (%p26_p0, %s25_s19), 0  ;;  %s1054_s20 = smov (!%p26_p0, %s28_s20), %s801_s16 }
   0x8   : > { %p172_p3 = pnand %p568_p1, %p171_p2  ;;  %p30_p4 = scmp.ge.s32.totalorder %s1054_s20, 2 }
   0x9   : > { %v230_v0 = vld [vmem:[%s1041_s1] sm:$0xff] (!%p172_p3)  ;;  %v231_v1 = vld [vmem:[%s1041_s1 + $0x8] sm:$0xff] (!%p172_p3)  ;;  %v232_v2 = vld [vmem:[%s1041_s1 + $0x10] sm:$0xff] (!%p172_p3)  ;;  %s569_s28 = sshll.u32 (!%p172_p3), %s793_s14, 2  ;;  %s211_s29 = smul.u32 (!%p172_p3), %s785_s12, %s789_s13 }
   0xa   : > { %s1056_s20 = smov (%p30_p4, %s1054_s20), 0  ;;  %s1058_s21 = smov (!%p30_p4, %s32_s21), %s805_s17 }
   0xb   : > { %p34_p5 = scmp.ge.s32.totalorder %s1058_s21, 2  ;;  %175 = sbr.rel (%p172_p3) target bundleno = 335 (0x14f), region = 32  ;;  %v648_v3 = vpack.c.bf16 (!%p172_p3), %v231_v1, %v230_v0  ;;  %v233_v4 = vld [vmem:[%s1041_s1 + $0x18] sm:$0xff] (!%p172_p3)  ;;  %v234_v6 = vld [vmem:[%s1041_s1 + $0x20] sm:$0xff] (!%p172_p3)  ;;  %v235_v7 = vld [vmem:[%s1041_s1 + $0x28] sm:$0xff] (!%p172_p3) }
   0xc   : > { %s201_s5 = sadd.s32 (!%p172_p3), %s785_s12, %s569_s28  ;;  %v652_v5 = vpack.c.bf16 (!%p172_p3), %v233_v4, %v232_v2  ;;  %s212_s11 = sadd.s32 (!%p172_p3), %s569_s28, %s211_s29  ;;  %v656_v8 = vpack.c.bf16 (!%p172_p3), %v235_v7, %v234_v6  ;;  %v236_v9 = vld [vmem:[%s1041_s1 + $0x30] sm:$0xff] (!%p172_p3)  ;;  %v237_v10 = vld [vmem:[%s1041_s1 + $0x38] sm:$0xff] (!%p172_p3)  ;;  %v238_v14 = vld [vmem:[%s1041_s1 + $0x40] sm:$0xff] (!%p172_p3) }
   0xd   : > { %s1060_s21 = smov (%p34_p5, %s1058_s21), 0  ;;  %s570_s10 = sshll.u32 (!%p172_p3), %s201_s5, 3  ;;  %649 = vmatprep.subr.bf16.mxu0 (!%p172_p3), %v648_v3  ;;  %680 = vmatprep.subr.bf16.mxu1 (!%p172_p3), %v648_v3  ;;  %v660_v11 = vpack.c.bf16 (!%p172_p3), %v237_v10, %v236_v9  ;;  %v239_v15 = vld [vmem:[%s1041_s1 + $0x48] sm:$0xff] (!%p172_p3)  ;;  %v240_v17 = vld [vmem:[%s1041_s1 + $0x50] sm:$0xff] (!%p172_p3)  ;;  %v241_v18 = vld [vmem:[%s1041_s1 + $0x58] sm:$0xff] (!%p172_p3) }
   0xe   : > { %p203_p6 = scmp.lt.s32.totalorder (!%p172_p3), %s570_s10, 63  ;;  %s573_s14 = sshll.u32 (!%p172_p3), %s212_s11, 3  ;;  %651 = vmatpush3.bf16.msra.mxu0 (!%p172_p3), %v648_v3  ;;  %688 = vmatpush3.bf16.msra.mxu1 (!%p172_p3), %v648_v3  ;;  %v664_v16 = vpack.c.bf16 (!%p172_p3), %v239_v15, %v238_v14  ;;  %v668_v19 = vpack.c.bf16 (!%p172_p3), %v241_v18, %v240_v17  ;;  %v242_v20 = vld [vmem:[%s1041_s1 + $0x60] sm:$0xff] (!%p172_p3)  ;;  %v243_v21 = vld [vmem:[%s1041_s1 + $0x68] sm:$0xff] (!%p172_p3)  ;;  %v244_v23 = vld [vmem:[%s1041_s1 + $0x70] sm:$0xff] (!%p172_p3) }
   0xf   : > { %p214_p7 = scmp.lt.s32.totalorder (!%p172_p3), %s573_s14, 63  ;;  %653 = vmatprep.subr.bf16.mxu0 (!%p172_p3), %v652_v5  ;;  %681 = vmatprep.subr.bf16.mxu1 (!%p172_p3), %v652_v5  ;;  %v672_v22 = vpack.c.bf16 (!%p172_p3), %v243_v21, %v242_v20  ;;  %v245_v24 = vld [vmem:[%s1041_s1 + $0x78] sm:$0xff] (!%p172_p3)  ;;  %p358_p8 = scmp.eq.s32.totalorder (!%p172_p3), %s789_s13, 0  ;;  %v575_v32 = vld [vmem:[%s1042_s2] ss:$0 sm:$0xff] (!%p172_p3) }
  0x10   : > { %v676_v25 = vpack.c.bf16 (!%p172_p3), %v245_v24, %v244_v23  ;;  %p359_p9 = scmp.eq.s32.totalorder (!%p172_p3), %s785_s12, 0 }
  0x12   : > { %s1062_s10 = smov (!%p203_p6, %s570_s10), 63  ;;  %s1064_s14 = smov (!%p214_p7, %s573_s14), 63  ;;  %655 = vmatpush3.bf16.msra.mxu0 %v652_v5  ;;  %689 = vmatpush3.bf16.msra.mxu1 %v652_v5 }
  0x13   : > { %s571_s26 = sshll.u32 %s1062_s10, 3  ;;  %s574_s30 = sshll.u32 %s1064_s14, 3  ;;  %657 = vmatprep.subr.bf16.mxu0 %v656_v8  ;;  %682 = vmatprep.subr.bf16.mxu1 %v656_v8 }
  0x14   : > { %s911_s29 = scalar_lea.vmem %s1040_s0, %s571_s26  ;;  %s916_s6 = scalar_lea.vmem %s1043_s3, %s574_s30 }
  0x15   : > { %v222_v12 = vld [vmem:[%s911_s29] sm:$0xff]  ;;  %v223_v26 = vld [vmem:[%s911_s29 + $0x8] sm:$0xff]  ;;  %v224_v28 = vld [vmem:[%s911_s29 + $0x10] sm:$0xff]  ;;  %p952_p10 = pnand %p359_p9, %p358_p8 }
  0x16   : > { %v226_v13 = vld [vmem:[%s911_s29 + $0x20] sm:$0xff]  ;;  %636 = vmatprep.mubr.f32.mxu0 %v222_v12  ;;  %659 = vmatpush3.bf16.msra.mxu0 %v656_v8  ;;  %v227_v27 = vld [vmem:[%s911_s29 + $0x28] sm:$0xff]  ;;  %v228_v29 = vld [vmem:[%s911_s29 + $0x30] sm:$0xff]  ;;  %v811_v49 = vmov (!%p952_p10), 0.0  }
  0x17   : > { %642 = vmatprep.mubr.f32.mxu1 %v226_v13  ;;  %690 = vmatpush3.bf16.msra.mxu1 %v656_v8  ;;  %v225_v30 = vld [vmem:[%s911_s29 + $0x18] sm:$0xff]  ;;  %364 = vst [vmem:[#allocation2] sm:$0xff] (!%p952_p10), %v811_v49 }
  0x18   : > { %661 = vmatprep.subr.bf16.mxu0 %v660_v11  ;;  %683 = vmatprep.subr.bf16.mxu1 %v660_v11  ;;  %v229_v31 = vld [vmem:[%s911_s29 + $0x38] sm:$0xff] }
  0x1a   : > { %663 = vmatpush3.bf16.msra.mxu0 %v660_v11 }
  0x1b   : > { %691 = vmatpush3.bf16.msra.mxu1 %v660_v11  ;;  %665 = vmatprep.subr.bf16.mxu0 %v664_v16 }
  0x1c   : > { %684 = vmatprep.subr.bf16.mxu1 %v664_v16 }
  0x1e   : > { %667 = vmatpush3.bf16.msra.mxu0 %v664_v16 }
  0x1f   : > { %692 = vmatpush3.bf16.msra.mxu1 %v664_v16  ;;  %669 = vmatprep.subr.bf16.mxu0 %v668_v19 }
  0x20   : > { %685 = vmatprep.subr.bf16.mxu1 %v668_v19 }
  0x22   : > { %671 = vmatpush3.bf16.msra.mxu0 %v668_v19 }
  0x23   : > { %693 = vmatpush3.bf16.msra.mxu1 %v668_v19  ;;  %673 = vmatprep.subr.bf16.mxu0 %v672_v22 }
  0x24   : > { %686 = vmatprep.subr.bf16.mxu1 %v672_v22 }
  0x26   : > { %675 = vmatpush3.bf16.msra.mxu0 %v672_v22 }
  0x27   : > { %694 = vmatpush3.bf16.msra.mxu1 %v672_v22  ;;  %677 = vmatprep.subr.bf16.mxu0 %v676_v25 }
  0x28   : > { %687 = vmatprep.subr.bf16.mxu1 %v676_v25 }
  0x2a   : > { %679 = vmatpush3.bf16.msra.mxu0 %v676_v25 }
  0x2b   : > { %695 = vmatpush3.bf16.msra.mxu1 %v676_v25 }
  0x2d   : > { %637 = vmatmul.mubr.f32.vlgmr.msra.gmra.mrb[0].mxu0 %v223_v26 }
  0x2e   : > { %643 = vmatmul.mubr.f32.vlgmr.msra.gmra.mrb[0].mxu1 %v227_v27  ;;  %639 = vmatprep.mubr.f32.mxu0 %v224_v28 }
  0x2f   : > { %645 = vmatprep.mubr.f32.mxu1 %v228_v29 }
  0x31   : > { %640 = vmatmul.mubr.f32.gmra.mrb[2].mxu0 %v225_v30 }
  0x32   : > { %646 = vmatmul.mubr.f32.gmra.mrb[2].mxu1 %v229_v31 }
 0x100   : > { %v638_v33 = vpop.f32.mrb[0].mxu0 }
 0x101   : > { %v644_v34 = vpop.f32.mrb[0].mxu1  ;;  %v959_v35 = vadd.f32 %v638_v33, %v575_v32  ;;  %v319_v37 = vpop.f32.mrb[1].mxu0  ;;  %363 = sbr.rel (%p952_p10) target bundleno = 264 (0x108), region = 36 }
 0x102   : > { %v961_v36 = vadd.f32 %v644_v34, %v575_v32  ;;  %v339_v38 = vpop.f32.mrb[1].mxu1  ;;  %v963_v39 = vadd.f32 %v575_v32, %v319_v37 }
 0x103   : > { %v965_v40 = vadd.f32 %v575_v32, %v339_v38 }
 0x104   : > { %v641_v41 = vpop.f32.mrb[2].mxu0 }
 0x105   : > { %v647_v42 = vpop.f32.mrb[2].mxu1  ;;  %v967_v43 = vadd.f32 %v641_v41, %v575_v32  ;;  %v329_v45 = vpop.f32.mrb[3].mxu0 }
 0x106   : > { %v969_v44 = vadd.f32 %v647_v42, %v575_v32  ;;  %v349_v46 = vpop.f32.mrb[3].mxu1  ;;  %v971_v47 = vadd.f32 %v575_v32, %v329_v45 }
 0x107   : > { %v973_v48 = vadd.f32 %v575_v32, %v349_v46 }
 0x108 PF: > { %p576_p11 = scmp.ne.s32.totalorder %s789_s13, 0 }
 0x109   : > { %v369_v50 = vadd.f32 (!%p576_p11), %v959_v35, %v963_v39  ;;  %v385_v51 = vmul.f32 (!%p576_p11), %v963_v39, %v963_v39  ;;  %v386_v52 = vmul.f32 (!%p576_p11), %v959_v35, %v959_v35  ;;  %v387_v53 = vmul.f32 (!%p576_p11), %v971_v47, %v971_v47  ;;  %v368_v17 = vld [vmem:[#allocation2] sm:$0x1] (!%p576_p11)  ;;  %v384_v20 = vld [vmem:[#allocation2 + $0x1] sm:$0x1] (!%p576_p11) }
 0x10a   : > { %367 = sbr.rel (%p576_p11) target bundleno = 296 (0x128), region = 40  ;;  %v388_v55 = vmul.f32 (!%p576_p11), %v967_v43, %v967_v43  ;;  %v389_v58 = vmul.f32 (!%p576_p11), %v965_v40, %v965_v40  ;;  %v390_v61 = vmul.f32 (!%p576_p11), %v961_v36, %v961_v36  ;;  %v391_v0 = vmul.f32 (!%p576_p11), %v973_v48, %v973_v48 }
 0x10b   : > { %v370_v54 = vadd.f32 (!%p576_p11), %v369_v50, %v971_v47  ;;  %v393_v56 = vadd.f32 (!%p576_p11), %v386_v52, %v385_v51  ;;  %v392_v3 = vmul.f32 (!%p576_p11), %v969_v44, %v969_v44 }
 0x10d   : > { %v371_v57 = vadd.f32 (!%p576_p11), %v370_v54, %v967_v43  ;;  %v394_v59 = vadd.f32 (!%p576_p11), %v393_v56, %v387_v53 }
 0x10f   : > { %v372_v60 = vadd.f32 (!%p576_p11), %v371_v57, %v965_v40  ;;  %v395_v62 = vadd.f32 (!%p576_p11), %v394_v59, %v388_v55 }
 0x111   : > { %v373_v63 = vadd.f32 %v372_v60, %v961_v36  ;;  %v396_v1 = vadd.f32 %v395_v62, %v389_v58 }
 0x113   : > { %v374_v2 = vadd.f32 %v373_v63, %v973_v48  ;;  %v397_v4 = vadd.f32 %v396_v1, %v390_v61 }
 0x115   : > { %v375_v5 = vadd.f32 %v374_v2, %v969_v44  ;;  %v398_v6 = vadd.f32 %v397_v4, %v391_v0 }
 0x117   : > { %v376_v7 = vrot.slane %v375_v5, 4  ;;  %v399_v8 = vadd.f32 %v398_v6, %v392_v3 }
 0x119   : > { %v377_v9 = vadd.f32 %v376_v7, %v375_v5  ;;  %v400_v10 = vrot.slane %v399_v8, 4 }
 0x11b   : > { %v378_v11 = vrot.slane %v377_v9, 2  ;;  %v401_v12 = vadd.f32 %v400_v10, %v399_v8 }
 0x11d   : > { %v379_v13 = vadd.f32 %v378_v11, %v377_v9  ;;  %v402_v14 = vrot.slane %v401_v12, 2 }
 0x11f   : > { %v380_v15 = vrot.slane %v379_v13, 1  ;;  %v403_v16 = vadd.f32 %v402_v14, %v401_v12 }
 0x121   : > { %v381_v18 = vadd.f32 %v380_v15, %v379_v13  ;;  %v404_v19 = vrot.slane %v403_v16, 1 }
 0x123   : > { %v382_v21 = vadd.f32 %v381_v18, %v368_v17  ;;  %v405_v22 = vadd.f32 %v404_v19, %v403_v16 }
 0x125   : > { %383 = vst [vmem:[#allocation2] sm:$0x1] %v382_v21  ;;  %v406_v23 = vadd.f32 %v405_v22, %v384_v20 }
 0x127   : > { %407 = vst [vmem:[#allocation2 + $0x1] sm:$0x1] %v406_v23 }
 0x128 PF: > { %p577_p12 = scmp.ne.s32.totalorder %s789_s13, 1 }
 0x129   : > { %v419_v29 = vlaneseq (!%p577_p12) }
 0x12a   : > { %411 = sbr.rel (%p577_p12) target bundleno = 335 (0x14f), region = 44 }
 0x12b   : > { %v420_v32 = vshrl.u32 (!%p577_p12), %v419_v29, 7 }
 0x12c   : > { %v412_v24 = vld [vmem:[#allocation2] sm:$0x1] (!%p577_p12) }
 0x12d   : > { %v413_v26 = vmul.f32 (!%p577_p12), 0.00390625, %v412_v24  ;;  %v421_v34 = vsub.s32 (!%p577_p12), 0, %v420_v32 }
 0x12e   : > { %v414_v25 = vld [vmem:[#allocation2 + $0x1] sm:$0x1] (!%p577_p12) }
 0x12f   : > { %v415_v27 = vmul.f32 (!%p577_p12), 0.00390625, %v414_v25  ;;  %v416_v28 = vmul.f32 (!%p577_p12), %v413_v26, %v413_v26  ;;  %v422_v37 = vrot.slane (!%p577_p12), %v413_v26, %v421_v34 }
 0x131   : > { %v417_v30 = vsub.f32 %v415_v27, %v416_v28  ;;  %v423_v38 = vsub.f32 %v963_v39, %v422_v37  ;;  %v424_v41 = vsub.f32 %v959_v35, %v422_v37  ;;  %v425_v42 = vsub.f32 %v971_v47, %v422_v37 }
 0x132   : > { %v426_v45 = vsub.f32 %v967_v43, %v422_v37  ;;  %v427_v49 = vsub.f32 %v965_v40, %v422_v37  ;;  %v428_v50 = vsub.f32 %v961_v36, %v422_v37  ;;  %v429_v51 = vsub.f32 %v973_v48, %v422_v37 }
 0x133   : > { %v418_v31 = vmax.f32 %v417_v30, 0.0  ;;  %v430_v52 = vsub.f32 %v969_v44, %v422_v37 }
 0x135   : > { %v431_v33 = vadd.f32 1e-05, %v418_v31 }
 0x137   : > { %753 = vrsqrt.f32 %v431_v33 }
 0x141   : > { %v754_v46 = vpop.eup %753 }
 0x142   : > { %v436_v53 = vrot.slane %v754_v46, %v421_v34 }
 0x144   : > { %v437_v54 = vmul.f32 %v436_v53, %v423_v38  ;;  %v438_v55 = vmul.f32 %v436_v53, %v424_v41  ;;  %v439_v56 = vmul.f32 %v436_v53, %v425_v42  ;;  %v440_v39 = vmul.f32 %v436_v53, %v426_v45 }
 0x145   : > { %v441_v57 = vmul.f32 %v436_v53, %v427_v49  ;;  %v442_v35 = vmul.f32 %v436_v53, %v428_v50  ;;  %v443_v47 = vmul.f32 %v436_v53, %v429_v51  ;;  %v444_v43 = vmul.f32 %v436_v53, %v430_v52 }
 0x146   : > { %vm445_vm0 = vcmp.ge.f32.partialorder %v437_v54, 0.0  ;;  %v453_v58 = vmul.f32 0.2, %v437_v54  ;;  %vm446_vm1 = vcmp.ge.f32.partialorder %v438_v55, 0.0  ;;  %v454_v36 = vmul.f32 0.2, %v438_v55 }
 0x147   : > { %vm447_vm2 = vcmp.ge.f32.partialorder %v439_v56, 0.0  ;;  %v455_v40 = vmul.f32 0.2, %v439_v56  ;;  %vm448_vm3 = vcmp.ge.f32.partialorder %v440_v39, 0.0  ;;  %v456_v44 = vmul.f32 0.2, %v440_v39 }
 0x148   : > { %v461_v48 = vsel %vm445_vm0, %v437_v54, %v453_v58  ;;  %v462_v59 = vsel %vm446_vm1, %v438_v55, %v454_v36  ;;  %vm449_vm4 = vcmp.ge.f32.partialorder %v441_v57, 0.0  ;;  %v457_v60 = vmul.f32 0.2, %v441_v57 }
 0x149   : > { %469 = vst [vmem:[%s916_s6] sm:$0xff] %v461_v48  ;;  %470 = vst [vmem:[%s916_s6 + $0x8] sm:$0xff] %v462_v59  ;;  %v463_v61 = vsel %vm447_vm2, %v439_v56, %v455_v40  ;;  %v464_v62 = vsel %vm448_vm3, %v440_v39, %v456_v44  ;;  %vm450_vm5 = vcmp.ge.f32.partialorder %v442_v35, 0.0  ;;  %v458_v63 = vmul.f32 0.2, %v442_v35 }
 0x14a   : > { %471 = vst [vmem:[%s916_s6 + $0x10] sm:$0xff] %v463_v61  ;;  %472 = vst [vmem:[%s916_s6 + $0x18] sm:$0xff] %v464_v62  ;;  %v465_v0 = vsel %vm449_vm4, %v441_v57, %v457_v60  ;;  %vm451_vm6 = vcmp.ge.f32.partialorder %v443_v47, 0.0  ;;  %v459_v1 = vmul.f32 0.2, %v443_v47  ;;  %vm452_vm7 = vcmp.ge.f32.partialorder %v444_v43, 0.0 }
 0x14b   : > { %473 = vst [vmem:[%s916_s6 + $0x20] sm:$0xff] %v465_v0  ;;  %v466_v2 = vsel %vm450_vm5, %v442_v35, %v458_v63  ;;  %v460_v3 = vmul.f32 0.2, %v444_v43 }
 0x14c   : > { %474 = vst [vmem:[%s916_s6 + $0x28] sm:$0xff] %v466_v2  ;;  %v467_v4 = vsel %vm451_vm6, %v443_v47, %v459_v1 }
 0x14d   : > { %475 = vst [vmem:[%s916_s6 + $0x30] sm:$0xff] %v467_v4  ;;  %v468_v5 = vsel %vm452_vm7, %v444_v43, %v460_v3 }
 0x14e   : > { %476 = vst [vmem:[%s916_s6 + $0x38] sm:$0xff] %v468_v5 }
 0x14f PF: > { %s13_s18 = sadd.s32 1, %s809_s18   ;;  %s1045_s12 = smov %s797_s15 }
 0x150   : > { %p10_p13 = scmp.ge.s32.totalorder %s13_s18, 18   ;;  %s1046_s13 = smov %s801_s16 }
 0x151   : > { %s1047_s14 = smov %s805_s17  ;;  %s1048_s15 = smov %s1052_s19 }
 0x152   : > { %s1049_s16 = smov %s1056_s20  ;;  %s1050_s17 = smov %s1060_s21 }
 0x153   :  { %12 = sbr.rel (!%p10_p13) target bundleno = 4 (0x4), region = 74 }

// kernel: bottleneck_in_forward.7
= control target key start
LH: loop header
LB: loop body
LE: loop exit
PB: predicated region body
PF: predicated region fallthrough
CT: control target
= control target key end

     0   :  { %s948_s15 = smov 0   ;;  %s950_s16 = smov 0   ;;  %s1169_s0 = inlined_call_operand.vmem [shape: f32[512,128], index: 0, kind: input, shape index: {}]   ;;  %s1170_s1 = inlined_call_operand.vmem [shape: f32[128,128], index: 1, kind: input, shape index: {}]   ;;  %s1171_s2 = inlined_call_operand.vmem [shape: f32[1,128], index: 2, kind: input, shape index: {}]   ;;  %s1172_s3 = inlined_call_operand.vmem [shape: f32[512,128], index: 3, kind: input, shape index: {}]   ;;  %s1173_s4 = inlined_call_operand.vmem [shape: f32[512,128], index: 4, kind: output, shape index: {}]  }
   0x1   :  { %s952_s17 = smov 0   ;;  %s954_s18 = smov 0  }
   0x2   :  { %s956_s19 = smov 0   ;;  %s958_s20 = smov 0  }
   0x3   :  { %s960_s21 = smov 0  }
   0x4 LB: > { %s26_s22 = sadd.s32 1, %s908_s18  ;;  %s29_s23 = sadd.s32 1, %s912_s19  ;;  %s920_s21 = sphi %s960_s21, %s14_s21   ;;  %s916_s20 = sphi %s958_s20, %s1180_s20   ;;  %s912_s19 = sphi %s956_s19, %s1179_s19   ;;  %s908_s18 = sphi %s954_s18, %s1178_s18   ;;  %s904_s17 = sphi %s952_s17, %s1177_s17   ;;  %s900_s16 = sphi %s950_s16, %s1176_s16   ;;  %s896_s15 = sphi %s948_s15, %s1175_s15  }
   0x5   : > { %p27_p0 = scmp.ge.s32.totalorder %s26_s22, 4  ;;  %p676_p1 = scmp.ge.s32.totalorder %s920_s21, 1 }
   0x6   : > { %p219_p2 = scmp.lt.s32.totalorder %s920_s21, 17  ;;  %s33_s24 = sadd.s32 1, %s916_s20 }
   0x7   : > { %s1182_s22 = smov (%p27_p0, %s26_s22), 0  ;;  %s1184_s23 = smov (!%p27_p0, %s29_s23), %s912_s19 }
   0x8   : > { %p220_p3 = pnand %p676_p1, %p219_p2  ;;  %p31_p4 = scmp.ge.s32.totalorder %s1184_s23, 2 }
   0x9   : > { %v300_v0 = vld [vmem:[%s1170_s1] sm:$0xff] (!%p220_p3)  ;;  %v301_v1 = vld [vmem:[%s1170_s1 + $0x8] sm:$0xff] (!%p220_p3)  ;;  %v302_v2 = vld [vmem:[%s1170_s1 + $0x10] sm:$0xff] (!%p220_p3)  ;;  %s677_s5 = sshll.u32 (!%p220_p3), %s904_s17, 2  ;;  %s269_s6 = smul.u32 (!%p220_p3), %s896_s15, %s900_s16 }
   0xa   : > { %s1186_s23 = smov (%p31_p4, %s1184_s23), 0  ;;  %s1188_s24 = smov (!%p31_p4, %s33_s24), %s916_s20 }
   0xb   : > { %p35_p5 = scmp.ge.s32.totalorder %s1188_s24, 2  ;;  %223 = sbr.rel (%p220_p3) target bundleno = 341 (0x155), region = 36  ;;  %v759_v3 = vpack.c.bf16 (!%p220_p3), %v301_v1, %v300_v0  ;;  %v303_v4 = vld [vmem:[%s1170_s1 + $0x18] sm:$0xff] (!%p220_p3)  ;;  %v304_v6 = vld [vmem:[%s1170_s1 + $0x20] sm:$0xff] (!%p220_p3)  ;;  %v305_v7 = vld [vmem:[%s1170_s1 + $0x28] sm:$0xff] (!%p220_p3) }
   0xc   : > { %s259_s9 = sadd.s32 (!%p220_p3), %s896_s15, %s677_s5  ;;  %v763_v5 = vpack.c.bf16 (!%p220_p3), %v303_v4, %v302_v2  ;;  %s270_s25 = sadd.s32 (!%p220_p3), %s677_s5, %s269_s6  ;;  %v767_v8 = vpack.c.bf16 (!%p220_p3), %v305_v7, %v304_v6  ;;  %v306_v9 = vld [vmem:[%s1170_s1 + $0x30] sm:$0xff] (!%p220_p3)  ;;  %v307_v10 = vld [vmem:[%s1170_s1 + $0x38] sm:$0xff] (!%p220_p3)  ;;  %v308_v14 = vld [vmem:[%s1170_s1 + $0x40] sm:$0xff] (!%p220_p3) }
   0xd   : > { %s1190_s24 = smov (%p35_p5, %s1188_s24), 0  ;;  %s678_s14 = sshll.u32 (!%p220_p3), %s259_s9, 3  ;;  %760 = vmatprep.subr.bf16.mxu0 (!%p220_p3), %v759_v3  ;;  %791 = vmatprep.subr.bf16.mxu1 (!%p220_p3), %v759_v3  ;;  %v771_v11 = vpack.c.bf16 (!%p220_p3), %v307_v10, %v306_v9  ;;  %v309_v15 = vld [vmem:[%s1170_s1 + $0x48] sm:$0xff] (!%p220_p3)  ;;  %v310_v17 = vld [vmem:[%s1170_s1 + $0x50] sm:$0xff] (!%p220_p3)  ;;  %v311_v18 = vld [vmem:[%s1170_s1 + $0x58] sm:$0xff] (!%p220_p3) }
   0xe   : > { %p261_p6 = scmp.lt.s32.totalorder (!%p220_p3), %s678_s14, 63  ;;  %s681_s17 = sshll.u32 (!%p220_p3), %s270_s25, 3  ;;  %762 = vmatpush3.bf16.msra.mxu0 (!%p220_p3), %v759_v3  ;;  %799 = vmatpush3.bf16.msra.mxu1 (!%p220_p3), %v759_v3  ;;  %v775_v16 = vpack.c.bf16 (!%p220_p3), %v309_v15, %v308_v14  ;;  %v779_v19 = vpack.c.bf16 (!%p220_p3), %v311_v18, %v310_v17  ;;  %v312_v20 = vld [vmem:[%s1170_s1 + $0x60] sm:$0xff] (!%p220_p3)  ;;  %v313_v21 = vld [vmem:[%s1170_s1 + $0x68] sm:$0xff] (!%p220_p3)  ;;  %v314_v23 = vld [vmem:[%s1170_s1 + $0x70] sm:$0xff] (!%p220_p3) }
   0xf   : > { %p272_p7 = scmp.lt.s32.totalorder (!%p220_p3), %s681_s17, 63  ;;  %764 = vmatprep.subr.bf16.mxu0 (!%p220_p3), %v763_v5  ;;  %792 = vmatprep.subr.bf16.mxu1 (!%p220_p3), %v763_v5  ;;  %v783_v22 = vpack.c.bf16 (!%p220_p3), %v313_v21, %v312_v20  ;;  %v315_v24 = vld [vmem:[%s1170_s1 + $0x78] sm:$0xff] (!%p220_p3)  ;;  %p428_p8 = scmp.eq.s32.totalorder (!%p220_p3), %s900_s16, 0  ;;  %v686_v32 = vld [vmem:[%s1171_s2] ss:$0 sm:$0xff] (!%p220_p3) }
  0x10   : > { %v787_v25 = vpack.c.bf16 (!%p220_p3), %v315_v24, %v314_v23  ;;  %p429_p9 = scmp.eq.s32.totalorder (!%p220_p3), %s896_s15, 0 }
  0x12   : > { %s1192_s14 = smov (!%p261_p6, %s678_s14), 63  ;;  %s1194_s17 = smov (!%p272_p7, %s681_s17), 63  ;;  %766 = vmatpush3.bf16.msra.mxu0 %v763_v5  ;;  %800 = vmatpush3.bf16.msra.mxu1 %v763_v5 }
  0x13   : > { %s679_s30 = sshll.u32 %s1192_s14, 3  ;;  %s682_s8 = sshll.u32 %s1194_s17, 3  ;;  %768 = vmatprep.subr.bf16.mxu0 %v767_v8  ;;  %793 = vmatprep.subr.bf16.mxu1 %v767_v8 }
  0x14   : > { %s1027_s7 = scalar_lea.vmem %s1169_s0, %s679_s30  ;;  %s1032_s11 = scalar_lea.vmem %s1172_s3, %s682_s8 }
  0x15   : > { %s1037_s14 = scalar_lea.vmem %s1173_s4, %s682_s8  ;;  %v292_v12 = vld [vmem:[%s1027_s7] sm:$0xff]  ;;  %v293_v26 = vld [vmem:[%s1027_s7 + $0x8] sm:$0xff]  ;;  %v294_v28 = vld [vmem:[%s1027_s7 + $0x10] sm:$0xff]  ;;  %p1073_p10 = pnand %p429_p9, %p428_p8 }
  0x16   : > { %v296_v13 = vld [vmem:[%s1027_s7 + $0x20] sm:$0xff]  ;;  %747 = vmatprep.mubr.f32.mxu0 %v292_v12  ;;  %770 = vmatpush3.bf16.msra.mxu0 %v767_v8  ;;  %v297_v27 = vld [vmem:[%s1027_s7 + $0x28] sm:$0xff]  ;;  %v298_v29 = vld [vmem:[%s1027_s7 + $0x30] sm:$0xff]  ;;  %v922_v49 = vmov (!%p1073_p10), 0.0  }
  0x17   : > { %753 = vmatprep.mubr.f32.mxu1 %v296_v13  ;;  %801 = vmatpush3.bf16.msra.mxu1 %v767_v8  ;;  %v295_v30 = vld [vmem:[%s1027_s7 + $0x18] sm:$0xff]  ;;  %434 = vst [vmem:[#allocation2] sm:$0xff] (!%p1073_p10), %v922_v49 }
  0x18   : > { %772 = vmatprep.subr.bf16.mxu0 %v771_v11  ;;  %794 = vmatprep.subr.bf16.mxu1 %v771_v11  ;;  %v299_v31 = vld [vmem:[%s1027_s7 + $0x38] sm:$0xff] }
  0x1a   : > { %774 = vmatpush3.bf16.msra.mxu0 %v771_v11 }
  0x1b   : > { %802 = vmatpush3.bf16.msra.mxu1 %v771_v11  ;;  %776 = vmatprep.subr.bf16.mxu0 %v775_v16 }
  0x1c   : > { %795 = vmatprep.subr.bf16.mxu1 %v775_v16 }
  0x1e   : > { %778 = vmatpush3.bf16.msra.mxu0 %v775_v16 }
  0x1f   : > { %803 = vmatpush3.bf16.msra.mxu1 %v775_v16  ;;  %780 = vmatprep.subr.bf16.mxu0 %v779_v19 }
  0x20   : > { %796 = vmatprep.subr.bf16.mxu1 %v779_v19 }
  0x22   : > { %782 = vmatpush3.bf16.msra.mxu0 %v779_v19 }
  0x23   : > { %804 = vmatpush3.bf16.msra.mxu1 %v779_v19  ;;  %784 = vmatprep.subr.bf16.mxu0 %v783_v22 }
  0x24   : > { %797 = vmatprep.subr.bf16.mxu1 %v783_v22 }
  0x26   : > { %786 = vmatpush3.bf16.msra.mxu0 %v783_v22 }
  0x27   : > { %805 = vmatpush3.bf16.msra.mxu1 %v783_v22  ;;  %788 = vmatprep.subr.bf16.mxu0 %v787_v25 }
  0x28   : > { %798 = vmatprep.subr.bf16.mxu1 %v787_v25 }
  0x2a   : > { %790 = vmatpush3.bf16.msra.mxu0 %v787_v25 }
  0x2b   : > { %806 = vmatpush3.bf16.msra.mxu1 %v787_v25 }
  0x2d   : > { %748 = vmatmul.mubr.f32.vlgmr.msra.gmra.mrb[0].mxu0 %v293_v26 }
  0x2e   : > { %754 = vmatmul.mubr.f32.vlgmr.msra.gmra.mrb[0].mxu1 %v297_v27  ;;  %750 = vmatprep.mubr.f32.mxu0 %v294_v28 }
  0x2f   : > { %756 = vmatprep.mubr.f32.mxu1 %v298_v29 }
  0x31   : > { %751 = vmatmul.mubr.f32.gmra.mrb[2].mxu0 %v295_v30 }
  0x32   : > { %757 = vmatmul.mubr.f32.gmra.mrb[2].mxu1 %v299_v31 }
 0x100   : > { %v749_v33 = vpop.f32.mrb[0].mxu0 }
 0x101   : > { %v755_v34 = vpop.f32.mrb[0].mxu1  ;;  %v1080_v35 = vadd.f32 %v749_v33, %v686_v32  ;;  %v389_v37 = vpop.f32.mrb[1].mxu0  ;;  %433 = sbr.rel (%p1073_p10) target bundleno = 264 (0x108), region = 40 }
 0x102   : > { %v1082_v36 = vadd.f32 %v755_v34, %v686_v32  ;;  %v409_v38 = vpop.f32.mrb[1].mxu1  ;;  %v1084_v39 = vadd.f32 %v686_v32, %v389_v37 }
 0x103   : > { %v1086_v40 = vadd.f32 %v686_v32, %v409_v38 }
 0x104   : > { %v752_v41 = vpop.f32.mrb[2].mxu0 }
 0x105   : > { %v758_v42 = vpop.f32.mrb[2].mxu1  ;;  %v1088_v43 = vadd.f32 %v752_v41, %v686_v32  ;;  %v399_v45 = vpop.f32.mrb[3].mxu0 }
 0x106   : > { %v1090_v44 = vadd.f32 %v758_v42, %v686_v32  ;;  %v419_v46 = vpop.f32.mrb[3].mxu1  ;;  %v1092_v47 = vadd.f32 %v686_v32, %v399_v45 }
 0x107   : > { %v1094_v48 = vadd.f32 %v686_v32, %v419_v46 }
 0x108 PF: > { %p687_p11 = scmp.ne.s32.totalorder %s900_s16, 0 }
 0x109   : > { %v439_v50 = vadd.f32 (!%p687_p11), %v1080_v35, %v1084_v39  ;;  %v455_v51 = vmul.f32 (!%p687_p11), %v1084_v39, %v1084_v39  ;;  %v456_v52 = vmul.f32 (!%p687_p11), %v1080_v35, %v1080_v35  ;;  %v457_v53 = vmul.f32 (!%p687_p11), %v1092_v47, %v1092_v47  ;;  %v438_v17 = vld [vmem:[#allocation2] sm:$0x1] (!%p687_p11)  ;;  %v454_v20 = vld [vmem:[#allocation2 + $0x1] sm:$0x1] (!%p687_p11) }
 0x10a   : > { %437 = sbr.rel (%p687_p11) target bundleno = 296 (0x128), region = 44  ;;  %v458_v55 = vmul.f32 (!%p687_p11), %v1088_v43, %v1088_v43  ;;  %v459_v58 = vmul.f32 (!%p687_p11), %v1086_v40, %v1086_v40  ;;  %v460_v61 = vmul.f32 (!%p687_p11), %v1082_v36, %v1082_v36  ;;  %v461_v0 = vmul.f32 (!%p687_p11), %v1094_v48, %v1094_v48 }
 0x10b   : > { %v440_v54 = vadd.f32 (!%p687_p11), %v439_v50, %v1092_v47  ;;  %v463_v56 = vadd.f32 (!%p687_p11), %v456_v52, %v455_v51  ;;  %v462_v3 = vmul.f32 (!%p687_p11), %v1090_v44, %v1090_v44 }
 0x10d   : > { %v441_v57 = vadd.f32 (!%p687_p11), %v440_v54, %v1088_v43  ;;  %v464_v59 = vadd.f32 (!%p687_p11), %v463_v56, %v457_v53 }
 0x10f   : > { %v442_v60 = vadd.f32 (!%p687_p11), %v441_v57, %v1086_v40  ;;  %v465_v62 = vadd.f32 (!%p687_p11), %v464_v59, %v458_v55 }
 0x111   : > { %v443_v63 = vadd.f32 %v442_v60, %v1082_v36  ;;  %v466_v1 = vadd.f32 %v465_v62, %v459_v58 }
 0x113   : > { %v444_v2 = vadd.f32 %v443_v63, %v1094_v48  ;;  %v467_v4 = vadd.f32 %v466_v1, %v460_v61 }
 0x115   : > { %v445_v5 = vadd.f32 %v444_v2, %v1090_v44  ;;  %v468_v6 = vadd.f32 %v467_v4, %v461_v0 }
 0x117   : > { %v446_v7 = vrot.slane %v445_v5, 4  ;;  %v469_v8 = vadd.f32 %v468_v6, %v462_v3 }
 0x119   : > { %v447_v9 = vadd.f32 %v446_v7, %v445_v5  ;;  %v470_v10 = vrot.slane %v469_v8, 4 }
 0x11b   : > { %v448_v11 = vrot.slane %v447_v9, 2  ;;  %v471_v12 = vadd.f32 %v470_v10, %v469_v8 }
 0x11d   : > { %v449_v13 = vadd.f32 %v448_v11, %v447_v9  ;;  %v472_v14 = vrot.slane %v471_v12, 2 }
 0x11f   : > { %v450_v15 = vrot.slane %v449_v13, 1  ;;  %v473_v16 = vadd.f32 %v472_v14, %v471_v12 }
 0x121   : > { %v451_v18 = vadd.f32 %v450_v15, %v449_v13  ;;  %v474_v19 = vrot.slane %v473_v16, 1 }
 0x123   : > { %v452_v21 = vadd.f32 %v451_v18, %v438_v17  ;;  %v475_v22 = vadd.f32 %v474_v19, %v473_v16 }
 0x125   : > { %453 = vst [vmem:[#allocation2] sm:$0x1] %v452_v21  ;;  %v476_v23 = vadd.f32 %v475_v22, %v454_v20 }
 0x127   : > { %477 = vst [vmem:[#allocation2 + $0x1] sm:$0x1] %v476_v23 }
 0x128 PF: > { %p688_p12 = scmp.ne.s32.totalorder %s900_s16, 1 }
 0x129   : > { %v489_v29 = vlaneseq (!%p688_p12)  ;;  %v540_v57 = vld [vmem:[%s1032_s11 + $0x8] sm:$0xff] (!%p688_p12)  ;;  %v541_v58 = vld [vmem:[%s1032_s11 + $0x10] sm:$0xff] (!%p688_p12)  ;;  %v543_v1 = vld [vmem:[%s1032_s11 + $0x20] sm:$0xff] (!%p688_p12) }
 0x12a   : > { %481 = sbr.rel (%p688_p12) target bundleno = 341 (0x155), region = 48  ;;  %v544_v13 = vld [vmem:[%s1032_s11 + $0x28] sm:$0xff] (!%p688_p12)  ;;  %v545_v17 = vld [vmem:[%s1032_s11 + $0x30] sm:$0xff] (!%p688_p12)  ;;  %v546_v21 = vld [vmem:[%s1032_s11 + $0x38] sm:$0xff] (!%p688_p12) }
 0x12b   : > { %v490_v32 = vshrl.u32 (!%p688_p12), %v489_v29, 7 }
 0x12c   : > { %v482_v24 = vld [vmem:[#allocation2] sm:$0x1] (!%p688_p12) }
 0x12d   : > { %v483_v26 = vmul.f32 (!%p688_p12), 0.00390625, %v482_v24  ;;  %v491_v34 = vsub.s32 (!%p688_p12), 0, %v490_v32 }
 0x12e   : > { %v484_v25 = vld [vmem:[#allocation2 + $0x1] sm:$0x1] (!%p688_p12) }
 0x12f   : > { %v485_v27 = vmul.f32 (!%p688_p12), 0.00390625, %v484_v25  ;;  %v486_v28 = vmul.f32 (!%p688_p12), %v483_v26, %v483_v26  ;;  %v492_v37 = vrot.slane (!%p688_p12), %v483_v26, %v491_v34 }
 0x131   : > { %v487_v30 = vsub.f32 %v485_v27, %v486_v28  ;;  %v493_v38 = vsub.f32 %v1084_v39, %v492_v37  ;;  %v494_v41 = vsub.f32 %v1080_v35, %v492_v37  ;;  %v495_v42 = vsub.f32 %v1092_v47, %v492_v37  ;;  %v539_v39 = vld [vmem:[%s1032_s11] sm:$0xff]  ;;  %v542_v47 = vld [vmem:[%s1032_s11 + $0x18] sm:$0xff] }
 0x132   : > { %v496_v45 = vsub.f32 %v1088_v43, %v492_v37  ;;  %v497_v49 = vsub.f32 %v1086_v40, %v492_v37  ;;  %v498_v50 = vsub.f32 %v1082_v36, %v492_v37  ;;  %v499_v51 = vsub.f32 %v1094_v48, %v492_v37 }
 0x133   : > { %v488_v31 = vmax.f32 %v487_v30, 0.0  ;;  %v500_v52 = vsub.f32 %v1090_v44, %v492_v37 }
 0x135   : > { %v501_v33 = vadd.f32 1e-05, %v488_v31 }
 0x137   : > { %864 = vrsqrt.f32 %v501_v33 }
 0x141   : > { %v865_v46 = vpop.eup %864 }
 0x142   : > { %v506_v53 = vrot.slane %v865_v46, %v491_v34 }
 0x144   : > { %v507_v54 = vmul.f32 %v506_v53, %v493_v38  ;;  %v508_v55 = vmul.f32 %v506_v53, %v494_v41  ;;  %v509_v56 = vmul.f32 %v506_v53, %v495_v42  ;;  %v510_v35 = vmul.f32 %v506_v53, %v496_v45 }
 0x145   : > { %v511_v59 = vmul.f32 %v506_v53, %v497_v49  ;;  %v512_v43 = vmul.f32 %v506_v53, %v498_v50  ;;  %v513_v60 = vmul.f32 %v506_v53, %v499_v51  ;;  %v514_v40 = vmul.f32 %v506_v53, %v500_v52 }
 0x146   : > { %vm515_vm0 = vcmp.ge.f32.partialorder %v507_v54, 0.0  ;;  %v523_v36 = vmul.f32 0.2, %v507_v54  ;;  %vm516_vm1 = vcmp.ge.f32.partialorder %v508_v55, 0.0  ;;  %v524_v48 = vmul.f32 0.2, %v508_v55 }
 0x147   : > { %vm517_vm2 = vcmp.ge.f32.partialorder %v509_v56, 0.0  ;;  %v525_v44 = vmul.f32 0.2, %v509_v56  ;;  %vm518_vm3 = vcmp.ge.f32.partialorder %v510_v35, 0.0  ;;  %v526_v61 = vmul.f32 0.2, %v510_v35 }
 0x148   : > { %v531_v62 = vsel %vm515_vm0, %v507_v54, %v523_v36  ;;  %v532_v63 = vsel %vm516_vm1, %v508_v55, %v524_v48  ;;  %vm519_vm4 = vcmp.ge.f32.partialorder %v511_v59, 0.0  ;;  %v527_v0 = vmul.f32 0.2, %v511_v59 }
 0x149   : > { %v547_v2 = vadd.f32 %v539_v39, %v531_v62  ;;  %v548_v3 = vadd.f32 %v540_v57, %v532_v63  ;;  %v533_v4 = vsel %vm517_vm2, %v509_v56, %v525_v44  ;;  %v534_v5 = vsel %vm518_vm3, %v510_v35, %v526_v61 }
 0x14a   : > { %v549_v6 = vadd.f32 %v541_v58, %v533_v4  ;;  %v550_v7 = vadd.f32 %v542_v47, %v534_v5  ;;  %v535_v8 = vsel %vm519_vm4, %v511_v59, %v527_v0  ;;  %vm520_vm5 = vcmp.ge.f32.partialorder %v512_v43, 0.0 }
 0x14b   : > { %v555_v9 = vmax.f32 %v547_v2, 0.0  ;;  %v556_v10 = vmax.f32 %v548_v3, 0.0  ;;  %v551_v11 = vadd.f32 %v543_v1, %v535_v8  ;;  %v528_v12 = vmul.f32 0.2, %v512_v43 }
 0x14c   : > { %v557_v14 = vmax.f32 %v549_v6, 0.0  ;;  %v558_v15 = vmax.f32 %v550_v7, 0.0  ;;  %vm521_vm6 = vcmp.ge.f32.partialorder %v513_v60, 0.0  ;;  %v529_v16 = vmul.f32 0.2, %v513_v60 }
 0x14d   : > { %563 = vst [vmem:[%s1037_s14] sm:$0xff] %v555_v9  ;;  %564 = vst [vmem:[%s1037_s14 + $0x8] sm:$0xff] %v556_v10  ;;  %v559_v18 = vmax.f32 %v551_v11, 0.0  ;;  %v536_v19 = vsel %vm520_vm5, %v512_v43, %v528_v12  ;;  %vm522_vm7 = vcmp.ge.f32.partialorder %v514_v40, 0.0  ;;  %v530_v20 = vmul.f32 0.2, %v514_v40 }
 0x14e   : > { %565 = vst [vmem:[%s1037_s14 + $0x10] sm:$0xff] %v557_v14  ;;  %566 = vst [vmem:[%s1037_s14 + $0x18] sm:$0xff] %v558_v15  ;;  %v552_v22 = vadd.f32 %v544_v13, %v536_v19  ;;  %v537_v23 = vsel %vm521_vm6, %v513_v60, %v529_v16 }
 0x14f   : > { %567 = vst [vmem:[%s1037_s14 + $0x20] sm:$0xff] %v559_v18  ;;  %v553_v24 = vadd.f32 %v545_v17, %v537_v23  ;;  %v538_v25 = vsel %vm522_vm7, %v514_v40, %v530_v20 }
 0x150   : > { %v560_v26 = vmax.f32 %v552_v22, 0.0  ;;  %v554_v27 = vadd.f32 %v546_v21, %v538_v25 }
 0x151   : > { %v561_v28 = vmax.f32 %v553_v24, 0.0 }
 0x152   : > { %568 = vst [vmem:[%s1037_s14 + $0x28] sm:$0xff] %v560_v26  ;;  %v562_v29 = vmax.f32 %v554_v27, 0.0 }
 0x153   : > { %569 = vst [vmem:[%s1037_s14 + $0x30] sm:$0xff] %v561_v28 }
 0x154   : > { %570 = vst [vmem:[%s1037_s14 + $0x38] sm:$0xff] %v562_v29 }
 0x155 PF: > { %s14_s21 = sadd.s32 1, %s920_s21   ;;  %s1175_s15 = smov %s908_s18 }
 0x156   : > { %p11_p13 = scmp.ge.s32.totalorder %s14_s21, 18   ;;  %s1176_s16 = smov %s912_s19 }
 0x157   : > { %s1177_s17 = smov %s916_s20  ;;  %s1178_s18 = smov %s1182_s22 }
 0x158   : > { %s1179_s19 = smov %s1186_s23  ;;  %s1180_s20 = smov %s1190_s24 }
 0x159   :  { %13 = sbr.rel (!%p11_p13) target bundleno = 4 (0x4), region = 81 }

// kernel: bottleneck_in_forward.5
= control target key start
LH: loop header
LB: loop body
LE: loop exit
PB: predicated region body
PF: predicated region fallthrough
CT: control target
= control target key end

     0   :  { %s3000_s12 = smov 0   ;;  %s3002_s13 = smov 0   ;;  %s3821_s0 = inlined_call_operand.vmem [shape: f32[2,4,6,18,128], index: 0, kind: input, shape index: {}]   ;;  %s3822_s1 = inlined_call_operand.vmem [shape: f32[9,128,128], index: 1, kind: input, shape index: {}]   ;;  %s3823_s2 = inlined_call_operand.vmem [shape: f32[1,128], index: 2, kind: input, shape index: {}]   ;;  %s3824_s3 = inlined_call_operand.vmem [shape: f32[2,16,16,128], index: 3, kind: output, shape index: {}]  }
   0x1   :  { %s3004_s14 = smov 0   ;;  %s3006_s15 = smov 0  }
   0x2   :  { %s3008_s16 = smov 0   ;;  %s3010_s17 = smov 0  }
   0x3   :  { %s3012_s18 = smov 0  }
   0x4 LB: > { %s25_s19 = sadd.s32 1, %s2965_s15  ;;  %s28_s20 = sadd.s32 1, %s2969_s16  ;;  %s2977_s18 = sphi %s3012_s18, %s13_s18   ;;  %s2973_s17 = sphi %s3010_s17, %s3831_s17   ;;  %s2969_s16 = sphi %s3008_s16, %s3830_s16   ;;  %s2965_s15 = sphi %s3006_s15, %s3829_s15   ;;  %s2961_s14 = sphi %s3004_s14, %s3828_s14   ;;  %s2957_s13 = sphi %s3002_s13, %s3827_s13   ;;  %s2953_s12 = sphi %s3000_s12, %s3826_s12  }
   0x5   : > { %p26_p0 = scmp.ge.s32.totalorder %s25_s19, 4  ;;  %p1743_p1 = scmp.ge.s32.totalorder %s2977_s18, 1 }
   0x6   : > { %p166_p2 = scmp.lt.s32.totalorder %s2977_s18, 17  ;;  %s32_s21 = sadd.s32 1, %s2973_s17 }
   0x7   : > { %s3833_s19 = smov (%p26_p0, %s25_s19), 0  ;;  %s3835_s20 = smov (!%p26_p0, %s28_s20), %s2969_s16 }
   0x8   : > { %p167_p3 = pnand %p1743_p1, %p166_p2  ;;  %p30_p4 = scmp.ge.s32.totalorder %s3835_s20, 2 }
   0x9   : > { %v1749_v0 = vld [vmem:[%s3822_s1 + $0x80] sm:$0xff] (!%p167_p3)  ;;  %v1750_v1 = vld [vmem:[%s3822_s1 + $0x88] sm:$0xff] (!%p167_p3)  ;;  %p200_p6 = scmp.lt.s32.totalorder (!%p167_p3), %s2961_s14, 1  ;;  %p202_p7 = scmp.lt.s32.totalorder (!%p167_p3), %s2953_s12, 3  ;;  %v1751_v5 = vld [vmem:[%s3822_s1 + $0x90] sm:$0xff] (!%p167_p3)  ;;  %vm268_vm0 = vcmask (!%p167_p3), 1046528  }
   0xa   : > { %s3837_s20 = smov (%p30_p4, %s3835_s20), 0  ;;  %s3839_s21 = smov (!%p30_p4, %s32_s21), %s2973_s17 }
   0xb   : > { %p34_p5 = scmp.ge.s32.totalorder %s3839_s21, 2  ;;  %170 = sbr.rel (%p167_p3) target bundleno = 465 (0x1d1), region = 32  ;;  %v1797_v2 = vld [vmem:[%s3822_s1 + $0x200] sm:$0xff] (!%p167_p3)  ;;  %v2494_v3 = vpack.c.bf16 (!%p167_p3), %v1750_v1, %v1749_v0  ;;  %v1798_v4 = vld [vmem:[%s3822_s1 + $0x208] sm:$0xff] (!%p167_p3)  ;;  %v1752_v6 = vld [vmem:[%s3822_s1 + $0x98] sm:$0xff] (!%p167_p3)  ;;  %vm524_vm1 = vcmask (!%p167_p3), 1045504  }
   0xc   : > { %s209_s7 = smul.u32 (!%p167_p3), %s2953_s12, %s2957_s13  ;;  %v2622_v7 = vpack.c.bf16 (!%p167_p3), %v1798_v4, %v1797_v2  ;;  %v2498_v8 = vpack.c.bf16 (!%p167_p3), %v1752_v6, %v1751_v5  ;;  %v1799_v9 = vld [vmem:[%s3822_s1 + $0x210] sm:$0xff] (!%p167_p3)  ;;  %v1800_v10 = vld [vmem:[%s3822_s1 + $0x218] sm:$0xff] (!%p167_p3)  ;;  %v1753_v11 = vld [vmem:[%s3822_s1 + $0xa0] sm:$0xff] (!%p167_p3)  ;;  %p1512_p9 = scmp.eq.s32.totalorder (!%p167_p3), %s2957_s13, 0 }
   0xd   : > { %s3841_s21 = smov (%p34_p5, %s3839_s21), 0  ;;  %2495 = vmatprep.subr.bf16.mxu1 (!%p167_p3), %v2494_v3  ;;  %v2626_v12 = vpack.c.bf16 (!%p167_p3), %v1800_v10, %v1799_v9  ;;  %v1754_v13 = vld [vmem:[%s3822_s1 + $0xa8] sm:$0xff] (!%p167_p3)  ;;  %v1801_v14 = vld [vmem:[%s3822_s1 + $0x220] sm:$0xff] (!%p167_p3)  ;;  %v1755_v18 = vld [vmem:[%s3822_s1 + $0xb0] sm:$0xff] (!%p167_p3)  ;;  %p1513_p10 = scmp.eq.s32.totalorder (!%p167_p3), %s2953_s12, 0 }
   0xe   : > { %v1802_v15 = vld [vmem:[%s3822_s1 + $0x228] sm:$0xff] (!%p167_p3)  ;;  %2623 = vmatprep.subr.bf16.mxu0 (!%p167_p3), %v2622_v7  ;;  %2497 = vmatpush3.bf16.msra.mxu1 (!%p167_p3), %v2494_v3  ;;  %s1745_s5 = sshll.u32 (!%p167_p3), %s209_s7, 2  ;;  %v2502_v16 = vpack.c.bf16 (!%p167_p3), %v1754_v13, %v1753_v11  ;;  %v1756_v19 = vld [vmem:[%s3822_s1 + $0xb8] sm:$0xff] (!%p167_p3)  ;;  %v1803_v20 = vld [vmem:[%s3822_s1 + $0x230] sm:$0xff] (!%p167_p3) }
   0xf   : > { %2625 = vmatpush3.bf16.msra.mxu0 (!%p167_p3), %v2622_v7  ;;  %2499 = vmatprep.subr.bf16.mxu1 (!%p167_p3), %v2498_v8  ;;  %v2630_v17 = vpack.c.bf16 (!%p167_p3), %v1802_v15, %v1801_v14  ;;  %p213_p8 = scmp.lt.s32.totalorder (!%p167_p3), %s1745_s5, 15  ;;  %v1804_v21 = vld [vmem:[%s3822_s1 + $0x238] sm:$0xff] (!%p167_p3)  ;;  %v2506_v22 = vpack.c.bf16 (!%p167_p3), %v1756_v19, %v1755_v18  ;;  %v1757_v24 = vld [vmem:[%s3822_s1 + $0xc0] sm:$0xff] (!%p167_p3)  ;;  %v1758_v25 = vld [vmem:[%s3822_s1 + $0xc8] sm:$0xff] (!%p167_p3)  ;;  %p3733_p11 = pnand (!%p167_p3), %p1513_p10, %p1512_p9 }
  0x10   : > { %2627 = vmatprep.subr.bf16.mxu0 (!%p167_p3), %v2626_v12  ;;  %v2634_v23 = vpack.c.bf16 (!%p167_p3), %v1804_v21, %v1803_v20  ;;  %v1805_v27 = vld [vmem:[%s3822_s1 + $0x240] sm:$0xff] (!%p167_p3)  ;;  %v1806_v28 = vld [vmem:[%s3822_s1 + $0x248] sm:$0xff] (!%p167_p3)  ;;  %v2510_v34 = vpack.c.bf16 (!%p167_p3), %v1758_v25, %v1757_v24  ;;  %v1759_v35 = vld [vmem:[%s3822_s1 + $0xd0] sm:$0xff] (!%p167_p3) }
  0x11   : > { %v2638_v38 = vpack.c.bf16 (!%p167_p3), %v1806_v28, %v1805_v27  ;;  %v1760_v39 = vld [vmem:[%s3822_s1 + $0xd8] sm:$0xff] (!%p167_p3)  ;;  %v1807_v44 = vld [vmem:[%s3822_s1 + $0x250] sm:$0xff] (!%p167_p3)  ;;  %v1761_v50 = vld [vmem:[%s3822_s1 + $0xe0] sm:$0xff] (!%p167_p3) }
  0x12   : > { %s3843_s14 = smov (!%p200_p6, %s2961_s14), 1  ;;  %2501 = vmatpush3.bf16.msra.mxu1 %v2498_v8  ;;  %s3845_s5 = smov (!%p213_p8, %s1745_s5), 15  ;;  %v1808_v45 = vld [vmem:[%s3822_s1 + $0x258] sm:$0xff]  ;;  %v2514_v48 = vpack.c.bf16 %v1760_v39, %v1759_v35  ;;  %v1762_v51 = vld [vmem:[%s3822_s1 + $0xe8] sm:$0xff]  ;;  %v1809_v53 = vld [vmem:[%s3822_s1 + $0x260] sm:$0xff] }
  0x13   : > { %s203_s30 = scalar_select %p202_p7, %s2953_s12, 3  ;;  %2629 = vmatpush3.bf16.msra.mxu0 %v2626_v12  ;;  %2503 = vmatprep.subr.bf16.mxu1 %v2502_v16  ;;  %v2642_v49 = vpack.c.bf16 %v1808_v45, %v1807_v44  ;;  %v1810_v54 = vld [vmem:[%s3822_s1 + $0x268] sm:$0xff]  ;;  %v2518_v56 = vpack.c.bf16 %v1762_v51, %v1761_v50  ;;  %v1763_v58 = vld [vmem:[%s3822_s1 + $0xf0] sm:$0xff]  ;;  %v1764_v59 = vld [vmem:[%s3822_s1 + $0xf8] sm:$0xff] }
  0x14   : > { %s2863_s4 = smul.u32 72, %s3843_s14  ;;  %2631 = vmatprep.subr.bf16.mxu0 %v2630_v17  ;;  %s1746_s23 = sshll.u32 %s3845_s5, 1  ;;  %v2646_v57 = vpack.c.bf16 %v1810_v54, %v1809_v53  ;;  %v1811_v60 = vld [vmem:[%s3822_s1 + $0x270] sm:$0xff]  ;;  %v1812_v61 = vld [vmem:[%s3822_s1 + $0x278] sm:$0xff]  ;;  %v2522_v62 = vpack.c.bf16 %v1764_v59, %v1763_v58  ;;  %v240_v0 = vld [vmem:[%s3822_s1] sm:$0xff] }
  0x15   : > { %s2862_s6 = smul.u32 18, %s203_s30  ;;  %s1747_s30 = sshll.u32 %s3843_s14, 5  ;;  %v2650_v63 = vpack.c.bf16 %v1812_v61, %v1811_v60  ;;  %v241_v1 = vld [vmem:[%s3822_s1 + $0x8] sm:$0xff]  ;;  %v1813_v3 = vld [vmem:[%s3822_s1 + $0x280] sm:$0xff]  ;;  %v242_v11 = vld [vmem:[%s3822_s1 + $0x10] sm:$0xff] }
  0x16   : > { %2505 = vmatpush3.bf16.msra.mxu1 %v2502_v16  ;;  %v1814_v4 = vld [vmem:[%s3822_s1 + $0x288] sm:$0xff]  ;;  %v2526_v6 = vpack.c.bf16 %v241_v1, %v240_v0  ;;  %v243_v12 = vld [vmem:[%s3822_s1 + $0x18] sm:$0xff]  ;;  %v1815_v14 = vld [vmem:[%s3822_s1 + $0x290] sm:$0xff] }
  0x17   : > { %s206_s25 = sadd.s32 %s2863_s4, %s2862_s6  ;;  %2633 = vmatpush3.bf16.msra.mxu0 %v2630_v17  ;;  %2507 = vmatprep.subr.bf16.mxu1 %v2506_v22  ;;  %v2654_v10 = vpack.c.bf16 %v1814_v4, %v1813_v3  ;;  %v1816_v15 = vld [vmem:[%s3822_s1 + $0x298] sm:$0xff]  ;;  %v2530_v20 = vpack.c.bf16 %v243_v12, %v242_v11  ;;  %v244_v25 = vld [vmem:[%s3822_s1 + $0x20] sm:$0xff]  ;;  %v245_v27 = vld [vmem:[%s3822_s1 + $0x28] sm:$0xff] }
  0x18   : > { %s1744_s26 = sshll.u32 %s206_s25, 3  ;;  %s217_s25 = sadd.s32 %s1747_s30, %s1746_s23  ;;  %2635 = vmatprep.subr.bf16.mxu0 %v2634_v23  ;;  %v2658_v24 = vpack.c.bf16 %v1816_v15, %v1815_v14  ;;  %v247_v44 = vld [vmem:[%s3822_s1 + $0x38] sm:$0xff]  ;;  %v249_v58 = vld [vmem:[%s3822_s1 + $0x48] sm:$0xff]  ;;  %v1821_v59 = vld [vmem:[%s3822_s1 + $0x2c0] sm:$0xff] }
  0x19   : > { %s3110_s29 = scalar_lea.vmem %s3821_s0, %s1744_s26  ;;  %s1748_s27 = sshll.u32 %s217_s25, 3  ;;  %v1822_v60 = vld [vmem:[%s3822_s1 + $0x2c8] sm:$0xff]  ;;  %v250_v4 = vld [vmem:[%s3822_s1 + $0x50] sm:$0xff] }
  0x1a   : > { %v3121_v26 = vld [vmem:[%s3110_s29] sm:$0xff]  ;;  %v3130_v29 = vld [vmem:[%s3110_s29 + $0x8] sm:$0xff]  ;;  %v3135_v32 = vld [vmem:[%s3110_s29 + $0x18] sm:$0xff]  ;;  %s3163_s10 = scalar_lea.vmem %s3824_s3, %s1748_s27  ;;  %2509 = vmatpush3.bf16.msra.mxu1 %v2506_v22  ;;  %v2670_v3 = vpack.c.bf16 %v1822_v60, %v1821_v59 }
  0x1b   : > { %v269_v30 = vrot.slane %v3121_v26, 1  ;;  %v270_v31 = vrot.slane %v3130_v29, 1  ;;  %v3138_v33 = vld [vmem:[%s3110_s29 + $0x20] sm:$0xff]  ;;  %v274_v36 = vrot.slane %v3135_v32, 1  ;;  %v224_v41 = vld [vmem:[%s3110_s29 + $0x10] sm:$0x3]  ;;  %2637 = vmatpush3.bf16.msra.mxu0 %v2634_v23  ;;  %2511 = vmatprep.subr.bf16.mxu1 %v2510_v34 }
  0x1c   : > { %v275_v37 = vrot.slane %v3138_v33, 1  ;;  %v525_v42 = vrot.slane %v3121_v26, 2  ;;  %v526_v43 = vrot.slane %v3130_v29, 2  ;;  %v528_v47 = vrot.slane %v224_v41, 2  ;;  %2639 = vmatprep.subr.bf16.mxu0 %v2638_v38  ;;  %v3208_v2 = vld [vmem:[%s3110_s29 + $0x28] sm:$0x3] }
  0x1d   : > { %v271_v40 = vsel %vm268_vm0, %v269_v30, %v270_v31  ;;  %v272_v5 = vrot.slane %v224_v41, 1  ;;  %v277_v7 = vrot.slane %v3208_v2, 1  ;;  %v3218_v8 = vld [vmem:[%s3110_s29 + $0x30] sm:$0xff]  ;;  %v3221_v9 = vld [vmem:[%s3110_s29 + $0x38] sm:$0xff]  ;;  %v3230_v13 = vld [vmem:[%s3110_s29 + $0x40] sm:$0x3] }
  0x1e   : > { %2130 = vmatprep.mubr.f32.mxu1 %v271_v40  ;;  %v3168_v46 = vsel %vm268_vm0, %v274_v36, %v275_v37  ;;  %v3178_v52 = vsel %vm524_vm1, %v525_v42, %v526_v43  ;;  %v3187_v55 = vsel %vm524_vm1, %v526_v43, %v528_v47  ;;  %2513 = vmatpush3.bf16.msra.mxu1 %v2510_v34  ;;  %v279_v17 = vrot.slane %v3218_v8, 1  ;;  %v3248_v22 = vld [vmem:[%s3110_s29 + $0x48] sm:$0xff]  ;;  %v3251_v23 = vld [vmem:[%s3110_s29 + $0x50] sm:$0xff]  ;;  %v3260_v28 = vld [vmem:[%s3110_s29 + $0x58] sm:$0x3] }
  0x1f   : > { %2306 = vmatprep.mubr.f32.mxu0 %v3168_v46  ;;  %2641 = vmatpush3.bf16.msra.mxu0 %v2638_v38  ;;  %v273_v16 = vsel %vm268_vm0, %v270_v31, %v272_v5  ;;  %v280_v18 = vrot.slane %v3221_v9, 1  ;;  %v278_v19 = vsel %vm268_vm0, %v275_v37, %v277_v7  ;;  %v282_v21 = vrot.slane %v3230_v13, 1  ;;  %v1817_v30 = vld [vmem:[%s3822_s1 + $0x2a0] sm:$0xff]  ;;  %v1818_v31 = vld [vmem:[%s3822_s1 + $0x2a8] sm:$0xff]  ;;  %v246_v43 = vld [vmem:[%s3822_s1 + $0x30] sm:$0xff] }
  0x20   : > { %2515 = vmatprep.subr.bf16.mxu1 %v2514_v48  ;;  %2643 = vmatprep.subr.bf16.mxu0 %v2642_v49  ;;  %v284_v35 = vrot.slane %v3248_v22, 1  ;;  %v285_v36 = vrot.slane %v3251_v23, 1  ;;  %v2534_v37 = vpack.c.bf16 %v245_v27, %v244_v25  ;;  %v287_v39 = vrot.slane %v3260_v28, 1  ;;  %v3278_v40 = vld [vmem:[%s3110_s29 + $0x60] sm:$0xff]  ;;  %v3281_v41 = vld [vmem:[%s3110_s29 + $0x68] sm:$0xff]  ;;  %v1819_v47 = vld [vmem:[%s3822_s1 + $0x2b0] sm:$0xff] }
  0x21   : > { %v3269_v34 = vsel %vm268_vm0, %v279_v17, %v280_v18  ;;  %v3274_v38 = vsel %vm268_vm0, %v280_v18, %v282_v21  ;;  %v2662_v42 = vpack.c.bf16 %v1818_v31, %v1817_v30  ;;  %v3291_v45 = vld [vmem:[%s3110_s29 + $0x70] sm:$0x3]  ;;  %v817_v50 = vrot.slane %v3281_v41, 1  ;;  %v251_v5 = vld [vmem:[%s3822_s1 + $0x58] sm:$0xff]  ;;  %v3355_v14 = vld [vmem:[%s3110_s29 + $0x80] sm:$0xff] }
  0x22   : > { %2517 = vmatpush3.bf16.msra.mxu1 %v2514_v48  ;;  %v1820_v48 = vld [vmem:[%s3822_s1 + $0x2b8] sm:$0xff]  ;;  %v2538_v51 = vpack.c.bf16 %v247_v44, %v246_v43  ;;  %v3307_v53 = vsel %vm268_vm0, %v285_v36, %v287_v39  ;;  %v819_v54 = vrot.slane %v3291_v45, 1  ;;  %v1823_v7 = vld [vmem:[%s3822_s1 + $0x2d0] sm:$0xff]  ;;  %v1361_v17 = vrot.slane %v3355_v14, 2  ;;  %v253_v21 = vld [vmem:[%s3822_s1 + $0x68] sm:$0xff] }
  0x23   : > { %2645 = vmatpush3.bf16.msra.mxu0 %v2642_v49  ;;  %2519 = vmatprep.subr.bf16.mxu1 %v2518_v56  ;;  %v3302_v49 = vsel %vm268_vm0, %v284_v35, %v285_v36  ;;  %v2546_v18 = vpack.c.bf16 %v251_v5, %v250_v4  ;;  %v239_v25 = vld [vmem:[%s3110_s29 + $0x88] sm:$0x3]  ;;  %v1825_v27 = vld [vmem:[%s3822_s1 + $0x2e0] sm:$0xff]  ;;  %v255_v43 = vld [vmem:[%s3822_s1 + $0x78] sm:$0xff]  ;;  %v535_v4 = vrot.slane %v3218_v8, 2  ;;  %v536_v5 = vrot.slane %v3221_v9, 2 }
  0x24   : > { %2647 = vmatprep.subr.bf16.mxu0 %v2646_v57  ;;  %v3332_v1 = vsel %vm268_vm0, %v817_v50, %v819_v54  ;;  %v1826_v30 = vld [vmem:[%s3822_s1 + $0x2e8] sm:$0xff]  ;;  %v1226_v31 = vrot.slane %v239_v25, 1  ;;  %v1363_v36 = vrot.slane %v239_v25, 2  ;;  %v543_v25 = vrot.slane %v3260_v28, 2  ;;  %v1836_v28 = vld [vmem:[%s3822_s1 + $0x338] sm:$0xff] }
  0x25   : > { %v2678_v39 = vpack.c.bf16 %v1826_v30, %v1825_v27  ;;  %v1766_v54 = vld [vmem:[%s3822_s1 + $0x108] sm:$0xff]  ;;  %v1771_v30 = vld [vmem:[%s3822_s1 + $0x130] sm:$0xff] }
  0x26   : > { %2521 = vmatpush3.bf16.msra.mxu1 %v2518_v56  ;;  %v2666_v56 = vpack.c.bf16 %v1820_v48, %v1819_v47  ;;  %v3396_v44 = vsel %vm524_vm1, %v1361_v17, %v1363_v36  ;;  %v1827_v47 = vld [vmem:[%s3822_s1 + $0x2f0] sm:$0xff]  ;;  %v1828_v48 = vld [vmem:[%s3822_s1 + $0x2f8] sm:$0xff] }
  0x27   : > { %2649 = vmatpush3.bf16.msra.mxu0 %v2646_v57  ;;  %2523 = vmatprep.subr.bf16.mxu1 %v2522_v62  ;;  %v248_v57 = vld [vmem:[%s3822_s1 + $0x40] sm:$0xff]  ;;  %v1835_v36 = vld [vmem:[%s3822_s1 + $0x330] sm:$0xff] }
  0x28   : > { %2651 = vmatprep.subr.bf16.mxu0 %v2650_v63  ;;  %v2542_v0 = vpack.c.bf16 %v249_v58, %v248_v57  ;;  %v1830_v57 = vld [vmem:[%s3822_s1 + $0x308] sm:$0xff]  ;;  %v533_v58 = vrot.slane %v3208_v2, 2  ;;  %v1832_v2 = vld [vmem:[%s3822_s1 + $0x318] sm:$0xff] }
  0x2a   : > { %2525 = vmatpush3.bf16.msra.mxu1 %v2522_v62  ;;  %v530_v62 = vrot.slane %v3135_v32, 2 }
  0x2b   : > { %2653 = vmatpush3.bf16.msra.mxu0 %v2650_v63  ;;  %2527 = vmatprep.subr.bf16.mxu1 %v2526_v6  ;;  %v531_v63 = vrot.slane %v3138_v33, 2 }
  0x2c   : > { %2655 = vmatprep.subr.bf16.mxu0 %v2654_v10 }
  0x2d   : > { %2131 = vmatmul.mubr.f32.vlgmr.msra.gmra.mrb[0].mxu1 %v273_v16  ;;  %v3361_v15 = vsel %vm524_vm1, %v530_v62, %v531_v63  ;;  %v1224_v16 = vrot.slane %v3355_v14, 1  ;;  %v1767_v62 = vld [vmem:[%s3822_s1 + $0x110] sm:$0xff] }
  0x2e   : > { %2529 = vmatpush3.bf16.msra.mxu1 %v2526_v6  ;;  %2307 = vmatmul.mubr.f32.vlgmr.msra.gmra.mrb[0].mxu0 %v278_v19  ;;  %v3342_v6 = vld [vmem:[%s3110_s29 + $0x78] sm:$0xff] }
  0x2f   : > { %2657 = vmatpush3.bf16.msra.mxu0 %v2654_v10  ;;  %2531 = vmatprep.subr.bf16.mxu1 %v2530_v20  ;;  %v1824_v10 = vld [vmem:[%s3822_s1 + $0x2d8] sm:$0xff]  ;;  %v1223_v11 = vrot.slane %v3342_v6, 1  ;;  %v1360_v12 = vrot.slane %v3342_v6, 2 }
  0x30   : > { %2659 = vmatprep.subr.bf16.mxu0 %v2658_v24  ;;  %2133 = vmatprep.mubr.f32.mxu1 %v3168_v46  ;;  %v816_v46 = vrot.slane %v3278_v40, 1 }
  0x31   : > { %2309 = vmatprep.mubr.f32.mxu0 %v3269_v34  ;;  %2134 = vmatmul.mubr.f32.gmra.mrb[2].mxu1 %v278_v19  ;;  %v2674_v19 = vpack.c.bf16 %v1824_v10, %v1823_v7  ;;  %v3384_v35 = vsel %vm524_vm1, %v1360_v12, %v1361_v17  ;;  %v3434_v7 = vsel %vm524_vm1, %v531_v63, %v533_v58  ;;  %v1770_v17 = vld [vmem:[%s3822_s1 + $0x128] sm:$0xff]  ;;  %v1833_v63 = vld [vmem:[%s3822_s1 + $0x320] sm:$0xff] }
  0x32   : > { %2533 = vmatpush3.bf16.msra.mxu1 %v2530_v20  ;;  %2310 = vmatmul.mubr.f32.gmra.mrb[2].mxu0 %v3274_v38  ;;  %v3327_v61 = vsel %vm268_vm0, %v816_v46, %v817_v50  ;;  %v252_v20 = vld [vmem:[%s3822_s1 + $0x60] sm:$0xff]  ;;  %v2682_v50 = vpack.c.bf16 %v1828_v48, %v1827_v47  ;;  %v956_v48 = vrot.slane %v3291_v45, 2  ;;  %v1838_v45 = vld [vmem:[%s3822_s1 + $0x348] sm:$0xff] }
  0x33   : > { %2661 = vmatpush3.bf16.msra.mxu0 %v2658_v24  ;;  %2535 = vmatprep.subr.bf16.mxu1 %v2534_v37  ;;  %v3373_v24 = vsel %vm268_vm0, %v1223_v11, %v1224_v16  ;;  %v538_v11 = vrot.slane %v3230_v13, 2  ;;  %v1834_v13 = vld [vmem:[%s3822_s1 + $0x328] sm:$0xff] }
  0x34   : > { %2663 = vmatprep.subr.bf16.mxu0 %v2662_v42  ;;  %2136 = vmatprep.mubr.f32.mxu1 %v3269_v34  ;;  %v2694_v27 = vpack.c.bf16 %v1834_v13, %v1833_v63  ;;  %v1780_v63 = vld [vmem:[%s3822_s1 + $0x178] sm:$0xff]  ;;  %v1843_v13 = vld [vmem:[%s3822_s1 + $0x370] sm:$0xff] }
  0x35   : > { %2312 = vmatprep.mubr.f32.mxu0 %v3302_v49  ;;  %2137 = vmatmul.mubr.f32.gmra.mrb[4].mxu1 %v3274_v38 }
  0x36   : > { %2537 = vmatpush3.bf16.msra.mxu1 %v2534_v37  ;;  %2313 = vmatmul.mubr.f32.gmra.mrb[4].mxu0 %v3307_v53  ;;  %v3387_v37 = vsel %vm268_vm0, %v1224_v16, %v1226_v31  ;;  %v1769_v16 = vld [vmem:[%s3822_s1 + $0x120] sm:$0xff]  ;;  %v1772_v31 = vld [vmem:[%s3822_s1 + $0x138] sm:$0xff] }
  0x37   : > { %2665 = vmatpush3.bf16.msra.mxu0 %v2662_v42  ;;  %2539 = vmatprep.subr.bf16.mxu1 %v2538_v51  ;;  %v254_v42 = vld [vmem:[%s3822_s1 + $0x70] sm:$0xff] }
  0x38   : > { %2667 = vmatprep.subr.bf16.mxu0 %v2666_v56  ;;  %2139 = vmatprep.mubr.f32.mxu1 %v3302_v49  ;;  %v2554_v46 = vpack.c.bf16 %v255_v43, %v254_v42  ;;  %v954_v42 = vrot.slane %v3281_v41, 2  ;;  %v2570_v43 = vpack.c.bf16 %v1772_v31, %v1771_v30  ;;  %v1845_v30 = vld [vmem:[%s3822_s1 + $0x380] sm:$0xff]  ;;  %v1846_v31 = vld [vmem:[%s3822_s1 + $0x388] sm:$0xff] }
  0x39   : > { %2315 = vmatprep.mubr.f32.mxu0 %v3327_v61  ;;  %2140 = vmatmul.mubr.f32.gmra.mrb[6].mxu1 %v3307_v53 }
  0x3a   : > { %2541 = vmatpush3.bf16.msra.mxu1 %v2538_v51  ;;  %2316 = vmatmul.mubr.f32.gmra.mrb[6].mxu0 %v3332_v1  ;;  %v1765_v51 = vld [vmem:[%s3822_s1 + $0x100] sm:$0xff]  ;;  %v3505_v58 = vsel %vm524_vm1, %v954_v42, %v956_v48  ;;  %v1848_v48 = vld [vmem:[%s3822_s1 + $0x398] sm:$0xff] }
  0x3b   : > { %2669 = vmatpush3.bf16.msra.mxu0 %v2666_v56  ;;  %2543 = vmatprep.subr.bf16.mxu1 %v2542_v0  ;;  %v1829_v56 = vld [vmem:[%s3822_s1 + $0x300] sm:$0xff]  ;;  %v2558_v59 = vpack.c.bf16 %v1766_v54, %v1765_v51  ;;  %v1774_v51 = vld [vmem:[%s3822_s1 + $0x148] sm:$0xff] }
  0x3c   : > { %2671 = vmatprep.subr.bf16.mxu0 %v2670_v3  ;;  %2174 = vmatprep.mubr.f32.mxu1 %v3121_v26  ;;  %v2550_v26 = vpack.c.bf16 %v253_v21, %v252_v20  ;;  %v2686_v60 = vpack.c.bf16 %v1830_v57, %v1829_v56  ;;  %v541_v20 = vrot.slane %v3251_v23, 2  ;;  %v3457_v21 = vsel %vm524_vm1, %v536_v5, %v538_v11  ;;  %v1837_v54 = vld [vmem:[%s3822_s1 + $0x340] sm:$0xff] }
  0x3d   : > { %2350 = vmatprep.mubr.f32.mxu0 %v3361_v15  ;;  %v1841_v11 = vld [vmem:[%s3822_s1 + $0x360] sm:$0xff] }
  0x3e   : > { %2545 = vmatpush3.bf16.msra.mxu1 %v2542_v0  ;;  %v1768_v0 = vld [vmem:[%s3822_s1 + $0x118] sm:$0xff]  ;;  %v3482_v47 = vsel %vm524_vm1, %v541_v20, %v543_v25  ;;  %v1781_v25 = vld [vmem:[%s3822_s1 + $0x180] sm:$0xff] }
  0x3f   : > { %2673 = vmatpush3.bf16.msra.mxu0 %v2670_v3  ;;  %2547 = vmatprep.subr.bf16.mxu1 %v2546_v18  ;;  %v1831_v3 = vld [vmem:[%s3822_s1 + $0x310] sm:$0xff]  ;;  %v2562_v10 = vpack.c.bf16 %v1768_v0, %v1767_v62  ;;  %v1776_v62 = vld [vmem:[%s3822_s1 + $0x158] sm:$0xff] }
  0x40   : > { %2675 = vmatprep.subr.bf16.mxu0 %v2674_v19  ;;  %v2690_v12 = vpack.c.bf16 %v1832_v2, %v1831_v3  ;;  %v1839_v0 = vld [vmem:[%s3822_s1 + $0x350] sm:$0xff]  ;;  %v1840_v3 = vld [vmem:[%s3822_s1 + $0x358] sm:$0xff] }
  0x42   : > { %2549 = vmatpush3.bf16.msra.mxu1 %v2546_v18  ;;  %v3452_v18 = vsel %vm524_vm1, %v535_v4, %v536_v5  ;;  %v2706_v4 = vpack.c.bf16 %v1840_v3, %v1839_v0  ;;  %v1777_v5 = vld [vmem:[%s3822_s1 + $0x160] sm:$0xff]  ;;  %v1851_v0 = vld [vmem:[%s3822_s1 + $0x3b0] sm:$0xff]  ;;  %v1852_v3 = vld [vmem:[%s3822_s1 + $0x3b8] sm:$0xff] }
  0x43   : > { %2677 = vmatpush3.bf16.msra.mxu0 %v2674_v19  ;;  %2551 = vmatprep.subr.bf16.mxu1 %v2550_v26  ;;  %v540_v19 = vrot.slane %v3248_v22, 2 }
  0x44   : > { %2679 = vmatprep.subr.bf16.mxu0 %v2678_v39 }
  0x46   : > { %2553 = vmatpush3.bf16.msra.mxu1 %v2550_v26  ;;  %v3477_v26 = vsel %vm524_vm1, %v540_v19, %v541_v20  ;;  %v1844_v19 = vld [vmem:[%s3822_s1 + $0x378] sm:$0xff] }
  0x47   : > { %2681 = vmatpush3.bf16.msra.mxu0 %v2678_v39  ;;  %2555 = vmatprep.subr.bf16.mxu1 %v2554_v46  ;;  %v953_v39 = vrot.slane %v3278_v40, 2 }
  0x48   : > { %2683 = vmatprep.subr.bf16.mxu0 %v2682_v50 }
  0x49   : > { %v3502_v56 = vsel %vm524_vm1, %v953_v39, %v954_v42  ;;  %v1783_v39 = vld [vmem:[%s3822_s1 + $0x190] sm:$0xff]  ;;  %v1784_v42 = vld [vmem:[%s3822_s1 + $0x198] sm:$0xff] }
  0x4a   : > { %2557 = vmatpush3.bf16.msra.mxu1 %v2554_v46  ;;  %v2698_v46 = vpack.c.bf16 %v1836_v28, %v1835_v36  ;;  %v2718_v28 = vpack.c.bf16 %v1846_v31, %v1845_v30  ;;  %v1796_v30 = vld [vmem:[%s3822_s1 + $0x1f8] sm:$0xff]  ;;  %v1859_v31 = vld [vmem:[%s3822_s1 + $0x3f0] sm:$0xff] }
  0x4b   : > { %2685 = vmatpush3.bf16.msra.mxu0 %v2682_v50  ;;  %2559 = vmatprep.subr.bf16.mxu1 %v2558_v59  ;;  %v1773_v50 = vld [vmem:[%s3822_s1 + $0x140] sm:$0xff] }
  0x4c   : > { %2687 = vmatprep.subr.bf16.mxu0 %v2686_v60  ;;  %v2574_v57 = vpack.c.bf16 %v1774_v51, %v1773_v50  ;;  %v1785_v51 = vld [vmem:[%s3822_s1 + $0x1a0] sm:$0xff] }
  0x4d   : > { %2175 = vmatmul.mubr.f32.vlgmr.msra.gmra.mrb[0].mxu1 %v3130_v29  ;;  %v2566_v29 = vpack.c.bf16 %v1770_v17, %v1769_v16 }
  0x4e   : > { %2561 = vmatpush3.bf16.msra.mxu1 %v2558_v59  ;;  %2351 = vmatmul.mubr.f32.vlgmr.msra.gmra.mrb[0].mxu0 %v3434_v7  ;;  %v2702_v59 = vpack.c.bf16 %v1838_v45, %v1837_v54  ;;  %v1786_v54 = vld [vmem:[%s3822_s1 + $0x1a8] sm:$0xff]  ;;  %v1849_v45 = vld [vmem:[%s3822_s1 + $0x3a0] sm:$0xff] }
  0x4f   : > { %2689 = vmatpush3.bf16.msra.mxu0 %v2686_v60  ;;  %2563 = vmatprep.subr.bf16.mxu1 %v2562_v10  ;;  %v1775_v60 = vld [vmem:[%s3822_s1 + $0x150] sm:$0xff] }
  0x50   : > { %2691 = vmatprep.subr.bf16.mxu0 %v2690_v12  ;;  %2177 = vmatprep.mubr.f32.mxu1 %v3135_v32  ;;  %v2578_v2 = vpack.c.bf16 %v1776_v62, %v1775_v60  ;;  %v1788_v62 = vld [vmem:[%s3822_s1 + $0x1b8] sm:$0xff] }
  0x51   : > { %2353 = vmatprep.mubr.f32.mxu0 %v3452_v18  ;;  %2178 = vmatmul.mubr.f32.gmra.mrb[2].mxu1 %v3138_v33 }
  0x52   : > { %2565 = vmatpush3.bf16.msra.mxu1 %v2562_v10  ;;  %2354 = vmatmul.mubr.f32.gmra.mrb[2].mxu0 %v3457_v21  ;;  %v1778_v10 = vld [vmem:[%s3822_s1 + $0x168] sm:$0xff] }
  0x53   : > { %2693 = vmatpush3.bf16.msra.mxu0 %v2690_v12  ;;  %2567 = vmatprep.subr.bf16.mxu1 %v2566_v29  ;;  %v1842_v12 = vld [vmem:[%s3822_s1 + $0x368] sm:$0xff]  ;;  %v2582_v16 = vpack.c.bf16 %v1778_v10, %v1777_v5 }
  0x54   : > { %2695 = vmatprep.subr.bf16.mxu0 %v2694_v27  ;;  %2180 = vmatprep.mubr.f32.mxu1 %v3218_v8  ;;  %v2710_v17 = vpack.c.bf16 %v1842_v12, %v1841_v11  ;;  %v1790_v5 = vld [vmem:[%s3822_s1 + $0x1c8] sm:$0xff] }
  0x55   : > { %2356 = vmatprep.mubr.f32.mxu0 %v3477_v26  ;;  %2181 = vmatmul.mubr.f32.gmra.mrb[4].mxu1 %v3221_v9  ;;  %v1854_v10 = vld [vmem:[%s3822_s1 + $0x3c8] sm:$0xff] }
  0x56   : > { %2569 = vmatpush3.bf16.msra.mxu1 %v2566_v29  ;;  %2357 = vmatmul.mubr.f32.gmra.mrb[4].mxu0 %v3482_v47  ;;  %v2714_v29 = vpack.c.bf16 %v1844_v19, %v1843_v13 }
  0x57   : > { %2697 = vmatpush3.bf16.msra.mxu0 %v2694_v27  ;;  %2571 = vmatprep.subr.bf16.mxu1 %v2570_v43  ;;  %v1782_v27 = vld [vmem:[%s3822_s1 + $0x188] sm:$0xff] }
  0x58   : > { %2699 = vmatprep.subr.bf16.mxu0 %v2698_v46  ;;  %2183 = vmatprep.mubr.f32.mxu1 %v3248_v22  ;;  %v2590_v36 = vpack.c.bf16 %v1782_v27, %v1781_v25 }
  0x59   : > { %2359 = vmatprep.mubr.f32.mxu0 %v3502_v56  ;;  %2184 = vmatmul.mubr.f32.gmra.mrb[6].mxu1 %v3251_v23 }
  0x5a   : > { %2573 = vmatpush3.bf16.msra.mxu1 %v2570_v43  ;;  %2360 = vmatmul.mubr.f32.gmra.mrb[6].mxu0 %v3505_v58  ;;  %v1847_v43 = vld [vmem:[%s3822_s1 + $0x390] sm:$0xff] }
  0x5b   : > { %2701 = vmatpush3.bf16.msra.mxu0 %v2698_v46  ;;  %2575 = vmatprep.subr.bf16.mxu1 %v2574_v57  ;;  %v2594_v46 = vpack.c.bf16 %v1784_v42, %v1783_v39  ;;  %v2722_v50 = vpack.c.bf16 %v1848_v48, %v1847_v43  ;;  %v1861_v39 = vld [vmem:[%s3822_s1 + $0x400] sm:$0xff]  ;;  %v1862_v42 = vld [vmem:[%s3822_s1 + $0x408] sm:$0xff]  ;;  %v1863_v48 = vld [vmem:[%s3822_s1 + $0x410] sm:$0xff] }
  0x5c   : > { %2703 = vmatprep.subr.bf16.mxu0 %v2702_v59  ;;  %2218 = vmatprep.mubr.f32.mxu1 %v3178_v52  ;;  %v1779_v52 = vld [vmem:[%s3822_s1 + $0x170] sm:$0xff]  ;;  %v2750_v43 = vpack.c.bf16 %v1862_v42, %v1861_v39  ;;  %v2979_v42 = vmov (!%p3733_p11), 0.0  }
  0x5d   : > { %2394 = vmatprep.mubr.f32.mxu0 %v3218_v8  ;;  %v2586_v20 = vpack.c.bf16 %v1780_v63, %v1779_v52  ;;  %v1855_v52 = vld [vmem:[%s3822_s1 + $0x3d0] sm:$0xff]  ;;  %v1856_v63 = vld [vmem:[%s3822_s1 + $0x3d8] sm:$0xff]  ;;  %1518 = vst [vmem:[#allocation2] sm:$0xff] (!%p3733_p11), %v2979_v42 }
  0x5e   : > { %2577 = vmatpush3.bf16.msra.mxu1 %v2574_v57  ;;  %v1850_v57 = vld [vmem:[%s3822_s1 + $0x3a8] sm:$0xff]  ;;  %v2738_v19 = vpack.c.bf16 %v1856_v63, %v1855_v52 }
  0x5f   : > { %2705 = vmatpush3.bf16.msra.mxu0 %v2702_v59  ;;  %2579 = vmatprep.subr.bf16.mxu1 %v2578_v2  ;;  %v2598_v59 = vpack.c.bf16 %v1786_v54, %v1785_v51  ;;  %v2726_v60 = vpack.c.bf16 %v1850_v57, %v1849_v45  ;;  %v1865_v51 = vld [vmem:[%s3822_s1 + $0x420] sm:$0xff]  ;;  %v1866_v54 = vld [vmem:[%s3822_s1 + $0x428] sm:$0xff]  ;;  %v1868_v57 = vld [vmem:[%s3822_s1 + $0x438] sm:$0xff] }
  0x60   : > { %2707 = vmatprep.subr.bf16.mxu0 %v2706_v4  ;;  %v2758_v45 = vpack.c.bf16 %v1866_v54, %v1865_v51 }
  0x62   : > { %2581 = vmatpush3.bf16.msra.mxu1 %v2578_v2 }
  0x63   : > { %2709 = vmatpush3.bf16.msra.mxu0 %v2706_v4  ;;  %2583 = vmatprep.subr.bf16.mxu1 %v2582_v16  ;;  %v1789_v4 = vld [vmem:[%s3822_s1 + $0x1c0] sm:$0xff] }
  0x64   : > { %2711 = vmatprep.subr.bf16.mxu0 %v2710_v17  ;;  %v2606_v11 = vpack.c.bf16 %v1790_v5, %v1789_v4  ;;  %v1877_v4 = vld [vmem:[%s3823_s2] ss:$0 sm:$0xff] }
  0x66   : > { %2585 = vmatpush3.bf16.msra.mxu1 %v2582_v16  ;;  %v1791_v16 = vld [vmem:[%s3822_s1 + $0x1d0] sm:$0xff] }
  0x67   : > { %2713 = vmatpush3.bf16.msra.mxu0 %v2710_v17  ;;  %2587 = vmatprep.subr.bf16.mxu1 %v2586_v20  ;;  %v1792_v17 = vld [vmem:[%s3822_s1 + $0x1d8] sm:$0xff] }
  0x68   : > { %2715 = vmatprep.subr.bf16.mxu0 %v2714_v29  ;;  %v2610_v13 = vpack.c.bf16 %v1792_v17, %v1791_v16 }
  0x6a   : > { %2589 = vmatpush3.bf16.msra.mxu1 %v2586_v20  ;;  %v1793_v20 = vld [vmem:[%s3822_s1 + $0x1e0] sm:$0xff] }
  0x6b   : > { %2717 = vmatpush3.bf16.msra.mxu0 %v2714_v29  ;;  %2591 = vmatprep.subr.bf16.mxu1 %v2590_v36  ;;  %v1794_v29 = vld [vmem:[%s3822_s1 + $0x1e8] sm:$0xff] }
  0x6c   : > { %2719 = vmatprep.subr.bf16.mxu0 %v2718_v28  ;;  %v2614_v25 = vpack.c.bf16 %v1794_v29, %v1793_v20 }
  0x6d   : > { %2219 = vmatmul.mubr.f32.vlgmr.msra.gmra.mrb[0].mxu1 %v3187_v55  ;;  %v1787_v55 = vld [vmem:[%s3822_s1 + $0x1b0] sm:$0xff] }
  0x6e   : > { %2593 = vmatpush3.bf16.msra.mxu1 %v2590_v36  ;;  %2395 = vmatmul.mubr.f32.vlgmr.msra.gmra.mrb[0].mxu0 %v3221_v9  ;;  %v2602_v2 = vpack.c.bf16 %v1788_v62, %v1787_v55 }
  0x6f   : > { %2721 = vmatpush3.bf16.msra.mxu0 %v2718_v28  ;;  %2595 = vmatprep.subr.bf16.mxu1 %v2594_v46 }
  0x70   : > { %2723 = vmatprep.subr.bf16.mxu0 %v2722_v50  ;;  %2221 = vmatprep.mubr.f32.mxu1 %v3361_v15  ;;  %v2730_v15 = vpack.c.bf16 %v1852_v3, %v1851_v0 }
  0x71   : > { %2397 = vmatprep.mubr.f32.mxu0 %v3248_v22  ;;  %2222 = vmatmul.mubr.f32.gmra.mrb[2].mxu1 %v3434_v7  ;;  %v1853_v7 = vld [vmem:[%s3822_s1 + $0x3c0] sm:$0xff] }
  0x72   : > { %2597 = vmatpush3.bf16.msra.mxu1 %v2594_v46  ;;  %2398 = vmatmul.mubr.f32.gmra.mrb[2].mxu0 %v3251_v23  ;;  %v2734_v12 = vpack.c.bf16 %v1854_v10, %v1853_v7  ;;  %v1864_v46 = vld [vmem:[%s3822_s1 + $0x418] sm:$0xff] }
  0x73   : > { %2725 = vmatpush3.bf16.msra.mxu0 %v2722_v50  ;;  %2599 = vmatprep.subr.bf16.mxu1 %v2598_v59  ;;  %v2754_v50 = vpack.c.bf16 %v1864_v46, %v1863_v48 }
  0x74   : > { %2727 = vmatprep.subr.bf16.mxu0 %v2726_v60  ;;  %2224 = vmatprep.mubr.f32.mxu1 %v3452_v18 }
  0x75   : > { %2400 = vmatprep.mubr.f32.mxu0 %v3278_v40  ;;  %2225 = vmatmul.mubr.f32.gmra.mrb[4].mxu1 %v3457_v21 }
  0x76   : > { %2601 = vmatpush3.bf16.msra.mxu1 %v2598_v59  ;;  %2401 = vmatmul.mubr.f32.gmra.mrb[4].mxu0 %v3281_v41 }
  0x77   : > { %2729 = vmatpush3.bf16.msra.mxu0 %v2726_v60  ;;  %2603 = vmatprep.subr.bf16.mxu1 %v2602_v2 }
  0x78   : > { %2731 = vmatprep.subr.bf16.mxu0 %v2730_v15  ;;  %2227 = vmatprep.mubr.f32.mxu1 %v3477_v26 }
  0x79   : > { %2403 = vmatprep.mubr.f32.mxu0 %v3342_v6  ;;  %2228 = vmatmul.mubr.f32.gmra.mrb[6].mxu1 %v3482_v47  ;;  %v1857_v6 = vld [vmem:[%s3822_s1 + $0x3e0] sm:$0xff] }
  0x7a   : > { %2605 = vmatpush3.bf16.msra.mxu1 %v2602_v2  ;;  %2404 = vmatmul.mubr.f32.gmra.mrb[6].mxu0 %v3355_v14  ;;  %v1858_v14 = vld [vmem:[%s3822_s1 + $0x3e8] sm:$0xff] }
  0x7b   : > { %2733 = vmatpush3.bf16.msra.mxu0 %v2730_v15  ;;  %2607 = vmatprep.subr.bf16.mxu1 %v2606_v11  ;;  %v2742_v27 = vpack.c.bf16 %v1858_v14, %v1857_v6 }
  0x7c   : > { %2735 = vmatprep.subr.bf16.mxu0 %v2734_v12  ;;  %2262 = vmatprep.mubr.f32.mxu1 %v3135_v32  ;;  %v1795_v32 = vld [vmem:[%s3822_s1 + $0x1f0] sm:$0xff] }
  0x7d   : > { %2438 = vmatprep.mubr.f32.mxu0 %v3269_v34  ;;  %v1860_v34 = vld [vmem:[%s3822_s1 + $0x3f8] sm:$0xff]  ;;  %v2618_v36 = vpack.c.bf16 %v1796_v30, %v1795_v32 }
  0x7e   : > { %2609 = vmatpush3.bf16.msra.mxu1 %v2606_v11  ;;  %v2746_v28 = vpack.c.bf16 %v1860_v34, %v1859_v31 }
  0x7f   : > { %2737 = vmatpush3.bf16.msra.mxu0 %v2734_v12  ;;  %2611 = vmatprep.subr.bf16.mxu1 %v2610_v13 }
  0x80   : > { %2739 = vmatprep.subr.bf16.mxu0 %v2738_v19 }
  0x82   : > { %2613 = vmatpush3.bf16.msra.mxu1 %v2610_v13 }
  0x83   : > { %2741 = vmatpush3.bf16.msra.mxu0 %v2738_v19  ;;  %2615 = vmatprep.subr.bf16.mxu1 %v2614_v25 }
  0x84   : > { %2743 = vmatprep.subr.bf16.mxu0 %v2742_v27 }
  0x86   : > { %2617 = vmatpush3.bf16.msra.mxu1 %v2614_v25 }
  0x87   : > { %2745 = vmatpush3.bf16.msra.mxu0 %v2742_v27  ;;  %2619 = vmatprep.subr.bf16.mxu1 %v2618_v36 }
  0x88   : > { %2747 = vmatprep.subr.bf16.mxu0 %v2746_v28 }
  0x8a   : > { %2621 = vmatpush3.bf16.msra.mxu1 %v2618_v36 }
  0x8b   : > { %2749 = vmatpush3.bf16.msra.mxu0 %v2746_v28  ;;  %2782 = vmatprep.subr.bf16.mxu1 %v2750_v43 }
  0x8c   : > { %2751 = vmatprep.subr.bf16.mxu0 %v2750_v43 }
  0x8d   : > { %2263 = vmatmul.mubr.f32.vlgmr.msra.gmra.mrb[0].mxu1 %v3138_v33  ;;  %v1867_v33 = vld [vmem:[%s3822_s1 + $0x430] sm:$0xff] }
  0x8e   : > { %2439 = vmatmul.mubr.f32.vlgmr.msra.gmra.mrb[0].mxu0 %v3274_v38  ;;  %2790 = vmatpush3.bf16.msra.mxu1 %v2750_v43  ;;  %v1870_v38 = vld [vmem:[%s3822_s1 + $0x448] sm:$0xff] }
  0x8f   : > { %2753 = vmatpush3.bf16.msra.mxu0 %v2750_v43  ;;  %2265 = vmatprep.mubr.f32.mxu1 %v3218_v8  ;;  %v2762_v8 = vpack.c.bf16 %v1868_v57, %v1867_v33 }
  0x90   : > { %2441 = vmatprep.mubr.f32.mxu0 %v3302_v49  ;;  %2755 = vmatprep.subr.bf16.mxu0 %v2754_v50  ;;  %v1871_v49 = vld [vmem:[%s3822_s1 + $0x450] sm:$0xff] }
  0x91   : > { %2266 = vmatmul.mubr.f32.gmra.mrb[2].mxu1 %v3221_v9  ;;  %2783 = vmatprep.subr.bf16.mxu1 %v2754_v50  ;;  %v1869_v9 = vld [vmem:[%s3822_s1 + $0x440] sm:$0xff] }
  0x92   : > { %2442 = vmatmul.mubr.f32.gmra.mrb[2].mxu0 %v3307_v53  ;;  %2791 = vmatpush3.bf16.msra.mxu1 %v2754_v50  ;;  %v1872_v53 = vld [vmem:[%s3822_s1 + $0x458] sm:$0xff] }
  0x93   : > { %2757 = vmatpush3.bf16.msra.mxu0 %v2754_v50  ;;  %2268 = vmatprep.mubr.f32.mxu1 %v3248_v22  ;;  %v2766_v22 = vpack.c.bf16 %v1870_v38, %v1869_v9 }
  0x94   : > { %2444 = vmatprep.mubr.f32.mxu0 %v3327_v61  ;;  %2759 = vmatprep.subr.bf16.mxu0 %v2758_v45  ;;  %v1874_v61 = vld [vmem:[%s3822_s1 + $0x468] sm:$0xff] }
  0x95   : > { %2269 = vmatmul.mubr.f32.gmra.mrb[4].mxu1 %v3251_v23  ;;  %2784 = vmatprep.subr.bf16.mxu1 %v2758_v45  ;;  %v2770_v23 = vpack.c.bf16 %v1872_v53, %v1871_v49 }
  0x96   : > { %2445 = vmatmul.mubr.f32.gmra.mrb[4].mxu0 %v3332_v1  ;;  %2792 = vmatpush3.bf16.msra.mxu1 %v2758_v45  ;;  %v1875_v1 = vld [vmem:[%s3822_s1 + $0x470] sm:$0xff] }
  0x97   : > { %2761 = vmatpush3.bf16.msra.mxu0 %v2758_v45  ;;  %2271 = vmatprep.mubr.f32.mxu1 %v3278_v40  ;;  %v1873_v40 = vld [vmem:[%s3822_s1 + $0x460] sm:$0xff] }
  0x98   : > { %2447 = vmatprep.mubr.f32.mxu0 %v3373_v24  ;;  %2763 = vmatprep.subr.bf16.mxu0 %v2762_v8  ;;  %v1876_v24 = vld [vmem:[%s3822_s1 + $0x478] sm:$0xff] }
  0x99   : > { %2272 = vmatmul.mubr.f32.gmra.mrb[6].mxu1 %v3281_v41  ;;  %2785 = vmatprep.subr.bf16.mxu1 %v2762_v8  ;;  %v2774_v41 = vpack.c.bf16 %v1874_v61, %v1873_v40 }
  0x9a   : > { %2448 = vmatmul.mubr.f32.gmra.mrb[6].mxu0 %v3387_v37  ;;  %2793 = vmatpush3.bf16.msra.mxu1 %v2762_v8  ;;  %v2778_v37 = vpack.c.bf16 %v1876_v24, %v1875_v1 }
  0x9b   : > { %2765 = vmatpush3.bf16.msra.mxu0 %v2762_v8  ;;  %2786 = vmatprep.subr.bf16.mxu1 %v2766_v22 }
  0x9c   : > { %2767 = vmatprep.subr.bf16.mxu0 %v2766_v22  ;;  %2482 = vmatprep.mubr.f32.mxu0 %v3452_v18 }
  0x9d   : > { %2488 = vmatprep.mubr.f32.mxu1 %v3502_v56 }
  0x9e   : > { %2794 = vmatpush3.bf16.msra.mxu1 %v2766_v22 }
  0x9f   : > { %2769 = vmatpush3.bf16.msra.mxu0 %v2766_v22  ;;  %2787 = vmatprep.subr.bf16.mxu1 %v2770_v23 }
  0xa0   : > { %2771 = vmatprep.subr.bf16.mxu0 %v2770_v23 }
  0xa2   : > { %2795 = vmatpush3.bf16.msra.mxu1 %v2770_v23 }
  0xa3   : > { %2773 = vmatpush3.bf16.msra.mxu0 %v2770_v23  ;;  %2788 = vmatprep.subr.bf16.mxu1 %v2774_v41 }
  0xa4   : > { %2775 = vmatprep.subr.bf16.mxu0 %v2774_v41 }
  0xa6   : > { %2796 = vmatpush3.bf16.msra.mxu1 %v2774_v41 }
  0xa7   : > { %2777 = vmatpush3.bf16.msra.mxu0 %v2774_v41  ;;  %2789 = vmatprep.subr.bf16.mxu1 %v2778_v37 }
  0xa8   : > { %2779 = vmatprep.subr.bf16.mxu0 %v2778_v37 }
  0xaa   : > { %2797 = vmatpush3.bf16.msra.mxu1 %v2778_v37 }
  0xab   : > { %2781 = vmatpush3.bf16.msra.mxu0 %v2778_v37 }
  0xad   : > { %2489 = vmatmul.mubr.f32.vlgmr.msra.gmra.mrb[8].mxu1 %v3505_v58 }
  0xae   : > { %2483 = vmatmul.mubr.f32.vlgmr.msra.gmra.mrb[0].mxu0 %v3457_v21  ;;  %2491 = vmatprep.mubr.f32.mxu1 %v3384_v35 }
  0xaf   : > { %2485 = vmatprep.mubr.f32.mxu0 %v3477_v26 }
  0xb1   : > { %2492 = vmatmul.mubr.f32.gmra.mrb[10].mxu1 %v3396_v44 }
  0xb2   : > { %2486 = vmatmul.mubr.f32.gmra.mrb[2].mxu0 %v3482_v47 }
 0x160   : > { %v2264_v18 = vpop.f32.mrb[0].mxu1 }
 0x161   : > { %v766_v56 = vpop.f32.mrb[1].mxu1 }
 0x164   : > { %v2267_v59 = vpop.f32.mrb[2].mxu1 }
 0x165   : > { %v776_v58 = vpop.f32.mrb[3].mxu1 }
 0x168   : > { %v2270_v60 = vpop.f32.mrb[4].mxu1 }
 0x169   : > { %v2446_v21 = vpop.f32.mrb[4].mxu0  ;;  %v786_v55 = vpop.f32.mrb[5].mxu1 }
 0x16a   : > { %v2802_v35 = vadd.f32 %v2446_v21, %v2270_v60  ;;  %v1333_v62 = vpop.f32.mrb[5].mxu0 }
 0x16b   : > { %v2804_v26 = vadd.f32 %v1333_v62, %v786_v55 }
 0x16c   : > { %v2273_v0 = vpop.f32.mrb[6].mxu1 }
 0x16d   : > { %v2449_v44 = vpop.f32.mrb[6].mxu0  ;;  %v796_v3 = vpop.f32.mrb[7].mxu1 }
 0x16e   : > { %v2806_v47 = vadd.f32 %v2449_v44, %v2273_v0  ;;  %v1343_v2 = vpop.f32.mrb[7].mxu0 }
 0x16f   : > { %v2808_v15 = vadd.f32 %v1343_v2, %v796_v3 }
 0x180   : > { %v2490_v5 = vpop.f32.mrb[8].mxu1 }
 0x181   : > { %v2484_v7 = vpop.f32.mrb[0].mxu0  ;;  %v2803_v10 = vadd.f32 %v2802_v35, %v2490_v5  ;;  %v1470_v11 = vpop.f32.mrb[9].mxu1 }
 0x182   : > { %v2798_v12 = vadd.f32 %v2484_v7, %v2264_v18  ;;  %v1450_v16 = vpop.f32.mrb[1].mxu0  ;;  %v2805_v17 = vadd.f32 %v2804_v26, %v1470_v11 }
 0x183   : > { %v3740_v52 = vadd.f32 %v2803_v10, %v1877_v4  ;;  %v2799_v63 = vadd.f32 %v1450_v16, %v766_v56  ;;  %1517 = sbr.rel (%p3733_p11) target bundleno = 394 (0x18a), region = 36 }
 0x184   : > { %v3742_v13 = vadd.f32 %v2798_v12, %v1877_v4  ;;  %v3744_v19 = vadd.f32 %v2805_v17, %v1877_v4  ;;  %v2493_v20 = vpop.f32.mrb[10].mxu1 }
 0x185   : > { %v3746_v29 = vadd.f32 %v2799_v63, %v1877_v4  ;;  %v2487_v6 = vpop.f32.mrb[2].mxu0  ;;  %v2807_v14 = vadd.f32 %v2806_v47, %v2493_v20  ;;  %v1480_v25 = vpop.f32.mrb[11].mxu1 }
 0x186   : > { %v2800_v27 = vadd.f32 %v2487_v6, %v2267_v59  ;;  %v1460_v32 = vpop.f32.mrb[3].mxu0  ;;  %v2809_v30 = vadd.f32 %v2808_v15, %v1480_v25 }
 0x187   : > { %v3748_v31 = vadd.f32 %v2807_v14, %v1877_v4  ;;  %v2801_v34 = vadd.f32 %v1460_v32, %v776_v58 }
 0x188   : > { %v3750_v36 = vadd.f32 %v2800_v27, %v1877_v4  ;;  %v3752_v28 = vadd.f32 %v2809_v30, %v1877_v4 }
 0x189   : > { %v3754_v39 = vadd.f32 %v2801_v34, %v1877_v4 }
 0x18a PF: > { %p1878_p12 = scmp.ne.s32.totalorder %s2957_s13, 0 }
 0x18b   : > { %v1523_v43 = vadd.f32 (!%p1878_p12), %v3742_v13, %v3746_v29  ;;  %v1539_v48 = vmul.f32 (!%p1878_p12), %v3746_v29, %v3746_v29  ;;  %v1540_v46 = vmul.f32 (!%p1878_p12), %v3742_v13, %v3742_v13  ;;  %v1541_v50 = vmul.f32 (!%p1878_p12), %v3754_v39, %v3754_v39  ;;  %v1522_v26 = vld [vmem:[#allocation2] sm:$0x1] (!%p1878_p12)  ;;  %v1538_v3 = vld [vmem:[#allocation2 + $0x1] sm:$0x1] (!%p1878_p12) }
 0x18c   : > { %1521 = sbr.rel (%p1878_p12) target bundleno = 426 (0x1aa), region = 40  ;;  %v1542_v54 = vmul.f32 (!%p1878_p12), %v3750_v36, %v3750_v36  ;;  %v1543_v57 = vmul.f32 (!%p1878_p12), %v3744_v19, %v3744_v19  ;;  %v1544_v38 = vmul.f32 (!%p1878_p12), %v3740_v52, %v3740_v52  ;;  %v1545_v53 = vmul.f32 (!%p1878_p12), %v3752_v28, %v3752_v28 }
 0x18d   : > { %v1524_v51 = vadd.f32 (!%p1878_p12), %v1523_v43, %v3754_v39  ;;  %v1547_v45 = vadd.f32 (!%p1878_p12), %v1540_v46, %v1539_v48  ;;  %v1546_v61 = vmul.f32 (!%p1878_p12), %v3748_v31, %v3748_v31 }
 0x18f   : > { %v1525_v33 = vadd.f32 (!%p1878_p12), %v1524_v51, %v3750_v36  ;;  %v1548_v8 = vadd.f32 (!%p1878_p12), %v1547_v45, %v1541_v50 }
 0x191   : > { %v1526_v9 = vadd.f32 (!%p1878_p12), %v1525_v33, %v3744_v19  ;;  %v1549_v22 = vadd.f32 (!%p1878_p12), %v1548_v8, %v1542_v54 }
 0x193   : > { %v1527_v49 = vadd.f32 %v1526_v9, %v3740_v52  ;;  %v1550_v23 = vadd.f32 %v1549_v22, %v1543_v57 }
 0x195   : > { %v1528_v40 = vadd.f32 %v1527_v49, %v3752_v28  ;;  %v1551_v41 = vadd.f32 %v1550_v23, %v1544_v38 }
 0x197   : > { %v1529_v1 = vadd.f32 %v1528_v40, %v3748_v31  ;;  %v1552_v24 = vadd.f32 %v1551_v41, %v1545_v53 }
 0x199   : > { %v1530_v37 = vrot.slane %v1529_v1, 4  ;;  %v1553_v18 = vadd.f32 %v1552_v24, %v1546_v61 }
 0x19b   : > { %v1531_v56 = vadd.f32 %v1530_v37, %v1529_v1  ;;  %v1554_v59 = vrot.slane %v1553_v18, 4 }
 0x19d   : > { %v1532_v58 = vrot.slane %v1531_v56, 2  ;;  %v1555_v60 = vadd.f32 %v1554_v59, %v1553_v18 }
 0x19f   : > { %v1533_v21 = vadd.f32 %v1532_v58, %v1531_v56  ;;  %v1556_v55 = vrot.slane %v1555_v60, 2 }
 0x1a1   : > { %v1534_v35 = vrot.slane %v1533_v21, 1  ;;  %v1557_v62 = vadd.f32 %v1556_v55, %v1555_v60 }
 0x1a3   : > { %v1535_v0 = vadd.f32 %v1534_v35, %v1533_v21  ;;  %v1558_v44 = vrot.slane %v1557_v62, 1 }
 0x1a5   : > { %v1536_v47 = vadd.f32 %v1535_v0, %v1522_v26  ;;  %v1559_v2 = vadd.f32 %v1558_v44, %v1557_v62 }
 0x1a7   : > { %1537 = vst [vmem:[#allocation2] sm:$0x1] %v1536_v47  ;;  %v1560_v15 = vadd.f32 %v1559_v2, %v1538_v3 }
 0x1a9   : > { %1561 = vst [vmem:[#allocation2 + $0x1] sm:$0x1] %v1560_v15 }
 0x1aa PF: > { %p1879_p13 = scmp.ne.s32.totalorder %s2957_s13, 1 }
 0x1ab   : > { %v1573_v12 = vlaneseq (!%p1879_p13) }
 0x1ac   : > { %1565 = sbr.rel (%p1879_p13) target bundleno = 465 (0x1d1), region = 44 }
 0x1ad   : > { %v1574_v63 = vshrl.u32 (!%p1879_p13), %v1573_v12, 7 }
 0x1ae   : > { %v1566_v4 = vld [vmem:[#allocation2] sm:$0x1] (!%p1879_p13) }
 0x1af   : > { %v1567_v7 = vmul.f32 (!%p1879_p13), 0.00390625, %v1566_v4  ;;  %v1575_v6 = vsub.s32 (!%p1879_p13), 0, %v1574_v63 }
 0x1b0   : > { %v1568_v5 = vld [vmem:[#allocation2 + $0x1] sm:$0x1] (!%p1879_p13) }
 0x1b1   : > { %v1569_v10 = vmul.f32 (!%p1879_p13), 0.00390625, %v1568_v5  ;;  %v1570_v11 = vmul.f32 (!%p1879_p13), %v1567_v7, %v1567_v7  ;;  %v1576_v14 = vrot.slane (!%p1879_p13), %v1567_v7, %v1575_v6 }
 0x1b3   : > { %v1571_v16 = vsub.f32 %v1569_v10, %v1570_v11  ;;  %v1577_v25 = vsub.f32 %v3746_v29, %v1576_v14  ;;  %v1578_v27 = vsub.f32 %v3742_v13, %v1576_v14  ;;  %v1579_v32 = vsub.f32 %v3754_v39, %v1576_v14 }
 0x1b4   : > { %v1580_v30 = vsub.f32 %v3750_v36, %v1576_v14  ;;  %v1581_v42 = vsub.f32 %v3744_v19, %v1576_v14  ;;  %v1582_v43 = vsub.f32 %v3740_v52, %v1576_v14  ;;  %v1583_v48 = vsub.f32 %v3752_v28, %v1576_v14 }
 0x1b5   : > { %v1572_v17 = vmax.f32 %v1571_v16, 0.0  ;;  %v1584_v46 = vsub.f32 %v3748_v31, %v1576_v14 }
 0x1b7   : > { %v1585_v20 = vadd.f32 1e-05, %v1572_v17 }
 0x1b9   : > { %2921 = vrsqrt.f32 %v1585_v20 }
 0x1c3   : > { %v2922_v34 = vpop.eup %2921 }
 0x1c4   : > { %v1590_v50 = vrot.slane %v2922_v34, %v1575_v6 }
 0x1c6   : > { %v1591_v51 = vmul.f32 %v1590_v50, %v1577_v25  ;;  %v1592_v54 = vmul.f32 %v1590_v50, %v1578_v27  ;;  %v1593_v45 = vmul.f32 %v1590_v50, %v1579_v32  ;;  %v1594_v29 = vmul.f32 %v1590_v50, %v1580_v30 }
 0x1c7   : > { %v1595_v33 = vmul.f32 %v1590_v50, %v1581_v42  ;;  %v1596_v13 = vmul.f32 %v1590_v50, %v1582_v43  ;;  %v1597_v39 = vmul.f32 %v1590_v50, %v1583_v48  ;;  %v1598_v36 = vmul.f32 %v1590_v50, %v1584_v46 }
 0x1c8   : > { %vm1599_vm2 = vcmp.ge.f32.partialorder %v1591_v51, 0.0  ;;  %v1607_v57 = vmul.f32 0.2, %v1591_v51  ;;  %vm1600_vm3 = vcmp.ge.f32.partialorder %v1592_v54, 0.0  ;;  %v1608_v52 = vmul.f32 0.2, %v1592_v54 }
 0x1c9   : > { %vm1601_vm4 = vcmp.ge.f32.partialorder %v1593_v45, 0.0  ;;  %v1609_v19 = vmul.f32 0.2, %v1593_v45  ;;  %vm1602_vm5 = vcmp.ge.f32.partialorder %v1594_v29, 0.0  ;;  %v1610_v31 = vmul.f32 0.2, %v1594_v29 }
 0x1ca   : > { %v1615_v28 = vsel %vm1599_vm2, %v1591_v51, %v1607_v57  ;;  %v1616_v8 = vsel %vm1600_vm3, %v1592_v54, %v1608_v52  ;;  %vm1603_vm6 = vcmp.ge.f32.partialorder %v1595_v33, 0.0  ;;  %v1611_v9 = vmul.f32 0.2, %v1595_v33 }
 0x1cb   : > { %1623 = vst [vmem:[%s3163_s10] sm:$0xff] %v1615_v28  ;;  %1624 = vst [vmem:[%s3163_s10 + $0x8] sm:$0xff] %v1616_v8  ;;  %v1617_v38 = vsel %vm1601_vm4, %v1593_v45, %v1609_v19  ;;  %v1618_v22 = vsel %vm1602_vm5, %v1594_v29, %v1610_v31  ;;  %vm1604_vm7 = vcmp.ge.f32.partialorder %v1596_v13, 0.0  ;;  %v1612_v49 = vmul.f32 0.2, %v1596_v13 }
 0x1cc   : > { %1625 = vst [vmem:[%s3163_s10 + $0x10] sm:$0xff] %v1617_v38  ;;  %1626 = vst [vmem:[%s3163_s10 + $0x18] sm:$0xff] %v1618_v22  ;;  %v1619_v53 = vsel %vm1603_vm6, %v1595_v33, %v1611_v9  ;;  %vm1605_vm8 = vcmp.ge.f32.partialorder %v1597_v39, 0.0  ;;  %v1613_v23 = vmul.f32 0.2, %v1597_v39  ;;  %vm1606_vm9 = vcmp.ge.f32.partialorder %v1598_v36, 0.0 }
 0x1cd   : > { %1627 = vst [vmem:[%s3163_s10 + $0x20] sm:$0xff] %v1619_v53  ;;  %v1620_v40 = vsel %vm1604_vm7, %v1596_v13, %v1612_v49  ;;  %v1614_v61 = vmul.f32 0.2, %v1598_v36 }
 0x1ce   : > { %1628 = vst [vmem:[%s3163_s10 + $0x28] sm:$0xff] %v1620_v40  ;;  %v1621_v41 = vsel %vm1605_vm8, %v1597_v39, %v1613_v23 }
 0x1cf   : > { %1629 = vst [vmem:[%s3163_s10 + $0x30] sm:$0xff] %v1621_v41  ;;  %v1622_v1 = vsel %vm1606_vm9, %v1598_v36, %v1614_v61 }
 0x1d0   : > { %1630 = vst [vmem:[%s3163_s10 + $0x38] sm:$0xff] %v1622_v1 }
 0x1d1 PF: > { %s13_s18 = sadd.s32 1, %s2977_s18   ;;  %s3826_s12 = smov %s2965_s15 }
 0x1d2   : > { %p10_p0 = scmp.ge.s32.totalorder %s13_s18, 18   ;;  %s3827_s13 = smov %s2969_s16 }
 0x1d3   : > { %s3828_s14 = smov %s2973_s17  ;;  %s3829_s15 = smov %s3833_s19 }
 0x1d4   : > { %s3830_s16 = smov %s3837_s20  ;;  %s3831_s17 = smov %s3841_s21 }
 0x1d5   :  { %12 = sbr.rel (!%p10_p0) target bundleno = 4 (0x4), region = 82 }

// kernel: bottleneck_in_forward.6
= control target key start
LH: loop header
LB: loop body
LE: loop exit
PB: predicated region body
PF: predicated region fallthrough
CT: control target
= control target key end

     0   :  { %s847_s18 = smov 0   ;;  %s849_s19 = smov 0   ;;  %s1040_s0 = inlined_call_operand.vmem [shape: f32[512,128], index: 0, kind: input, shape index: {}]   ;;  %s1041_s1 = inlined_call_operand.vmem [shape: f32[128,128], index: 1, kind: input, shape index: {}]   ;;  %s1042_s2 = inlined_call_operand.vmem [shape: f32[1,128], index: 2, kind: input, shape index: {}]   ;;  %s1043_s3 = inlined_call_operand.vmem [shape: f32[1,128], index: 3, kind: input, shape index: {}]   ;;  %s1044_s4 = inlined_call_operand.vmem [shape: f32[1,128], index: 4, kind: input, shape index: {}]   ;;  %s1045_s5 = inlined_call_operand.vmem [shape: f32[512,128], index: 5, kind: output, shape index: {}]  }
   0x1   :  { %s851_s20 = smov 0   ;;  %s853_s21 = smov 0  }
   0x2   :  { %s855_s22 = smov 0  }
   0x3 LB: > { %s24_s23 = sadd.s32 1, %s806_s20  ;;  %s27_s24 = sadd.s32 1, %s810_s21  ;;  %s814_s22 = sphi %s855_s22, %s15_s22   ;;  %s810_s21 = sphi %s853_s21, %s1050_s21   ;;  %s806_s20 = sphi %s851_s20, %s1049_s20   ;;  %s802_s19 = sphi %s849_s19, %s1048_s19   ;;  %s798_s18 = sphi %s847_s18, %s1047_s18  }
   0x4   : > { %p25_p0 = scmp.ge.s32.totalorder %s24_s23, 8  ;;  %p605_p1 = scmp.ge.s32.totalorder %s814_s22, 1 }
   0x5   : > { %p202_p2 = scmp.lt.s32.totalorder %s814_s22, 17 }
   0x6   : > { %s1052_s23 = smov (%p25_p0, %s24_s23), 0  ;;  %s1054_s24 = smov (!%p25_p0, %s27_s24), %s810_s21 }
   0x7   : > { %p203_p3 = pnand %p605_p1, %p202_p2  ;;  %p29_p4 = scmp.ge.s32.totalorder %s1054_s24, 2 }
   0x8   : > { %s237_s25 = smul.u32 (!%p203_p3), %s798_s18, %s802_s19  ;;  %v253_v0 = vld [vmem:[%s1041_s1] sm:$0xff] (!%p203_p3)  ;;  %v254_v1 = vld [vmem:[%s1041_s1 + $0x8] sm:$0xff] (!%p203_p3)  ;;  %v255_v2 = vld [vmem:[%s1041_s1 + $0x10] sm:$0xff] (!%p203_p3)  ;;  %s606_s7 = sshll.u32 (!%p203_p3), %s798_s18, 3 }
   0x9   : > { %s1056_s24 = smov (%p29_p4, %s1054_s24), 0  ;;  %206 = sbr.rel (%p203_p3) target bundleno = 338 (0x152), region = 40 }
   0xa   : > { %v685_v3 = vpack.c.bf16 (!%p203_p3), %v254_v1, %v253_v0  ;;  %v256_v4 = vld [vmem:[%s1041_s1 + $0x18] sm:$0xff] (!%p203_p3)  ;;  %p232_p5 = scmp.lt.s32.totalorder (!%p203_p3), %s606_s7, 63  ;;  %s608_s10 = sshll.u32 (!%p203_p3), %s237_s25, 3  ;;  %v257_v6 = vld [vmem:[%s1041_s1 + $0x20] sm:$0xff] (!%p203_p3)  ;;  %v258_v7 = vld [vmem:[%s1041_s1 + $0x28] sm:$0xff] (!%p203_p3) }
   0xb   : > { %v689_v5 = vpack.c.bf16 (!%p203_p3), %v256_v4, %v255_v2  ;;  %p239_p6 = scmp.lt.s32.totalorder (!%p203_p3), %s608_s10, 63  ;;  %v693_v8 = vpack.c.bf16 (!%p203_p3), %v258_v7, %v257_v6  ;;  %v259_v9 = vld [vmem:[%s1041_s1 + $0x30] sm:$0xff] (!%p203_p3)  ;;  %v260_v10 = vld [vmem:[%s1041_s1 + $0x38] sm:$0xff] (!%p203_p3)  ;;  %v261_v14 = vld [vmem:[%s1041_s1 + $0x40] sm:$0xff] (!%p203_p3)  ;;  %p381_p7 = scmp.eq.s32.totalorder (!%p203_p3), %s802_s19, 0 }
   0xc   : > { %686 = vmatprep.subr.bf16.mxu0 (!%p203_p3), %v685_v3  ;;  %717 = vmatprep.subr.bf16.mxu1 (!%p203_p3), %v685_v3  ;;  %v697_v13 = vpack.c.bf16 (!%p203_p3), %v260_v10, %v259_v9  ;;  %v262_v15 = vld [vmem:[%s1041_s1 + $0x48] sm:$0xff] (!%p203_p3)  ;;  %v263_v17 = vld [vmem:[%s1041_s1 + $0x50] sm:$0xff] (!%p203_p3)  ;;  %v264_v18 = vld [vmem:[%s1041_s1 + $0x58] sm:$0xff] (!%p203_p3)  ;;  %p382_p8 = scmp.eq.s32.totalorder (!%p203_p3), %s798_s18, 0 }
   0xd   : > { %688 = vmatpush3.bf16.msra.mxu0 (!%p203_p3), %v685_v3  ;;  %725 = vmatpush3.bf16.msra.mxu1 (!%p203_p3), %v685_v3  ;;  %v701_v16 = vpack.c.bf16 (!%p203_p3), %v262_v15, %v261_v14  ;;  %v705_v19 = vpack.c.bf16 (!%p203_p3), %v264_v18, %v263_v17  ;;  %v265_v20 = vld [vmem:[%s1041_s1 + $0x60] sm:$0xff] (!%p203_p3)  ;;  %v266_v21 = vld [vmem:[%s1041_s1 + $0x68] sm:$0xff] (!%p203_p3)  ;;  %v267_v23 = vld [vmem:[%s1041_s1 + $0x70] sm:$0xff] (!%p203_p3) }
   0xe   : > { %690 = vmatprep.subr.bf16.mxu0 (!%p203_p3), %v689_v5  ;;  %718 = vmatprep.subr.bf16.mxu1 (!%p203_p3), %v689_v5  ;;  %v709_v22 = vpack.c.bf16 (!%p203_p3), %v266_v21, %v265_v20  ;;  %v268_v24 = vld [vmem:[%s1041_s1 + $0x78] sm:$0xff] (!%p203_p3)  ;;  %p952_p9 = pnand (!%p203_p3), %p382_p8, %p381_p7  ;;  %v610_v32 = vld [vmem:[%s1042_s2] ss:$0 sm:$0xff] (!%p203_p3) }
   0xf   : > { %v713_v25 = vpack.c.bf16 (!%p203_p3), %v268_v24, %v267_v23 }
  0x10   : > { %s1058_s7 = smov (!%p232_p5, %s606_s7), 63  ;;  %s1060_s10 = smov (!%p239_p6, %s608_s10), 63 }
  0x11   : > { %s607_s26 = sshll.u32 %s1058_s7, 3  ;;  %s609_s27 = sshll.u32 %s1060_s10, 3  ;;  %692 = vmatpush3.bf16.msra.mxu0 %v689_v5  ;;  %726 = vmatpush3.bf16.msra.mxu1 %v689_v5  ;;  %v816_v49 = vmov (!%p952_p9), 0.0  }
  0x12   : > { %s911_s30 = scalar_lea.vmem %s1040_s0, %s607_s26  ;;  %s916_s9 = scalar_lea.vmem %s1045_s5, %s609_s27  ;;  %694 = vmatprep.subr.bf16.mxu0 %v693_v8  ;;  %719 = vmatprep.subr.bf16.mxu1 %v693_v8  ;;  %387 = vst [vmem:[#allocation2] sm:$0xff] (!%p952_p9), %v816_v49 }
  0x13   : > { %v245_v11 = vld [vmem:[%s911_s30] sm:$0xff]  ;;  %v246_v26 = vld [vmem:[%s911_s30 + $0x8] sm:$0xff]  ;;  %v247_v28 = vld [vmem:[%s911_s30 + $0x10] sm:$0xff] }
  0x14   : > { %v249_v12 = vld [vmem:[%s911_s30 + $0x20] sm:$0xff]  ;;  %673 = vmatprep.mubr.f32.mxu0 %v245_v11  ;;  %v250_v27 = vld [vmem:[%s911_s30 + $0x28] sm:$0xff]  ;;  %v251_v29 = vld [vmem:[%s911_s30 + $0x30] sm:$0xff] }
  0x15   : > { %679 = vmatprep.mubr.f32.mxu1 %v249_v12  ;;  %696 = vmatpush3.bf16.msra.mxu0 %v693_v8  ;;  %v248_v30 = vld [vmem:[%s911_s30 + $0x18] sm:$0xff] }
  0x16   : > { %727 = vmatpush3.bf16.msra.mxu1 %v693_v8  ;;  %698 = vmatprep.subr.bf16.mxu0 %v697_v13  ;;  %v252_v31 = vld [vmem:[%s911_s30 + $0x38] sm:$0xff] }
  0x17   : > { %720 = vmatprep.subr.bf16.mxu1 %v697_v13 }
  0x19   : > { %700 = vmatpush3.bf16.msra.mxu0 %v697_v13 }
  0x1a   : > { %728 = vmatpush3.bf16.msra.mxu1 %v697_v13  ;;  %702 = vmatprep.subr.bf16.mxu0 %v701_v16 }
  0x1b   : > { %721 = vmatprep.subr.bf16.mxu1 %v701_v16 }
  0x1d   : > { %704 = vmatpush3.bf16.msra.mxu0 %v701_v16 }
  0x1e   : > { %729 = vmatpush3.bf16.msra.mxu1 %v701_v16  ;;  %706 = vmatprep.subr.bf16.mxu0 %v705_v19 }
  0x1f   : > { %722 = vmatprep.subr.bf16.mxu1 %v705_v19 }
  0x21   : > { %708 = vmatpush3.bf16.msra.mxu0 %v705_v19 }
  0x22   : > { %730 = vmatpush3.bf16.msra.mxu1 %v705_v19  ;;  %710 = vmatprep.subr.bf16.mxu0 %v709_v22 }
  0x23   : > { %723 = vmatprep.subr.bf16.mxu1 %v709_v22 }
  0x25   : > { %712 = vmatpush3.bf16.msra.mxu0 %v709_v22 }
  0x26   : > { %731 = vmatpush3.bf16.msra.mxu1 %v709_v22  ;;  %714 = vmatprep.subr.bf16.mxu0 %v713_v25 }
  0x27   : > { %724 = vmatprep.subr.bf16.mxu1 %v713_v25 }
  0x29   : > { %716 = vmatpush3.bf16.msra.mxu0 %v713_v25 }
  0x2a   : > { %732 = vmatpush3.bf16.msra.mxu1 %v713_v25 }
  0x2c   : > { %674 = vmatmul.mubr.f32.vlgmr.msra.gmra.mrb[0].mxu0 %v246_v26 }
  0x2d   : > { %680 = vmatmul.mubr.f32.vlgmr.msra.gmra.mrb[0].mxu1 %v250_v27  ;;  %676 = vmatprep.mubr.f32.mxu0 %v247_v28 }
  0x2e   : > { %682 = vmatprep.mubr.f32.mxu1 %v251_v29 }
  0x30   : > { %677 = vmatmul.mubr.f32.gmra.mrb[2].mxu0 %v248_v30 }
  0x31   : > { %683 = vmatmul.mubr.f32.gmra.mrb[2].mxu1 %v252_v31 }
  0xff   : > { %v675_v33 = vpop.f32.mrb[0].mxu0 }
 0x100   : > { %v681_v34 = vpop.f32.mrb[0].mxu1  ;;  %v959_v35 = vadd.f32 %v675_v33, %v610_v32  ;;  %v342_v37 = vpop.f32.mrb[1].mxu0  ;;  %386 = sbr.rel (%p952_p9) target bundleno = 263 (0x107), region = 44 }
 0x101   : > { %v961_v36 = vadd.f32 %v681_v34, %v610_v32  ;;  %v362_v38 = vpop.f32.mrb[1].mxu1  ;;  %v963_v39 = vadd.f32 %v610_v32, %v342_v37 }
 0x102   : > { %v965_v40 = vadd.f32 %v610_v32, %v362_v38 }
 0x103   : > { %v678_v41 = vpop.f32.mrb[2].mxu0 }
 0x104   : > { %v684_v42 = vpop.f32.mrb[2].mxu1  ;;  %v967_v43 = vadd.f32 %v678_v41, %v610_v32  ;;  %v352_v45 = vpop.f32.mrb[3].mxu0 }
 0x105   : > { %v969_v44 = vadd.f32 %v684_v42, %v610_v32  ;;  %v372_v46 = vpop.f32.mrb[3].mxu1  ;;  %v971_v47 = vadd.f32 %v610_v32, %v352_v45 }
 0x106   : > { %v973_v48 = vadd.f32 %v610_v32, %v372_v46 }
 0x107 PF: > { %p611_p10 = scmp.ne.s32.totalorder %s802_s19, 0 }
 0x108   : > { %v392_v50 = vadd.f32 (!%p611_p10), %v959_v35, %v963_v39  ;;  %v408_v51 = vmul.f32 (!%p611_p10), %v963_v39, %v963_v39  ;;  %v409_v52 = vmul.f32 (!%p611_p10), %v959_v35, %v959_v35  ;;  %v410_v53 = vmul.f32 (!%p611_p10), %v971_v47, %v971_v47  ;;  %v391_v17 = vld [vmem:[#allocation2] sm:$0x1] (!%p611_p10)  ;;  %v407_v20 = vld [vmem:[#allocation2 + $0x1] sm:$0x1] (!%p611_p10) }
 0x109   : > { %390 = sbr.rel (%p611_p10) target bundleno = 295 (0x127), region = 48  ;;  %v411_v55 = vmul.f32 (!%p611_p10), %v967_v43, %v967_v43  ;;  %v412_v58 = vmul.f32 (!%p611_p10), %v965_v40, %v965_v40  ;;  %v413_v61 = vmul.f32 (!%p611_p10), %v961_v36, %v961_v36  ;;  %v414_v0 = vmul.f32 (!%p611_p10), %v973_v48, %v973_v48 }
 0x10a   : > { %v393_v54 = vadd.f32 (!%p611_p10), %v392_v50, %v971_v47  ;;  %v416_v56 = vadd.f32 (!%p611_p10), %v409_v52, %v408_v51  ;;  %v415_v3 = vmul.f32 (!%p611_p10), %v969_v44, %v969_v44 }
 0x10c   : > { %v394_v57 = vadd.f32 (!%p611_p10), %v393_v54, %v967_v43  ;;  %v417_v59 = vadd.f32 (!%p611_p10), %v416_v56, %v410_v53 }
 0x10e   : > { %v395_v60 = vadd.f32 (!%p611_p10), %v394_v57, %v965_v40  ;;  %v418_v62 = vadd.f32 (!%p611_p10), %v417_v59, %v411_v55 }
 0x110   : > { %v396_v63 = vadd.f32 %v395_v60, %v961_v36  ;;  %v419_v1 = vadd.f32 %v418_v62, %v412_v58 }
 0x112   : > { %v397_v2 = vadd.f32 %v396_v63, %v973_v48  ;;  %v420_v4 = vadd.f32 %v419_v1, %v413_v61 }
 0x114   : > { %v398_v5 = vadd.f32 %v397_v2, %v969_v44  ;;  %v421_v6 = vadd.f32 %v420_v4, %v414_v0 }
 0x116   : > { %v399_v7 = vrot.slane %v398_v5, 4  ;;  %v422_v8 = vadd.f32 %v421_v6, %v415_v3 }
 0x118   : > { %v400_v9 = vadd.f32 %v399_v7, %v398_v5  ;;  %v423_v10 = vrot.slane %v422_v8, 4 }
 0x11a   : > { %v401_v11 = vrot.slane %v400_v9, 2  ;;  %v424_v12 = vadd.f32 %v423_v10, %v422_v8 }
 0x11c   : > { %v402_v13 = vadd.f32 %v401_v11, %v400_v9  ;;  %v425_v14 = vrot.slane %v424_v12, 2 }
 0x11e   : > { %v403_v15 = vrot.slane %v402_v13, 1  ;;  %v426_v16 = vadd.f32 %v425_v14, %v424_v12 }
 0x120   : > { %v404_v18 = vadd.f32 %v403_v15, %v402_v13  ;;  %v427_v19 = vrot.slane %v426_v16, 1 }
 0x122   : > { %v405_v21 = vadd.f32 %v404_v18, %v391_v17  ;;  %v428_v22 = vadd.f32 %v427_v19, %v426_v16 }
 0x124   : > { %406 = vst [vmem:[#allocation2] sm:$0x1] %v405_v21  ;;  %v429_v23 = vadd.f32 %v428_v22, %v407_v20 }
 0x126   : > { %430 = vst [vmem:[#allocation2 + $0x1] sm:$0x1] %v429_v23 }
 0x127 PF: > { %p612_p11 = scmp.ne.s32.totalorder %s802_s19, 1 }
 0x128   : > { %v442_v29 = vlaneseq (!%p612_p11) }
 0x129   : > { %434 = sbr.rel (%p612_p11) target bundleno = 338 (0x152), region = 52 }
 0x12a   : > { %v443_v32 = vshrl.u32 (!%p612_p11), %v442_v29, 7 }
 0x12b   : > { %v435_v24 = vld [vmem:[#allocation2] sm:$0x1] (!%p612_p11) }
 0x12c   : > { %v436_v26 = vmul.f32 (!%p612_p11), 0.001953125, %v435_v24  ;;  %v444_v34 = vsub.s32 (!%p612_p11), 0, %v443_v32 }
 0x12d   : > { %v437_v25 = vld [vmem:[#allocation2 + $0x1] sm:$0x1] (!%p612_p11) }
 0x12e   : > { %v438_v27 = vmul.f32 (!%p612_p11), 0.001953125, %v437_v25  ;;  %v439_v28 = vmul.f32 (!%p612_p11), %v436_v26, %v436_v26  ;;  %v445_v37 = vrot.slane (!%p612_p11), %v436_v26, %v444_v34 }
 0x130   : > { %v440_v30 = vsub.f32 %v438_v27, %v439_v28  ;;  %v446_v38 = vsub.f32 %v963_v39, %v445_v37  ;;  %v447_v41 = vsub.f32 %v959_v35, %v445_v37  ;;  %v448_v42 = vsub.f32 %v971_v47, %v445_v37  ;;  %v613_v39 = vld [vmem:[%s1043_s3] ss:$0 sm:$0xff] }
 0x131   : > { %v449_v45 = vsub.f32 %v967_v43, %v445_v37  ;;  %v450_v49 = vsub.f32 %v965_v40, %v445_v37  ;;  %v451_v50 = vsub.f32 %v961_v36, %v445_v37  ;;  %v452_v51 = vsub.f32 %v973_v48, %v445_v37  ;;  %v614_v43 = vld [vmem:[%s1044_s4] ss:$0 sm:$0xff] }
 0x132   : > { %v441_v31 = vmax.f32 %v440_v30, 0.0  ;;  %v453_v52 = vsub.f32 %v969_v44, %v445_v37 }
 0x134   : > { %v454_v33 = vadd.f32 1e-05, %v441_v31 }
 0x136   : > { %774 = vrsqrt.f32 %v454_v33 }
 0x140   : > { %v775_v46 = vpop.eup %774 }
 0x141   : > { %v459_v53 = vrot.slane %v775_v46, %v444_v34 }
 0x143   : > { %v460_v54 = vmul.f32 %v459_v53, %v446_v38  ;;  %v461_v35 = vmul.f32 %v459_v53, %v447_v41  ;;  %v462_v55 = vmul.f32 %v459_v53, %v448_v42  ;;  %v463_v47 = vmul.f32 %v459_v53, %v449_v45 }
 0x144   : > { %v464_v40 = vmul.f32 %v459_v53, %v450_v49  ;;  %v465_v56 = vmul.f32 %v459_v53, %v451_v50  ;;  %v466_v36 = vmul.f32 %v459_v53, %v452_v51  ;;  %v467_v57 = vmul.f32 %v459_v53, %v453_v52 }
 0x145   : > { %v475_v48 = vmul.f32 %v613_v39, %v460_v54  ;;  %v476_v58 = vmul.f32 %v613_v39, %v461_v35  ;;  %v477_v44 = vmul.f32 %v613_v39, %v462_v55  ;;  %v478_v59 = vmul.f32 %v613_v39, %v463_v47 }
 0x146   : > { %v479_v60 = vmul.f32 %v613_v39, %v464_v40  ;;  %v480_v61 = vmul.f32 %v613_v39, %v465_v56  ;;  %v481_v62 = vmul.f32 %v613_v39, %v466_v36  ;;  %v482_v63 = vmul.f32 %v613_v39, %v467_v57 }
 0x147   : > { %v490_v0 = vadd.f32 %v614_v43, %v475_v48  ;;  %v491_v1 = vadd.f32 %v614_v43, %v476_v58  ;;  %v492_v2 = vadd.f32 %v614_v43, %v477_v44  ;;  %v493_v3 = vadd.f32 %v614_v43, %v478_v59 }
 0x148   : > { %v494_v4 = vadd.f32 %v614_v43, %v479_v60  ;;  %v495_v5 = vadd.f32 %v614_v43, %v480_v61  ;;  %v496_v6 = vadd.f32 %v614_v43, %v481_v62  ;;  %v497_v7 = vadd.f32 %v614_v43, %v482_v63 }
 0x149   : > { %vm498_vm0 = vcmp.ge.f32.partialorder %v490_v0, 0.0  ;;  %v506_v8 = vmul.f32 0.2, %v490_v0  ;;  %vm499_vm1 = vcmp.ge.f32.partialorder %v491_v1, 0.0  ;;  %v507_v9 = vmul.f32 0.2, %v491_v1 }
 0x14a   : > { %vm500_vm2 = vcmp.ge.f32.partialorder %v492_v2, 0.0  ;;  %v508_v10 = vmul.f32 0.2, %v492_v2  ;;  %vm501_vm3 = vcmp.ge.f32.partialorder %v493_v3, 0.0  ;;  %v509_v11 = vmul.f32 0.2, %v493_v3 }
 0x14b   : > { %v514_v12 = vsel %vm498_vm0, %v490_v0, %v506_v8  ;;  %v515_v13 = vsel %vm499_vm1, %v491_v1, %v507_v9  ;;  %vm502_vm4 = vcmp.ge.f32.partialorder %v494_v4, 0.0  ;;  %v510_v14 = vmul.f32 0.2, %v494_v4 }
 0x14c   : > { %522 = vst [vmem:[%s916_s9] sm:$0xff] %v514_v12  ;;  %523 = vst [vmem:[%s916_s9 + $0x8] sm:$0xff] %v515_v13  ;;  %v516_v15 = vsel %vm500_vm2, %v492_v2, %v508_v10  ;;  %v517_v16 = vsel %vm501_vm3, %v493_v3, %v509_v11  ;;  %vm503_vm5 = vcmp.ge.f32.partialorder %v495_v5, 0.0  ;;  %v511_v17 = vmul.f32 0.2, %v495_v5 }
 0x14d   : > { %524 = vst [vmem:[%s916_s9 + $0x10] sm:$0xff] %v516_v15  ;;  %525 = vst [vmem:[%s916_s9 + $0x18] sm:$0xff] %v517_v16  ;;  %v518_v18 = vsel %vm502_vm4, %v494_v4, %v510_v14  ;;  %vm504_vm6 = vcmp.ge.f32.partialorder %v496_v6, 0.0  ;;  %v512_v19 = vmul.f32 0.2, %v496_v6  ;;  %vm505_vm7 = vcmp.ge.f32.partialorder %v497_v7, 0.0 }
 0x14e   : > { %526 = vst [vmem:[%s916_s9 + $0x20] sm:$0xff] %v518_v18  ;;  %v519_v20 = vsel %vm503_vm5, %v495_v5, %v511_v17  ;;  %v513_v21 = vmul.f32 0.2, %v497_v7 }
 0x14f   : > { %527 = vst [vmem:[%s916_s9 + $0x28] sm:$0xff] %v519_v20  ;;  %v520_v22 = vsel %vm504_vm6, %v496_v6, %v512_v19 }
 0x150   : > { %528 = vst [vmem:[%s916_s9 + $0x30] sm:$0xff] %v520_v22  ;;  %v521_v23 = vsel %vm505_vm7, %v497_v7, %v513_v21 }
 0x151   : > { %529 = vst [vmem:[%s916_s9 + $0x38] sm:$0xff] %v521_v23 }
 0x152 PF: > { %s15_s22 = sadd.s32 1, %s814_s22   ;;  %s1047_s18 = smov %s806_s20 }
 0x153   : > { %p12_p12 = scmp.ge.s32.totalorder %s15_s22, 18   ;;  %s1048_s19 = smov %s810_s21 }
 0x154   : > { %s1049_s20 = smov %s1052_s23  ;;  %s1050_s21 = smov %s1056_s24 }
 0x155   :  { %14 = sbr.rel (!%p12_p12) target bundleno = 3 (0x3), region = 82 }

</bundles_post_ra>
